<compile_context>
chip_gen: v7x
topology: tpu7x:2x2x1
jax: 0.10.0
libtpu: 0.0.40
codegen_flags: <defaults>
</compile_context>

<pallas_src>
import math
import functools
import numpy as np
import jax
import jax.numpy as jnp
from jax import lax
from jax.experimental import pallas as pl
from jax.experimental.pallas import tpu as pltpu

F32 = jnp.float32
BF16 = jnp.bfloat16

# 3x3 neighborhood offsets, row-major over (dy, dx) -- must match tap_masks and w*m column order.
_OFFS = tuple((dy, dx) for dy in (-1, 0, 1) for dx in (-1, 0, 1))


# --------------------- host-side constants ---------------------
def _shifted_idft_1d(n):
    # centered orthonormal IDFT: fftshift(F_idft(ifftshift(x))) == G @ x with
    # G[m, k] = exp(+2*pi*i*(m - n//2)*(k - n//2)/n) / sqrt(n)   (G is symmetric)
    idx = np.arange(n) - n // 2
    ang = 2.0 * np.pi * np.outer(idx, idx) / n
    s = 1.0 / math.sqrt(n)
    return np.cos(ang) * s, np.sin(ang) * s


def shifted_idft2_matrix(h, w):
    # full 2-D transform over flattened (h*W + w) pixels: M = kron(G_H, G_W) (symmetric).
    ghr, ghi = _shifted_idft_1d(h)
    gwr, gwi = _shifted_idft_1d(w)
    mr = np.kron(ghr, gwr) - np.kron(ghi, gwi)
    mi = np.kron(ghr, gwi) + np.kron(ghi, gwr)
    return mr.astype(np.float32), mi.astype(np.float32)


def tap_masks(h, w):
    # validity mask per 3x3 tap on the flattened H*W axis (zero padding at the borders).
    hh, ww = np.meshgrid(np.arange(h), np.arange(w), indexing="ij")
    hh = hh.reshape(-1)
    ww = ww.reshape(-1)
    rows = []
    for dy, dx in _OFFS:
        ok = (hh + dy >= 0) & (hh + dy < h) & (ww + dx >= 0) & (ww + dx < w)
        rows.append(ok.astype(np.float32))
    return np.stack(rows, axis=0)  # (9, H*W)


# --------------------- in-kernel helpers ---------------------
def _conv3x3(a_bf, masks, wmat, bias, width):
    """3x3 same-padding conv over coil-batched pixels as ONE im2col MXU matmul.

    a_bf:  (cin, N) bf16 activations, N = coils * H * W with each coil image contiguous.
    masks: (9, N) bf16 border-validity per tap (also zeroes rolls that cross a coil boundary).
    wmat:  (cout, 9*cin) bf16, column order = (tap, input-channel).  bias: (cout, 1) f32.
    """
    taps = []
    for t, (dy, dx) in enumerate(_OFFS):
        if dy == 0 and dx == 0:
            taps.append(a_bf)                                # center tap: offset 0, mask == 1
        else:
            off = dy * width + dx
            taps.append(jnp.roll(a_bf, -off, axis=1) * masks[t:t + 1, :])
    patches = jnp.concatenate(taps, axis=0)                  # (9*cin, N) bf16
    return jnp.dot(wmat, patches, preferred_element_type=F32) + bias


# --------------------- fused kernel ---------------------
def _sense_kernel(x_ref, mcat_ref, mask_ref, w1_ref, b1_ref, w2_ref, b2_ref, o_ref,
                  *, coils, width):
    C = coils
    HW = o_ref.shape[2]

    x = x_ref[0]                        # (2C, HW) bf16: rows [re c0..c_{C-1}, im c0..c_{C-1}]
    mcat = mcat_ref[...]                # (HW, 2HW) bf16: [Mr | Mi], shift-folded 2-D IDFT

    # ---- fastmri.ifft2c: all four real matmuls of the complex IDFT in ONE MXU weight push ----
    y4 = jnp.dot(x, mcat, preferred_element_type=F32)        # (2C, 2HW) f32
    yr = y4[:C, :HW] - y4[C:, HW:]                           # xr@Mr - xi@Mi
    yi = y4[:C, HW:] + y4[C:, :HW]                           # xr@Mi + xi@Mr
    y = jnp.concatenate([yr, yi], axis=0)                    # (2C, HW) f32

    # ---- NormNet.norm: per-(coil, real/imag) mean & unbiased std, one-pass sums ----
    s = jnp.sum(y, axis=1, keepdims=True)                    # (2C, 1)
    sq = jnp.sum(y * y, axis=1, keepdims=True)
    mean = s * (1.0 / HW)
    var = (sq - s * mean) * (1.0 / (HW - 1))
    inv_std = lax.rsqrt(var)
    std = var * inv_std                                      # sqrt(var)
    xn = (y - mean) * inv_std                                 # (2C, HW)

    # ---- coil-batched im2col layout: (2, C*HW), coil images concatenated along the lane axis ----
    a0 = jnp.concatenate(
        [jnp.concatenate([xn[c:c + 1, :] for c in range(C)], axis=1),
         jnp.concatenate([xn[C + c:C + c + 1, :] for c in range(C)], axis=1)],
        axis=0).astype(BF16)                                  # (2, C*HW)

    masks = mask_ref[...]
    # ---- ResXUNet stand-in: 3x3 conv (2->n1) + SiLU + 3x3 conv (n1->2), all coils per matmul ----
    # TODO(synk): ResXUNet source is not provided; replaced by a 2-layer 3x3 conv with SiLU
    # matching NormNet's (2 in, 2 out) contract. NormNet.pad/unpad are no-ops (H,W % 16 == 0).
    h1 = _conv3x3(a0, masks, w1_ref[...], b1_ref[...], width)                 # (n1, C*HW) f32
    h1 = h1 * jax.nn.sigmoid(h1)                                              # SiLU
    h2 = _conv3x3(h1.astype(BF16), masks, w2_ref[...], b2_ref[...], width)    # (2, C*HW) f32

    # ---- back to (2C, HW) rows, unnorm, divide_root_sum_of_squares (over coils & complex) ----
    out = jnp.concatenate(
        [h2[0:1, c * HW:(c + 1) * HW] for c in range(C)]
        + [h2[1:2, c * HW:(c + 1) * HW] for c in range(C)], axis=0)           # (2C, HW)
    out = out * std + mean
    inv_rss = lax.rsqrt(jnp.sum(out * out, axis=0, keepdims=True))
    o_ref[0] = out * inv_rss


# --------------------- parameters / wrapper ---------------------
def make_params(sense_n=12, key=None):
    k1, k2, k3, k4 = jax.random.split(key, 4)
    w1 = jax.random.normal(k1, (sense_n, 2, 3, 3), F32) * 0.1
    b1 = jax.random.normal(k2, (sense_n, 1, 1), F32) * 0.1
    w2 = jax.random.normal(k3, (2, sense_n, 3, 3), F32) * 0.1
    b2 = jax.random.normal(k4, (2, 1, 1), F32) * 0.1
    return w1, b1, w2, b2


def sensitivity_model_forward(masked_kspace, params):
    """mask=None path of SensitivityModel.forward; masked_kspace: (B, C, H, W, 2) float32."""
    # TODO(synk): the mask-center branch (torch.nonzero over the sampling mask) is
    # data-dependent-shaped and is not translated; the mask=None path is implemented.
    w1, b1, w2, b2 = params
    B, C, H, W, two = masked_kspace.shape
    assert two == 2
    assert H % 16 == 0 and W % 16 == 0, "NormNet.pad is a no-op only for 16-multiples"
    HW = H * W
    n1 = w1.shape[0]

    # TODO(synk): for W >= 128 (real fastMRI sizes) replace the kron (HW,HW) IDFT with a
    # separable per-axis IDFT (G_W then G_H) and single-buffer the grid-invariant operands
    # (pl.Buffered(1)); the kron matrix is O((HW)^2) and breaches v7x's 64 MiB VMEM first.
    assert HW <= 4096, "kron IDFT path is only meant for small calibration-sized inputs"

    # trace-time numpy constants: shift-folded IDFT matrix (real|imag fused along N) + tap masks
    mr_np, mi_np = shifted_idft2_matrix(H, W)
    mcat = jnp.asarray(np.concatenate([mr_np, mi_np], axis=1), BF16)       # (HW, 2*HW)
    masks = jnp.asarray(np.tile(tap_masks(H, W), (1, C)), BF16)            # (9, C*HW)

    # im2col weight matrices: column order = (tap, input-channel); bf16 MXU operands
    w1m = jnp.transpose(w1, (0, 2, 3, 1)).reshape(n1, 9 * 2).astype(BF16)
    w2m = jnp.transpose(w2, (0, 2, 3, 1)).reshape(2, 9 * n1).astype(BF16)
    b1v = b1.reshape(n1, 1)
    b2v = b2.reshape(2, 1)

    # lane-dense (2C, H*W) layout per batch: real rows then imag rows; bf16 MXU operands
    xr = masked_kspace[..., 0].reshape(B, C, HW)
    xi = masked_kspace[..., 1].reshape(B, C, HW)
    x_in = jnp.concatenate([xr, xi], axis=1).astype(BF16)                  # (B, 2C, HW)

    kernel = functools.partial(_sense_kernel, coils=C, width=W)
    const = lambda b: (0, 0)
    out = pl.pallas_call(
        kernel,
        out_shape=jax.ShapeDtypeStruct((B, 2 * C, HW), F32),
        grid=(B,),
        in_specs=[pl.BlockSpec((1, 2 * C, HW), lambda b: (b, 0, 0)),   # k-space [re; im]
                  pl.BlockSpec((HW, 2 * HW), const),                   # [Mr | Mi]
                  pl.BlockSpec((9, C * HW), const),                    # tiled tap masks
                  pl.BlockSpec((n1, 9 * 2), const),                    # w1m
                  pl.BlockSpec((n1, 1), const),                        # b1
                  pl.BlockSpec((2, 9 * n1), const),                    # w2m
                  pl.BlockSpec((2, 1), const)],                        # b2
        out_specs=pl.BlockSpec((1, 2 * C, HW), lambda b: (b, 0, 0)),
        compiler_params=pltpu.CompilerParams(dimension_semantics=("parallel",)),
    )(x_in, mcat, masks, w1m, b1v, w2m, b2v)

    # rows are [real c0..c_{C-1}, imag c0..c_{C-1}] -> (B, C, H, W, 2)
    out = out.reshape(B, 2, C, H, W)
    return jnp.transpose(out, (0, 2, 3, 4, 1))


# --------------------- pure-JAX reference (for validation) ---------------------
def reference_forward(masked_kspace, params):
    w1, b1, w2, b2 = params
    B, C, H, W, _ = masked_kspace.shape
    xc = masked_kspace[..., 0] + 1j * masked_kspace[..., 1]
    xc = jnp.fft.ifftshift(xc, axes=(-2, -1))
    xc = jnp.fft.ifft2(xc, axes=(-2, -1), norm="ortho")
    xc = jnp.fft.fftshift(xc, axes=(-2, -1))
    x = jnp.stack([xc.real, xc.imag], axis=2).reshape(B * C, 2, H, W).astype(F32)
    mean = x.mean(axis=(2, 3), keepdims=True)
    std = jnp.sqrt(((x - mean) ** 2).sum(axis=(2, 3), keepdims=True) / (H * W - 1))
    xn = (x - mean) / std
    h_mult = ((H - 1) | 15) + 1
    w_mult = ((W - 1) | 15) + 1
    w_pad = [math.floor((w_mult - W) / 2), math.ceil((w_mult - W) / 2)]
    h_pad = [math.floor((h_mult - H) / 2), math.ceil((h_mult - H) / 2)]
    xp = jnp.pad(xn, ((0, 0), (0, 0), (h_pad[0], h_pad[1]), (w_pad[0], w_pad[1])))
    dn = ("NCHW", "OIHW", "NCHW")
    h1 = lax.conv_general_dilated(xp, w1, (1, 1), "SAME", dimension_numbers=dn,
                                  precision=lax.Precision.HIGHEST) + b1[None]
    h1 = h1 * jax.nn.sigmoid(h1)
    h2 = lax.conv_general_dilated(h1, w2, (1, 1), "SAME", dimension_numbers=dn,
                                  precision=lax.Precision.HIGHEST) + b2[None]
    h2 = h2[..., h_pad[0]:h_mult - h_pad[1], w_pad[0]:w_mult - w_pad[1]]
    y = (h2 * std + mean).reshape(B, C, 2, H, W)
    rss = jnp.sqrt(jnp.sum(y * y, axis=(1, 2), keepdims=True))
    return (y / rss).transpose(0, 1, 3, 4, 2)


if __name__ == "__main__":
    B, C, H, W = 2, 4, 16, 16
    key = jax.random.PRNGKey(0)
    kk, kp = jax.random.split(key)
    masked_kspace = jax.random.normal(kk, (B, C, H, W, 2), F32)
    params = make_params(sense_n=12, key=kp)

    fwd = jax.jit(sensitivity_model_forward)
    out = jax.block_until_ready(fwd(masked_kspace, params))

    ref = reference_forward(masked_kspace, params)
    err = float(jnp.max(jnp.abs(out - ref)))
    assert out.shape == (B, C, H, W, 2), out.shape
    assert err < 5e-2, f"max abs error vs reference: {err}"
    print("KERNEL_OK")
</pallas_src>

<mosaic_0001>
module attributes {stable_mosaic.version = 11 : i64} {
  func.func @_sense_kernel(%arg0: i32, %arg1: memref<1x8x256xbf16, #tpu.memory_space<vmem>>, %arg2: memref<256x512xbf16, #tpu.memory_space<vmem>>, %arg3: memref<9x1024xbf16, #tpu.memory_space<vmem>>, %arg4: memref<12x18xbf16, #tpu.memory_space<vmem>>, %arg5: memref<12x1xf32, #tpu.memory_space<vmem>>, %arg6: memref<2x108xbf16, #tpu.memory_space<vmem>>, %arg7: memref<2x1xf32, #tpu.memory_space<vmem>>, %arg8: memref<1x8x256xf32, #tpu.memory_space<vmem>>) attributes {dimension_semantics = [#tpu.dimension_semantics<parallel>], iteration_bounds = array<i64: 2>, scalar_prefetch = 0 : i64, scratch_operands = 0 : i64, tpu.core_type = #tpu.core_type<tc>, window_params = [{transform_indices = @transform_0, window_bounds = array<i64: 1, 8, 256>}, {pipeline_mode = #tpu.pipeline_mode<synchronous>, transform_indices = @transform_1, window_bounds = array<i64: 256, 512>}, {pipeline_mode = #tpu.pipeline_mode<synchronous>, transform_indices = @transform_2, window_bounds = array<i64: 9, 1024>}, {pipeline_mode = #tpu.pipeline_mode<synchronous>, transform_indices = @transform_3, window_bounds = array<i64: 12, 18>}, {pipeline_mode = #tpu.pipeline_mode<synchronous>, transform_indices = @transform_4, window_bounds = array<i64: 12, 1>}, {pipeline_mode = #tpu.pipeline_mode<synchronous>, transform_indices = @transform_5, window_bounds = array<i64: 2, 108>}, {pipeline_mode = #tpu.pipeline_mode<synchronous>, transform_indices = @transform_6, window_bounds = array<i64: 2, 1>}, {transform_indices = @transform_7, window_bounds = array<i64: 1, 8, 256>}]} {
    %c0 = arith.constant 0 : index
    %c0_0 = arith.constant 0 : index
    %c0_1 = arith.constant 0 : index
    %0 = vector.load %arg1[%c0, %c0_0, %c0_1] : memref<1x8x256xbf16, #tpu.memory_space<vmem>>, vector<1x8x256xbf16>
    %1 = vector.shape_cast %0 : vector<1x8x256xbf16> to vector<8x256xbf16>
    %c0_2 = arith.constant 0 : index
    %c0_3 = arith.constant 0 : index
    %2 = vector.load %arg2[%c0_2, %c0_3] : memref<256x512xbf16, #tpu.memory_space<vmem>>, vector<256x512xbf16>
    %cst = arith.constant dense<0.000000e+00> : vector<8x512xf32>
    %3 = tpu.matmul %1, %2, %cst {dimension_numbers = #tpu.dot_dimension_numbers<[1], [0], [0], [1], [0, 0, 1, 1], [], []>} : vector<8x256xbf16>, vector<256x512xbf16>, vector<8x512xf32> -> vector<8x512xf32>
    %4 = vector.extract_strided_slice %3 {offsets = [0, 0], sizes = [4, 256], strides = [1, 1]} : vector<8x512xf32> to vector<4x256xf32>
    %5 = vector.extract_strided_slice %3 {offsets = [4, 256], sizes = [4, 256], strides = [1, 1]} : vector<8x512xf32> to vector<4x256xf32>
    %6 = arith.subf %4, %5 : vector<4x256xf32>
    %7 = vector.extract_strided_slice %3 {offsets = [0, 256], sizes = [4, 256], strides = [1, 1]} : vector<8x512xf32> to vector<4x256xf32>
    %8 = vector.extract_strided_slice %3 {offsets = [4, 0], sizes = [4, 256], strides = [1, 1]} : vector<8x512xf32> to vector<4x256xf32>
    %9 = arith.addf %7, %8 : vector<4x256xf32>
    %10 = tpu.concatenate %6, %9 in 0 : vector<4x256xf32>, vector<4x256xf32> -> vector<8x256xf32>
    %cst_4 = arith.constant dense<0.000000e+00> : vector<8xf32>
    %11 = vector.multi_reduction <add>, %10, %cst_4 [1] : vector<8x256xf32> to vector<8xf32>
    %12 = vector.shape_cast %11 : vector<8xf32> to vector<8x1xf32>
    %13 = arith.mulf %10, %10 : vector<8x256xf32>
    %cst_5 = arith.constant dense<0.000000e+00> : vector<8xf32>
    %14 = vector.multi_reduction <add>, %13, %cst_5 [1] : vector<8x256xf32> to vector<8xf32>
    %15 = vector.shape_cast %14 : vector<8xf32> to vector<8x1xf32>
    %cst_6 = arith.constant 3.906250e-03 : f32
    %16 = vector.broadcast %cst_6 : f32 to vector<8x1xf32>
    %17 = arith.mulf %12, %16 : vector<8x1xf32>
    %18 = arith.mulf %12, %17 : vector<8x1xf32>
    %19 = arith.subf %15, %18 : vector<8x1xf32>
    %cst_7 = arith.constant 0.00392156886 : f32
    %20 = vector.broadcast %cst_7 : f32 to vector<8x1xf32>
    %21 = arith.mulf %19, %20 : vector<8x1xf32>
    %22 = math.rsqrt %21 : vector<8x1xf32>
    %23 = arith.mulf %21, %22 : vector<8x1xf32>
    %24 = vector.broadcast %17 : vector<8x1xf32> to vector<8x256xf32>
    %25 = arith.subf %10, %24 : vector<8x256xf32>
    %26 = vector.broadcast %22 : vector<8x1xf32> to vector<8x256xf32>
    %27 = arith.mulf %25, %26 : vector<8x256xf32>
    %28 = vector.extract_strided_slice %27 {offsets = [0, 0], sizes = [1, 256], strides = [1, 1]} : vector<8x256xf32> to vector<1x256xf32>
    %29 = vector.extract_strided_slice %27 {offsets = [1, 0], sizes = [1, 256], strides = [1, 1]} : vector<8x256xf32> to vector<1x256xf32>
    %30 = vector.extract_strided_slice %27 {offsets = [2, 0], sizes = [1, 256], strides = [1, 1]} : vector<8x256xf32> to vector<1x256xf32>
    %31 = vector.extract_strided_slice %27 {offsets = [3, 0], sizes = [1, 256], strides = [1, 1]} : vector<8x256xf32> to vector<1x256xf32>
    %32 = tpu.concatenate %28, %29, %30, %31 in 1 : vector<1x256xf32>, vector<1x256xf32>, vector<1x256xf32>, vector<1x256xf32> -> vector<1x1024xf32>
    %33 = vector.extract_strided_slice %27 {offsets = [4, 0], sizes = [1, 256], strides = [1, 1]} : vector<8x256xf32> to vector<1x256xf32>
    %34 = vector.extract_strided_slice %27 {offsets = [5, 0], sizes = [1, 256], strides = [1, 1]} : vector<8x256xf32> to vector<1x256xf32>
    %35 = vector.extract_strided_slice %27 {offsets = [6, 0], sizes = [1, 256], strides = [1, 1]} : vector<8x256xf32> to vector<1x256xf32>
    %36 = vector.extract_strided_slice %27 {offsets = [7, 0], sizes = [1, 256], strides = [1, 1]} : vector<8x256xf32> to vector<1x256xf32>
    %37 = tpu.concatenate %33, %34, %35, %36 in 1 : vector<1x256xf32>, vector<1x256xf32>, vector<1x256xf32>, vector<1x256xf32> -> vector<1x1024xf32>
    %38 = tpu.concatenate %32, %37 in 0 : vector<1x1024xf32>, vector<1x1024xf32> -> vector<2x1024xf32>
    %39 = arith.truncf %38 : vector<2x1024xf32> to vector<2x1024xbf16>
    %c0_8 = arith.constant 0 : index
    %c0_9 = arith.constant 0 : index
    %40 = vector.load %arg3[%c0_8, %c0_9] : memref<9x1024xbf16, #tpu.memory_space<vmem>>, vector<9x1024xbf16>
    %c0_10 = arith.constant 0 : index
    %c0_11 = arith.constant 0 : index
    %41 = vector.load %arg4[%c0_10, %c0_11] : memref<12x18xbf16, #tpu.memory_space<vmem>>, vector<12x18xbf16>
    %c0_12 = arith.constant 0 : index
    %c0_13 = arith.constant 0 : index
    %42 = vector.load %arg5[%c0_12, %c0_13] : memref<12x1xf32, #tpu.memory_space<vmem>>, vector<12x1xf32>
    %43 = vector.extract_strided_slice %39 {offsets = [0, 1007], sizes = [2, 17], strides = [1, 1]} : vector<2x1024xbf16> to vector<2x17xbf16>
    %44 = vector.extract_strided_slice %39 {offsets = [0, 0], sizes = [2, 1007], strides = [1, 1]} : vector<2x1024xbf16> to vector<2x1007xbf16>
    %45 = tpu.concatenate %43, %44 in 1 : vector<2x17xbf16>, vector<2x1007xbf16> -> vector<2x1024xbf16>
    %46 = vector.extract_strided_slice %40 {offsets = [0, 0], sizes = [1, 1024], strides = [1, 1]} : vector<9x1024xbf16> to vector<1x1024xbf16>
    %47 = vector.broadcast %46 : vector<1x1024xbf16> to vector<2x1024xbf16>
    %48 = arith.mulf %45, %47 : vector<2x1024xbf16>
    %49 = vector.extract_strided_slice %39 {offsets = [0, 1008], sizes = [2, 16], strides = [1, 1]} : vector<2x1024xbf16> to vector<2x16xbf16>
    %50 = vector.extract_strided_slice %39 {offsets = [0, 0], sizes = [2, 1008], strides = [1, 1]} : vector<2x1024xbf16> to vector<2x1008xbf16>
    %51 = tpu.concatenate %49, %50 in 1 : vector<2x16xbf16>, vector<2x1008xbf16> -> vector<2x1024xbf16>
    %52 = vector.extract_strided_slice %40 {offsets = [1, 0], sizes = [1, 1024], strides = [1, 1]} : vector<9x1024xbf16> to vector<1x1024xbf16>
    %53 = vector.broadcast %52 : vector<1x1024xbf16> to vector<2x1024xbf16>
    %54 = arith.mulf %51, %53 : vector<2x1024xbf16>
    %55 = vector.extract_strided_slice %39 {offsets = [0, 1009], sizes = [2, 15], strides = [1, 1]} : vector<2x1024xbf16> to vector<2x15xbf16>
    %56 = vector.extract_strided_slice %39 {offsets = [0, 0], sizes = [2, 1009], strides = [1, 1]} : vector<2x1024xbf16> to vector<2x1009xbf16>
    %57 = tpu.concatenate %55, %56 in 1 : vector<2x15xbf16>, vector<2x1009xbf16> -> vector<2x1024xbf16>
    %58 = vector.extract_strided_slice %40 {offsets = [2, 0], sizes = [1, 1024], strides = [1, 1]} : vector<9x1024xbf16> to vector<1x1024xbf16>
    %59 = vector.broadcast %58 : vector<1x1024xbf16> to vector<2x1024xbf16>
    %60 = arith.mulf %57, %59 : vector<2x1024xbf16>
    %61 = vector.extract_strided_slice %39 {offsets = [0, 1023], sizes = [2, 1], strides = [1, 1]} : vector<2x1024xbf16> to vector<2x1xbf16>
    %62 = vector.extract_strided_slice %39 {offsets = [0, 0], sizes = [2, 1023], strides = [1, 1]} : vector<2x1024xbf16> to vector<2x1023xbf16>
    %63 = tpu.concatenate %61, %62 in 1 : vector<2x1xbf16>, vector<2x1023xbf16> -> vector<2x1024xbf16>
    %64 = vector.extract_strided_slice %40 {offsets = [3, 0], sizes = [1, 1024], strides = [1, 1]} : vector<9x1024xbf16> to vector<1x1024xbf16>
    %65 = vector.broadcast %64 : vector<1x1024xbf16> to vector<2x1024xbf16>
    %66 = arith.mulf %63, %65 : vector<2x1024xbf16>
    %67 = vector.extract_strided_slice %39 {offsets = [0, 1], sizes = [2, 1023], strides = [1, 1]} : vector<2x1024xbf16> to vector<2x1023xbf16>
    %68 = vector.extract_strided_slice %39 {offsets = [0, 0], sizes = [2, 1], strides = [1, 1]} : vector<2x1024xbf16> to vector<2x1xbf16>
    %69 = tpu.concatenate %67, %68 in 1 : vector<2x1023xbf16>, vector<2x1xbf16> -> vector<2x1024xbf16>
    %70 = vector.extract_strided_slice %40 {offsets = [5, 0], sizes = [1, 1024], strides = [1, 1]} : vector<9x1024xbf16> to vector<1x1024xbf16>
    %71 = vector.broadcast %70 : vector<1x1024xbf16> to vector<2x1024xbf16>
    %72 = arith.mulf %69, %71 : vector<2x1024xbf16>
    %73 = vector.extract_strided_slice %39 {offsets = [0, 15], sizes = [2, 1009], strides = [1, 1]} : vector<2x1024xbf16> to vector<2x1009xbf16>
    %74 = vector.extract_strided_slice %39 {offsets = [0, 0], sizes = [2, 15], strides = [1, 1]} : vector<2x1024xbf16> to vector<2x15xbf16>
    %75 = tpu.concatenate %73, %74 in 1 : vector<2x1009xbf16>, vector<2x15xbf16> -> vector<2x1024xbf16>
    %76 = vector.extract_strided_slice %40 {offsets = [6, 0], sizes = [1, 1024], strides = [1, 1]} : vector<9x1024xbf16> to vector<1x1024xbf16>
    %77 = vector.broadcast %76 : vector<1x1024xbf16> to vector<2x1024xbf16>
    %78 = arith.mulf %75, %77 : vector<2x1024xbf16>
    %79 = vector.extract_strided_slice %39 {offsets = [0, 16], sizes = [2, 1008], strides = [1, 1]} : vector<2x1024xbf16> to vector<2x1008xbf16>
    %80 = vector.extract_strided_slice %39 {offsets = [0, 0], sizes = [2, 16], strides = [1, 1]} : vector<2x1024xbf16> to vector<2x16xbf16>
    %81 = tpu.concatenate %79, %80 in 1 : vector<2x1008xbf16>, vector<2x16xbf16> -> vector<2x1024xbf16>
    %82 = vector.extract_strided_slice %40 {offsets = [7, 0], sizes = [1, 1024], strides = [1, 1]} : vector<9x1024xbf16> to vector<1x1024xbf16>
    %83 = vector.broadcast %82 : vector<1x1024xbf16> to vector<2x1024xbf16>
    %84 = arith.mulf %81, %83 : vector<2x1024xbf16>
    %85 = vector.extract_strided_slice %39 {offsets = [0, 17], sizes = [2, 1007], strides = [1, 1]} : vector<2x1024xbf16> to vector<2x1007xbf16>
    %86 = vector.extract_strided_slice %39 {offsets = [0, 0], sizes = [2, 17], strides = [1, 1]} : vector<2x1024xbf16> to vector<2x17xbf16>
    %87 = tpu.concatenate %85, %86 in 1 : vector<2x1007xbf16>, vector<2x17xbf16> -> vector<2x1024xbf16>
    %88 = vector.extract_strided_slice %40 {offsets = [8, 0], sizes = [1, 1024], strides = [1, 1]} : vector<9x1024xbf16> to vector<1x1024xbf16>
    %89 = vector.broadcast %88 : vector<1x1024xbf16> to vector<2x1024xbf16>
    %90 = arith.mulf %87, %89 : vector<2x1024xbf16>
    %91 = tpu.concatenate %48, %54, %60, %66, %39, %72, %78, %84, %90 in 0 : vector<2x1024xbf16>, vector<2x1024xbf16>, vector<2x1024xbf16>, vector<2x1024xbf16>, vector<2x1024xbf16>, vector<2x1024xbf16>, vector<2x1024xbf16>, vector<2x1024xbf16>, vector<2x1024xbf16> -> vector<18x1024xbf16>
    %cst_14 = arith.constant dense<0.000000e+00> : vector<12x1024xf32>
    %92 = tpu.matmul %41, %91, %cst_14 {dimension_numbers = #tpu.dot_dimension_numbers<[1], [0], [0], [1], [0, 0, 1, 1], [], []>} : vector<12x18xbf16>, vector<18x1024xbf16>, vector<12x1024xf32> -> vector<12x1024xf32>
    %93 = vector.broadcast %42 : vector<12x1xf32> to vector<12x1024xf32>
    %94 = arith.addf %92, %93 : vector<12x1024xf32>
    %95 = arith.negf %94 : vector<12x1024xf32>
    %96 = math.exp %95 : vector<12x1024xf32>
    %cst_15 = arith.constant 1.000000e+00 : f32
    %97 = vector.broadcast %cst_15 : f32 to vector<12x1024xf32>
    %98 = arith.addf %97, %96 : vector<12x1024xf32>
    %99 = arith.divf %97, %98 : vector<12x1024xf32>
    %100 = arith.mulf %94, %99 : vector<12x1024xf32>
    %101 = arith.truncf %100 : vector<12x1024xf32> to vector<12x1024xbf16>
    %c0_16 = arith.constant 0 : index
    %c0_17 = arith.constant 0 : index
    %102 = vector.load %arg6[%c0_16, %c0_17] : memref<2x108xbf16, #tpu.memory_space<vmem>>, vector<2x108xbf16>
    %c0_18 = arith.constant 0 : index
    %c0_19 = arith.constant 0 : index
    %103 = vector.load %arg7[%c0_18, %c0_19] : memref<2x1xf32, #tpu.memory_space<vmem>>, vector<2x1xf32>
    %104 = vector.extract_strided_slice %101 {offsets = [0, 1007], sizes = [12, 17], strides = [1, 1]} : vector<12x1024xbf16> to vector<12x17xbf16>
    %105 = vector.extract_strided_slice %101 {offsets = [0, 0], sizes = [12, 1007], strides = [1, 1]} : vector<12x1024xbf16> to vector<12x1007xbf16>
    %106 = tpu.concatenate %104, %105 in 1 : vector<12x17xbf16>, vector<12x1007xbf16> -> vector<12x1024xbf16>
    %107 = vector.extract_strided_slice %40 {offsets = [0, 0], sizes = [1, 1024], strides = [1, 1]} : vector<9x1024xbf16> to vector<1x1024xbf16>
    %108 = vector.broadcast %107 : vector<1x1024xbf16> to vector<12x1024xbf16>
    %109 = arith.mulf %106, %108 : vector<12x1024xbf16>
    %110 = vector.extract_strided_slice %101 {offsets = [0, 1008], sizes = [12, 16], strides = [1, 1]} : vector<12x1024xbf16> to vector<12x16xbf16>
    %111 = vector.extract_strided_slice %101 {offsets = [0, 0], sizes = [12, 1008], strides = [1, 1]} : vector<12x1024xbf16> to vector<12x1008xbf16>
    %112 = tpu.concatenate %110, %111 in 1 : vector<12x16xbf16>, vector<12x1008xbf16> -> vector<12x1024xbf16>
    %113 = vector.extract_strided_slice %40 {offsets = [1, 0], sizes = [1, 1024], strides = [1, 1]} : vector<9x1024xbf16> to vector<1x1024xbf16>
    %114 = vector.broadcast %113 : vector<1x1024xbf16> to vector<12x1024xbf16>
    %115 = arith.mulf %112, %114 : vector<12x1024xbf16>
    %116 = vector.extract_strided_slice %101 {offsets = [0, 1009], sizes = [12, 15], strides = [1, 1]} : vector<12x1024xbf16> to vector<12x15xbf16>
    %117 = vector.extract_strided_slice %101 {offsets = [0, 0], sizes = [12, 1009], strides = [1, 1]} : vector<12x1024xbf16> to vector<12x1009xbf16>
    %118 = tpu.concatenate %116, %117 in 1 : vector<12x15xbf16>, vector<12x1009xbf16> -> vector<12x1024xbf16>
    %119 = vector.extract_strided_slice %40 {offsets = [2, 0], sizes = [1, 1024], strides = [1, 1]} : vector<9x1024xbf16> to vector<1x1024xbf16>
    %120 = vector.broadcast %119 : vector<1x1024xbf16> to vector<12x1024xbf16>
    %121 = arith.mulf %118, %120 : vector<12x1024xbf16>
    %122 = vector.extract_strided_slice %101 {offsets = [0, 1023], sizes = [12, 1], strides = [1, 1]} : vector<12x1024xbf16> to vector<12x1xbf16>
    %123 = vector.extract_strided_slice %101 {offsets = [0, 0], sizes = [12, 1023], strides = [1, 1]} : vector<12x1024xbf16> to vector<12x1023xbf16>
    %124 = tpu.concatenate %122, %123 in 1 : vector<12x1xbf16>, vector<12x1023xbf16> -> vector<12x1024xbf16>
    %125 = vector.extract_strided_slice %40 {offsets = [3, 0], sizes = [1, 1024], strides = [1, 1]} : vector<9x1024xbf16> to vector<1x1024xbf16>
    %126 = vector.broadcast %125 : vector<1x1024xbf16> to vector<12x1024xbf16>
    %127 = arith.mulf %124, %126 : vector<12x1024xbf16>
    %128 = vector.extract_strided_slice %101 {offsets = [0, 1], sizes = [12, 1023], strides = [1, 1]} : vector<12x1024xbf16> to vector<12x1023xbf16>
    %129 = vector.extract_strided_slice %101 {offsets = [0, 0], sizes = [12, 1], strides = [1, 1]} : vector<12x1024xbf16> to vector<12x1xbf16>
    %130 = tpu.concatenate %128, %129 in 1 : vector<12x1023xbf16>, vector<12x1xbf16> -> vector<12x1024xbf16>
    %131 = vector.extract_strided_slice %40 {offsets = [5, 0], sizes = [1, 1024], strides = [1, 1]} : vector<9x1024xbf16> to vector<1x1024xbf16>
    %132 = vector.broadcast %131 : vector<1x1024xbf16> to vector<12x1024xbf16>
    %133 = arith.mulf %130, %132 : vector<12x1024xbf16>
    %134 = vector.extract_strided_slice %101 {offsets = [0, 15], sizes = [12, 1009], strides = [1, 1]} : vector<12x1024xbf16> to vector<12x1009xbf16>
    %135 = vector.extract_strided_slice %101 {offsets = [0, 0], sizes = [12, 15], strides = [1, 1]} : vector<12x1024xbf16> to vector<12x15xbf16>
    %136 = tpu.concatenate %134, %135 in 1 : vector<12x1009xbf16>, vector<12x15xbf16> -> vector<12x1024xbf16>
    %137 = vector.extract_strided_slice %40 {offsets = [6, 0], sizes = [1, 1024], strides = [1, 1]} : vector<9x1024xbf16> to vector<1x1024xbf16>
    %138 = vector.broadcast %137 : vector<1x1024xbf16> to vector<12x1024xbf16>
    %139 = arith.mulf %136, %138 : vector<12x1024xbf16>
    %140 = vector.extract_strided_slice %101 {offsets = [0, 16], sizes = [12, 1008], strides = [1, 1]} : vector<12x1024xbf16> to vector<12x1008xbf16>
    %141 = vector.extract_strided_slice %101 {offsets = [0, 0], sizes = [12, 16], strides = [1, 1]} : vector<12x1024xbf16> to vector<12x16xbf16>
    %142 = tpu.concatenate %140, %141 in 1 : vector<12x1008xbf16>, vector<12x16xbf16> -> vector<12x1024xbf16>
    %143 = vector.extract_strided_slice %40 {offsets = [7, 0], sizes = [1, 1024], strides = [1, 1]} : vector<9x1024xbf16> to vector<1x1024xbf16>
    %144 = vector.broadcast %143 : vector<1x1024xbf16> to vector<12x1024xbf16>
    %145 = arith.mulf %142, %144 : vector<12x1024xbf16>
    %146 = vector.extract_strided_slice %101 {offsets = [0, 17], sizes = [12, 1007], strides = [1, 1]} : vector<12x1024xbf16> to vector<12x1007xbf16>
    %147 = vector.extract_strided_slice %101 {offsets = [0, 0], sizes = [12, 17], strides = [1, 1]} : vector<12x1024xbf16> to vector<12x17xbf16>
    %148 = tpu.concatenate %146, %147 in 1 : vector<12x1007xbf16>, vector<12x17xbf16> -> vector<12x1024xbf16>
    %149 = vector.extract_strided_slice %40 {offsets = [8, 0], sizes = [1, 1024], strides = [1, 1]} : vector<9x1024xbf16> to vector<1x1024xbf16>
    %150 = vector.broadcast %149 : vector<1x1024xbf16> to vector<12x1024xbf16>
    %151 = arith.mulf %148, %150 : vector<12x1024xbf16>
    %152 = tpu.concatenate %109, %115, %121, %127, %101, %133, %139, %145, %151 in 0 : vector<12x1024xbf16>, vector<12x1024xbf16>, vector<12x1024xbf16>, vector<12x1024xbf16>, vector<12x1024xbf16>, vector<12x1024xbf16>, vector<12x1024xbf16>, vector<12x1024xbf16>, vector<12x1024xbf16> -> vector<108x1024xbf16>
    %cst_20 = arith.constant dense<0.000000e+00> : vector<2x1024xf32>
    %153 = tpu.matmul %102, %152, %cst_20 {dimension_numbers = #tpu.dot_dimension_numbers<[1], [0], [0], [1], [0, 0, 1, 1], [], []>} : vector<2x108xbf16>, vector<108x1024xbf16>, vector<2x1024xf32> -> vector<2x1024xf32>
    %154 = vector.broadcast %103 : vector<2x1xf32> to vector<2x1024xf32>
    %155 = arith.addf %153, %154 : vector<2x1024xf32>
    %156 = vector.extract_strided_slice %155 {offsets = [0, 0], sizes = [1, 256], strides = [1, 1]} : vector<2x1024xf32> to vector<1x256xf32>
    %157 = vector.extract_strided_slice %155 {offsets = [0, 256], sizes = [1, 256], strides = [1, 1]} : vector<2x1024xf32> to vector<1x256xf32>
    %158 = vector.extract_strided_slice %155 {offsets = [0, 512], sizes = [1, 256], strides = [1, 1]} : vector<2x1024xf32> to vector<1x256xf32>
    %159 = vector.extract_strided_slice %155 {offsets = [0, 768], sizes = [1, 256], strides = [1, 1]} : vector<2x1024xf32> to vector<1x256xf32>
    %160 = vector.extract_strided_slice %155 {offsets = [1, 0], sizes = [1, 256], strides = [1, 1]} : vector<2x1024xf32> to vector<1x256xf32>
    %161 = vector.extract_strided_slice %155 {offsets = [1, 256], sizes = [1, 256], strides = [1, 1]} : vector<2x1024xf32> to vector<1x256xf32>
    %162 = vector.extract_strided_slice %155 {offsets = [1, 512], sizes = [1, 256], strides = [1, 1]} : vector<2x1024xf32> to vector<1x256xf32>
    %163 = vector.extract_strided_slice %155 {offsets = [1, 768], sizes = [1, 256], strides = [1, 1]} : vector<2x1024xf32> to vector<1x256xf32>
    %164 = tpu.concatenate %156, %157, %158, %159, %160, %161, %162, %163 in 0 : vector<1x256xf32>, vector<1x256xf32>, vector<1x256xf32>, vector<1x256xf32>, vector<1x256xf32>, vector<1x256xf32>, vector<1x256xf32>, vector<1x256xf32> -> vector<8x256xf32>
    %165 = vector.broadcast %23 : vector<8x1xf32> to vector<8x256xf32>
    %166 = arith.mulf %164, %165 : vector<8x256xf32>
    %167 = vector.broadcast %17 : vector<8x1xf32> to vector<8x256xf32>
    %168 = arith.addf %166, %167 : vector<8x256xf32>
    %169 = arith.mulf %168, %168 : vector<8x256xf32>
    %cst_21 = arith.constant dense<0.000000e+00> : vector<256xf32>
    %170 = vector.multi_reduction <add>, %169, %cst_21 [0] : vector<8x256xf32> to vector<256xf32>
    %171 = vector.shape_cast %170 : vector<256xf32> to vector<1x256xf32>
    %172 = math.rsqrt %171 : vector<1x256xf32>
    %173 = vector.broadcast %172 : vector<1x256xf32> to vector<8x256xf32>
    %174 = arith.mulf %168, %173 : vector<8x256xf32>
    %c0_22 = arith.constant 0 : index
    %c0_23 = arith.constant 0 : index
    %c0_24 = arith.constant 0 : index
    %175 = vector.load %arg8[%c0_22, %c0_23, %c0_24] : memref<1x8x256xf32, #tpu.memory_space<vmem>>, vector<1x8x256xf32>
    %176 = vector.shape_cast %175 : vector<1x8x256xf32> to vector<8x256xf32>
    %177 = vector.shape_cast %174 : vector<8x256xf32> to vector<1x8x256xf32>
    tpu.vector_store %arg8[%c0_22, %c0_23, %c0_24], %177 {strides = array<i32>} : memref<1x8x256xf32, #tpu.memory_space<vmem>>, vector<1x8x256xf32>,
    return
  }
  func.func @transform_0(%arg0: i32) -> (i32, i32, i32) {
    %c0_i32 = arith.constant 0 : i32
    %c0_i32_0 = arith.constant 0 : i32
    %c0_i32_1 = arith.constant 0 : i32
    return %arg0, %c0_i32, %c0_i32_0 : i32, i32, i32
  }
  func.func @transform_1(%arg0: i32) -> (i32, i32) {
    %c0_i32 = arith.constant 0 : i32
    %c0_i32_0 = arith.constant 0 : i32
    %c0_i32_1 = arith.constant 0 : i32
    return %c0_i32, %c0_i32_0 : i32, i32
  }
  func.func @transform_2(%arg0: i32) -> (i32, i32) {
    %c0_i32 = arith.constant 0 : i32
    %c0_i32_0 = arith.constant 0 : i32
    %c0_i32_1 = arith.constant 0 : i32
    return %c0_i32, %c0_i32_0 : i32, i32
  }
  func.func @transform_3(%arg0: i32) -> (i32, i32) {
    %c0_i32 = arith.constant 0 : i32
    %c0_i32_0 = arith.constant 0 : i32
    %c0_i32_1 = arith.constant 0 : i32
    return %c0_i32, %c0_i32_0 : i32, i32
  }
  func.func @transform_4(%arg0: i32) -> (i32, i32) {
    %c0_i32 = arith.constant 0 : i32
    %c0_i32_0 = arith.constant 0 : i32
    %c0_i32_1 = arith.constant 0 : i32
    return %c0_i32, %c0_i32_0 : i32, i32
  }
  func.func @transform_5(%arg0: i32) -> (i32, i32) {
    %c0_i32 = arith.constant 0 : i32
    %c0_i32_0 = arith.constant 0 : i32
    %c0_i32_1 = arith.constant 0 : i32
    return %c0_i32, %c0_i32_0 : i32, i32
  }
  func.func @transform_6(%arg0: i32) -> (i32, i32) {
    %c0_i32 = arith.constant 0 : i32
    %c0_i32_0 = arith.constant 0 : i32
    %c0_i32_1 = arith.constant 0 : i32
    return %c0_i32, %c0_i32_0 : i32, i32
  }
  func.func @transform_7(%arg0: i32) -> (i32, i32, i32) {
    %c0_i32 = arith.constant 0 : i32
    %c0_i32_0 = arith.constant 0 : i32
    %c0_i32_1 = arith.constant 0 : i32
    return %arg0, %c0_i32, %c0_i32_0 : i32, i32, i32
  }
}

</mosaic_0001>

<bundles_post_ra>
// kernel: squeeze.1
= control target key start
LH: loop header
LB: loop body
LE: loop exit
PB: predicated region body
PF: predicated region fallthrough
CT: control target
= control target key end

     0   :  { %s772_s18 = smov 3  ;;  %s782_s23 = smov 48  ;;  %vm290_vm0 = vcmask 1043458   ;;  %vm295_vm1 = vcmask 1045508   ;;  %vm300_vm2 = vcmask 1047558   ;;  %vm259_vm3 = vcmask 1047556   ;;  %s866_s0 = inlined_call_operand.vmem [shape: bf16[2,4,16,16], index: 0, kind: input, shape index: {}]   ;;  %s867_s1 = inlined_call_operand.vmem [shape: bf16[2,4,256], index: 1, kind: output, shape index: {}]  }
   0x1   :  { %v721_v0 = vld [vmem:[%s866_s0 + $0x38] sm:$0xff]   ;;  %v722_v1 = vld [vmem:[%s866_s0 + $0x30] sm:$0xff]   ;;  %v723_v2 = vld [vmem:[%s866_s0 + $0x28] sm:$0xff]   ;;  %s784_s24 = smov 192  ;;  %s786_s25 = smov 3  ;;  %vm261_vm4 = vcmask 130048  }
   0x2   :  { %v691_v3 = vunpack.c.l.bf16 %v721_v0  ;;  %v695_v4 = vunpack.c.l.bf16 %v722_v1  ;;  %v699_v5 = vunpack.c.l.bf16 %v723_v2  ;;  %v724_v6 = vld [vmem:[%s866_s0 + $0x20] sm:$0xff]   ;;  %v725_v7 = vld [vmem:[%s866_s0 + $0x18] sm:$0xff]   ;;  %v726_v8 = vld [vmem:[%s866_s0 + $0x10] sm:$0xff]   ;;  %v692_v9 = vunpack.c.h.bf16 %v721_v0  ;;  %s788_s26 = smov 12  ;;  %s790_s27 = smov 48 }
   0x3   :  { %v703_v10 = vunpack.c.l.bf16 %v724_v6  ;;  %v707_v11 = vunpack.c.l.bf16 %v725_v7  ;;  %v708_v12 = vunpack.c.h.bf16 %v725_v7  ;;  %v711_v13 = vunpack.c.l.bf16 %v726_v8  ;;  %v727_v14 = vld [vmem:[%s866_s0 + $0x8] sm:$0xff]   ;;  %v718_v15 = vld [vmem:[%s866_s0] sm:$0xff]   ;;  %s780_s0 = smov 12  ;;  %s792_s28 = smov 192 }
   0x4   :  { %36 = vst [vmem:[#allocation1 + $0x70] sm:$0xff] %v691_v3  ;;  %68 = vst [vmem:[#allocation1 + $0x60] sm:$0xff] %v695_v4  ;;  %v712_v16 = vunpack.c.h.bf16 %v726_v8  ;;  %v715_v17 = vunpack.c.l.bf16 %v727_v14  ;;  %v716_v18 = vunpack.c.h.bf16 %v727_v14  ;;  %v719_v19 = vunpack.c.l.bf16 %v718_v15  ;;  %s358_s29 = smov 3  ;;  %s361_s30 = smov 12 }
   0x5   :  { %100 = vst [vmem:[#allocation1 + $0x50] sm:$0xff] %v699_v5  ;;  %20 = vst [vmem:[#allocation1 + $0x78] sm:$0xff] %v692_v9  ;;  %v720_v20 = vunpack.c.h.bf16 %v718_v15  ;;  %v696_v21 = vunpack.c.h.bf16 %v722_v1  ;;  %v700_v22 = vunpack.c.h.bf16 %v723_v2  ;;  %v704_v23 = vunpack.c.h.bf16 %v724_v6  ;;  %s366_s2 = smov 48  ;;  %s371_s3 = smov 192 }
   0x6   :  { %132 = vst [vmem:[#allocation1 + $0x40] sm:$0xff] %v703_v10  ;;  %148 = vst [vmem:[#allocation1 + $0x38] sm:$0xff] %v708_v12  ;;  %s309_s4 = smov 3  ;;  %s312_s5 = smov 12  ;;  %vm304_vm5 = vcmask 1048448   ;;  %vm353_vm6 = vcmask 917248  }
   0x7   :  { %164 = vst [vmem:[#allocation1 + $0x30] sm:$0xff] %v707_v11  ;;  %196 = vst [vmem:[#allocation1 + $0x20] sm:$0xff] %v711_v13  ;;  %s317_s6 = smov 48  ;;  %s322_s7 = smov 192  ;;  %vm402_vm7 = vcmask 786048   ;;  %vm451_vm8 = vcmask 654848  }
   0x8   :  { %180 = vst [vmem:[#allocation1 + $0x28] sm:$0xff] %v712_v16  ;;  %212 = vst [vmem:[#allocation1 + $0x18] sm:$0xff] %v716_v18  ;;  %s407_s8 = smov 3  ;;  %s736_s9 = smov 96   ;;  %vm500_vm9 = vcmask 523648   ;;  %vm549_vm10 = vcmask 392448  }
   0x9   :  { %228 = vst [vmem:[#allocation1 + $0x10] sm:$0xff] %v715_v17  ;;  %256 = vst [vmem:[#allocation1] sm:$0xff] %v719_v19  ;;  %s410_s10 = smov 12  ;;  %s415_s11 = smov 48  ;;  %vm598_vm11 = vcmask 261248  }
   0xa   :  { %243 = vst [vmem:[#allocation1 + $0x8] sm:$0xff] %v720_v20  ;;  %52 = vst [vmem:[#allocation1 + $0x68] sm:$0xff] %v696_v21  ;;  %s737_s12 = smov 112   ;;  %s420_s13 = smov 192 }
   0xb   :  { %84 = vst [vmem:[#allocation1 + $0x58] sm:$0xff] %v700_v22  ;;  %116 = vst [vmem:[#allocation1 + $0x48] sm:$0xff] %v704_v23  ;;  %s383_s14 = smov 3  ;;  %s386_s15 = smov 12 }
   0xc   :  { %s391_s16 = smov 48  ;;  %s396_s17 = smov 192 }
   0xd   :  { %v359_v24 = vld [vmem:[#allocation1 + $0x46] ss:$16 sm:%s358_s29]   ;;  %v310_v26 = vld [vmem:[#allocation1 + $0x47] ss:$16 sm:%s309_s4]   ;;  %v408_v49 = vld [vmem:[#allocation1 + $0x45] ss:$16 sm:%s407_s8]  }
   0xe   :  { %v362_v25 = vld [vmem:[#allocation1 + $0x46] ss:$16 sm:%s361_s30]   ;;  %v313_v44 = vld [vmem:[#allocation1 + $0x47] ss:$16 sm:%s312_s5]   ;;  %v411_v52 = vld [vmem:[#allocation1 + $0x45] ss:$16 sm:%s410_s10]  }
   0xf   :  { %v364_v30 = vsel %vm290_vm0, %v362_v25, %v359_v24  ;;  %v315_v47 = vsel %vm290_vm0, %v313_v44, %v310_v26  ;;  %v413_v55 = vsel %vm290_vm0, %v411_v52, %v408_v49  ;;  %s459_s19 = smov 12  ;;  %s464_s20 = smov 48 }
  0x10   :  { %v335_v27 = vld [vmem:[#allocation1 + $0x6] ss:$16 sm:%s772_s18]   ;;  %v286_v29 = vld [vmem:[#allocation1 + $0x7] ss:$16 sm:%s786_s25]   ;;  %v384_v57 = vld [vmem:[#allocation1 + $0x5] ss:$16 sm:%s383_s14]  }
  0x11   :  { %v338_v28 = vld [vmem:[#allocation1 + $0x6] ss:$16 sm:%s780_s0]   ;;  %v343_v32 = vld [vmem:[#allocation1 - $0x32] ss:$16 sm:%s782_s23]   ;;  %v289_v34 = vld [vmem:[#allocation1 + $0x7] ss:$16 sm:%s788_s26]  }
  0x12   :  { %v340_v31 = vsel %vm290_vm0, %v338_v28, %v335_v27  ;;  %v348_v33 = vld [vmem:[#allocation1 - $0x32] ss:$16 sm:%s784_s24]   ;;  %v291_v36 = vsel %vm290_vm0, %v289_v34, %v286_v29  ;;  %v294_v37 = vld [vmem:[#allocation1 - $0x31] ss:$16 sm:%s790_s27]   ;;  %v416_v53 = vld [vmem:[#allocation1 + $0xd] ss:$16 sm:%s415_s11]  }
  0x13   :  { %v345_v35 = vsel %vm295_vm1, %v343_v32, %v340_v31  ;;  %v299_v38 = vld [vmem:[#allocation1 - $0x31] ss:$16 sm:%s792_s28]   ;;  %v367_v39 = vld [vmem:[#allocation1 + $0xe] ss:$16 sm:%s366_s2]   ;;  %v296_v41 = vsel %vm295_vm1, %v294_v37, %v291_v36  ;;  %v421_v56 = vld [vmem:[#allocation1 + $0xd] ss:$16 sm:%s420_s13]   ;;  %v418_v58 = vsel %vm295_vm1, %v416_v53, %v413_v55 }
  0x14   :  { %v350_v40 = vsel %vm300_vm2, %v348_v33, %v345_v35  ;;  %v369_v42 = vsel %vm295_vm1, %v367_v39, %v364_v30  ;;  %v372_v43 = vld [vmem:[#allocation1 + $0xe] ss:$16 sm:%s371_s3]   ;;  %v318_v45 = vld [vmem:[#allocation1 + $0xf] ss:$16 sm:%s317_s6]   ;;  %v301_v46 = vsel %vm300_vm2, %v299_v38, %v296_v41  ;;  %v387_v59 = vld [vmem:[#allocation1 + $0x5] ss:$16 sm:%s386_s15]   ;;  %v423_v63 = vsel %vm300_vm2, %v421_v56, %v418_v58 }
  0x15   :  { %351 = vrot.lane.b32.xlu1 %v350_v40, %s736_s9  ;;  %v323_v48 = vld [vmem:[#allocation1 + $0xf] ss:$16 sm:%s322_s7]   ;;  %302 = vrot.lane.b32.xlu0 %v301_v46, %s737_s12  ;;  %v374_v50 = vsel %vm300_vm2, %v372_v43, %v369_v42  ;;  %v320_v51 = vsel %vm295_vm1, %v318_v45, %v315_v47  ;;  %v392_v60 = vld [vmem:[#allocation1 - $0x33] ss:$16 sm:%s391_s16]   ;;  %v389_v61 = vsel %vm290_vm0, %v387_v59, %v384_v57  ;;  %s456_s18 = smov 3  ;;  %s469_s21 = smov 192 }
  0x16   :  { %v325_v54 = vsel %vm300_vm2, %v323_v48, %v320_v51  ;;  %v397_v62 = vld [vmem:[#allocation1 - $0x33] ss:$16 sm:%s396_s17]   ;;  %v394_v0 = vsel %vm295_vm1, %v392_v60, %v389_v61  ;;  %v457_v1 = vld [vmem:[#allocation1 + $0x44] ss:$16 sm:%s456_s18]   ;;  %v465_v5 = vld [vmem:[#allocation1 + $0xc] ss:$16 sm:%s464_s20]  }
  0x17   :  { %v460_v2 = vld [vmem:[#allocation1 + $0x44] ss:$16 sm:%s459_s19]   ;;  %v399_v3 = vsel %vm300_vm2, %v397_v62, %v394_v0  ;;  %v470_v6 = vld [vmem:[#allocation1 + $0xc] ss:$16 sm:%s469_s21]   ;;  %s432_s22 = smov 3  ;;  %s435_s0 = smov 12 }
  0x18   :  { %v462_v4 = vsel %vm290_vm0, %v460_v2, %v457_v1  ;;  %v433_v8 = vld [vmem:[#allocation1 + $0x4] ss:$16 sm:%s432_s22]   ;;  %s440_s23 = smov 48  ;;  %s445_s24 = smov 192 }
  0x19   :  { %375 = vrot.lane.b32.xlu1 %v374_v50, %s736_s9  ;;  %326 = vrot.lane.b32.xlu0 %v325_v54, %s737_s12  ;;  %v467_v7 = vsel %vm295_vm1, %v465_v5, %v462_v4  ;;  %v436_v9 = vld [vmem:[#allocation1 + $0x4] ss:$16 sm:%s435_s0]   ;;  %s738_s25 = smov 80   ;;  %v441_v11 = vld [vmem:[#allocation1 - $0x34] ss:$16 sm:%s440_s23]   ;;  %s505_s26 = smov 3 }
  0x1a   :  { %v438_v10 = vsel %vm290_vm0, %v436_v9, %v433_v8  ;;  %v446_v12 = vld [vmem:[#allocation1 - $0x34] ss:$16 sm:%s445_s24]   ;;  %v472_v13 = vsel %vm300_vm2, %v470_v6, %v467_v7  ;;  %v506_v15 = vld [vmem:[#allocation1 + $0x43] ss:$16 sm:%s505_s26]   ;;  %s508_s27 = smov 12  ;;  %s513_s28 = smov 48 }
  0x1b   :  { %v443_v14 = vsel %vm295_vm1, %v441_v11, %v438_v10  ;;  %v509_v17 = vld [vmem:[#allocation1 + $0x43] ss:$16 sm:%s508_s27]   ;;  %v514_v18 = vld [vmem:[#allocation1 + $0xb] ss:$16 sm:%s513_s28]   ;;  %s518_s29 = smov 192  ;;  %s481_s30 = smov 3 }
  0x1c   :  { %v448_v16 = vsel %vm300_vm2, %v446_v12, %v443_v14  ;;  %v511_v19 = vsel %vm290_vm0, %v509_v17, %v506_v15  ;;  %v519_v20 = vld [vmem:[#allocation1 + $0xb] ss:$16 sm:%s518_s29]   ;;  %v482_v21 = vld [vmem:[#allocation1 + $0x3] ss:$16 sm:%s481_s30]   ;;  %s484_s2 = smov 12  ;;  %s489_s3 = smov 48 }
  0x1d   :  { %424 = vrot.lane.b32.xlu1 %v423_v63, %s738_s25  ;;  %400 = vrot.lane.b32.xlu0 %v399_v3, %s738_s25  ;;  %s739_s4 = smov 64   ;;  %v516_v22 = vsel %vm295_vm1, %v514_v18, %v511_v19  ;;  %v485_v23 = vld [vmem:[#allocation1 + $0x3] ss:$16 sm:%s484_s2]   ;;  %v490_v24 = vld [vmem:[#allocation1 - $0x35] ss:$16 sm:%s489_s3]   ;;  %s494_s5 = smov 192 }
  0x1e   :  { %v521_v25 = vsel %vm300_vm2, %v519_v20, %v516_v22  ;;  %v487_v26 = vsel %vm290_vm0, %v485_v23, %v482_v21  ;;  %v495_v27 = vld [vmem:[#allocation1 - $0x35] ss:$16 sm:%s494_s5]   ;;  %s554_s6 = smov 3  ;;  %s557_s7 = smov 12 }
  0x1f   :  { %v492_v28 = vsel %vm295_vm1, %v490_v24, %v487_v26  ;;  %v555_v29 = vld [vmem:[#allocation1 + $0x42] ss:$16 sm:%s554_s6]   ;;  %s562_s8 = smov 48  ;;  %s567_s9 = smov 192 }
  0x20   :  { %v558_v30 = vld [vmem:[#allocation1 + $0x42] ss:$16 sm:%s557_s7]   ;;  %v497_v31 = vsel %vm300_vm2, %v495_v27, %v492_v28  ;;  %v563_v33 = vld [vmem:[#allocation1 + $0xa] ss:$16 sm:%s562_s8]   ;;  %s530_s10 = smov 3  ;;  %s533_s11 = smov 12 }
  0x21   :  { %473 = vrot.lane.b32.xlu1 %v472_v13, %s739_s4  ;;  %449 = vrot.lane.b32.xlu0 %v448_v16, %s739_s4  ;;  %v560_v32 = vsel %vm290_vm0, %v558_v30, %v555_v29  ;;  %v568_v34 = vld [vmem:[#allocation1 + $0xa] ss:$16 sm:%s567_s9]   ;;  %s740_s12 = smov 48   ;;  %v531_v36 = vld [vmem:[#allocation1 + $0x2] ss:$16 sm:%s530_s10]   ;;  %s538_s13 = smov 48 }
  0x22   :  { %v565_v35 = vsel %vm295_vm1, %v563_v33, %v560_v32  ;;  %v534_v37 = vld [vmem:[#allocation1 + $0x2] ss:$16 sm:%s533_s11]   ;;  %s543_s14 = smov 192  ;;  %v539_v40 = vld [vmem:[#allocation1 - $0x36] ss:$16 sm:%s538_s13]   ;;  %s603_s15 = smov 3 }
  0x23   :  { %v570_v38 = vsel %vm300_vm2, %v568_v34, %v565_v35  ;;  %v536_v39 = vsel %vm290_vm0, %v534_v37, %v531_v36  ;;  %v544_v41 = vld [vmem:[#allocation1 - $0x36] ss:$16 sm:%s543_s14]   ;;  %v604_v43 = vld [vmem:[#allocation1 + $0x41] ss:$16 sm:%s603_s15]   ;;  %s606_s16 = smov 12  ;;  %s611_s17 = smov 48 }
  0x24   :  { %v541_v42 = vsel %vm295_vm1, %v539_v40, %v536_v39  ;;  %v607_v45 = vld [vmem:[#allocation1 + $0x41] ss:$16 sm:%s606_s16]   ;;  %v612_v46 = vld [vmem:[#allocation1 + $0x9] ss:$16 sm:%s611_s17]   ;;  %s616_s18 = smov 192  ;;  %s579_s19 = smov 3 }
  0x25   :  { %522 = vrot.lane.b32.xlu1 %v521_v25, %s740_s12  ;;  %498 = vrot.lane.b32.xlu0 %v497_v31, %s740_s12  ;;  %v546_v44 = vsel %vm300_vm2, %v544_v41, %v541_v42  ;;  %s741_s20 = smov 32   ;;  %v609_v47 = vsel %vm290_vm0, %v607_v45, %v604_v43  ;;  %v617_v48 = vld [vmem:[#allocation1 + $0x9] ss:$16 sm:%s616_s18]   ;;  %v580_v49 = vld [vmem:[#allocation1 + $0x1] ss:$16 sm:%s579_s19]   ;;  %s582_s21 = smov 12 }
  0x26   :  { %s587_s22 = smov 48  ;;  %v614_v50 = vsel %vm295_vm1, %v612_v46, %v609_v47  ;;  %v583_v51 = vld [vmem:[#allocation1 + $0x1] ss:$16 sm:%s582_s21]   ;;  %s592_s0 = smov 192  ;;  %v743_v16 = vmov 0.0  }
  0x27   :  { %v588_v52 = vld [vmem:[#allocation1 - $0x37] ss:$16 sm:%s587_s22]   ;;  %v619_v53 = vsel %vm300_vm2, %v617_v48, %v614_v50  ;;  %v585_v54 = vsel %vm290_vm0, %v583_v51, %v580_v49  ;;  %v257_v56 = vld [vmem:[#allocation1] ss:$8 sm:$0xf]   ;;  %s742_s23 = smov 16  }
  0x28   :  { %v593_v55 = vld [vmem:[#allocation1 - $0x37] ss:$16 sm:%s592_s0]   ;;  %v590_v57 = vsel %vm295_vm1, %v588_v52, %v585_v54  ;;  %v258_v58 = vld [vmem:[#allocation1] ss:$8 sm:$0xf0]  }
  0x29   :  { %571 = vrot.lane.b32.xlu1 %v570_v38, %s741_s20  ;;  %547 = vrot.lane.b32.xlu0 %v546_v44, %s741_s20  ;;  %v270_v59 = vld [vmem:[#allocation1 + $0x40] ss:$8 sm:$0xf]   ;;  %v595_v60 = vsel %vm300_vm2, %v593_v55, %v590_v57  ;;  %v260_v61 = vsel %vm259_vm3, %v258_v58, %v257_v56 }
  0x2a   :  { %v272_v62 = vld [vmem:[#allocation1 + $0x40] ss:$8 sm:$0xf0]   ;;  %262 = vst.msk [vmem:[#allocation0] ss:$8 sm:$0x3] %vm261_vm4, %v260_v61  }
  0x2b   :  { %264 = vst.msk [vmem:[#allocation0 - $0xf] ss:$8 sm:$0xc] %vm261_vm4, %v260_v61   ;;  %266 = vst.msk [vmem:[#allocation0 - $0x1e] ss:$8 sm:$0x30] %vm261_vm4, %v260_v61   ;;  %v274_v63 = vsel %vm259_vm3, %v272_v62, %v270_v59 }
  0x2c   :  { %268 = vst.msk [vmem:[#allocation0 - $0x2d] ss:$8 sm:$0xc0] %vm261_vm4, %v260_v61   ;;  %277 = vst.msk [vmem:[#allocation0 + $0x10] ss:$8 sm:$0x3] %vm261_vm4, %v274_v63  }
  0x2d   :  { %620 = vrot.lane.b32.xlu1 %v619_v53, %s742_s23  ;;  %596 = vrot.lane.b32.xlu0 %v595_v60, %s742_s23  ;;  %279 = vst.msk [vmem:[#allocation0 + $0x1] ss:$8 sm:$0xc] %vm261_vm4, %v274_v63   ;;  %281 = vst.msk [vmem:[#allocation0 - $0xe] ss:$8 sm:$0x30] %vm261_vm4, %v274_v63  }
  0x2e   :  { %283 = vst.msk [vmem:[#allocation0 - $0x1d] ss:$8 sm:$0xc0] %vm261_vm4, %v274_v63  }
  0x87   :  { %v352_v0 = vpop.permute.xlu1 %351   ;;  %v303_v1 = vpop.permute.xlu0 %302  }
  0x88   :  { %305 = vst.msk [vmem:[#allocation0] sm:$0xf] %vm304_vm5, %v303_v1   ;;  %307 = vst.msk [vmem:[#allocation0 + $0x4] sm:$0xf0] %vm304_vm5, %v303_v1  }
  0x89   :  { %354 = vst.msk [vmem:[#allocation0] sm:$0xf] %vm353_vm6, %v352_v0   ;;  %356 = vst.msk [vmem:[#allocation0 + $0x4] sm:$0xf0] %vm353_vm6, %v352_v0  }
  0x8b   :  { %v376_v2 = vpop.permute.xlu1 %375   ;;  %v327_v3 = vpop.permute.xlu0 %326  }
  0x8c   :  { %330 = vst.msk [vmem:[#allocation0 + $0x10] sm:$0xf] %vm304_vm5, %v327_v3   ;;  %332 = vst.msk [vmem:[#allocation0 + $0x14] sm:$0xf0] %vm304_vm5, %v327_v3  }
  0x8d   :  { %379 = vst.msk [vmem:[#allocation0 + $0x10] sm:$0xf] %vm353_vm6, %v376_v2   ;;  %381 = vst.msk [vmem:[#allocation0 + $0x14] sm:$0xf0] %vm353_vm6, %v376_v2  }
  0x8f   :  { %v425_v4 = vpop.permute.xlu1 %424   ;;  %v401_v5 = vpop.permute.xlu0 %400  }
  0x90   :  { %428 = vst.msk [vmem:[#allocation0 + $0x10] sm:$0xf] %vm402_vm7, %v425_v4   ;;  %430 = vst.msk [vmem:[#allocation0 + $0x14] sm:$0xf0] %vm402_vm7, %v425_v4  }
  0x91   :  { %403 = vst.msk [vmem:[#allocation0] sm:$0xf] %vm402_vm7, %v401_v5   ;;  %405 = vst.msk [vmem:[#allocation0 + $0x4] sm:$0xf0] %vm402_vm7, %v401_v5  }
  0x93   :  { %v474_v6 = vpop.permute.xlu1 %473   ;;  %v450_v7 = vpop.permute.xlu0 %449  }
  0x94   :  { %477 = vst.msk [vmem:[#allocation0 + $0x10] sm:$0xf] %vm451_vm8, %v474_v6   ;;  %479 = vst.msk [vmem:[#allocation0 + $0x14] sm:$0xf0] %vm451_vm8, %v474_v6  }
  0x95   :  { %452 = vst.msk [vmem:[#allocation0] sm:$0xf] %vm451_vm8, %v450_v7   ;;  %454 = vst.msk [vmem:[#allocation0 + $0x4] sm:$0xf0] %vm451_vm8, %v450_v7  }
  0x97   :  { %v523_v8 = vpop.permute.xlu1 %522   ;;  %v499_v9 = vpop.permute.xlu0 %498  }
  0x98   :  { %526 = vst.msk [vmem:[#allocation0 + $0x10] sm:$0xf] %vm500_vm9, %v523_v8   ;;  %528 = vst.msk [vmem:[#allocation0 + $0x14] sm:$0xf0] %vm500_vm9, %v523_v8  }
  0x99   :  { %501 = vst.msk [vmem:[#allocation0] sm:$0xf] %vm500_vm9, %v499_v9   ;;  %503 = vst.msk [vmem:[#allocation0 + $0x4] sm:$0xf0] %vm500_vm9, %v499_v9  }
  0x9b   :  { %v572_v10 = vpop.permute.xlu1 %571   ;;  %v548_v11 = vpop.permute.xlu0 %547  }
  0x9c   :  { %575 = vst.msk [vmem:[#allocation0 + $0x10] sm:$0xf] %vm549_vm10, %v572_v10   ;;  %577 = vst.msk [vmem:[#allocation0 + $0x14] sm:$0xf0] %vm549_vm10, %v572_v10  }
  0x9d   :  { %550 = vst.msk [vmem:[#allocation0] sm:$0xf] %vm549_vm10, %v548_v11   ;;  %552 = vst.msk [vmem:[#allocation0 + $0x4] sm:$0xf0] %vm549_vm10, %v548_v11  }
  0x9f   :  { %v621_v12 = vpop.permute.xlu1 %620   ;;  %v597_v13 = vpop.permute.xlu0 %596  }
  0xa0   :  { %624 = vst.msk [vmem:[#allocation0 + $0x10] sm:$0xf] %vm598_vm11, %v621_v12   ;;  %626 = vst.msk [vmem:[#allocation0 + $0x14] sm:$0xf0] %vm598_vm11, %v621_v12  }
  0xa1   :  { %599 = vst.msk [vmem:[#allocation0] sm:$0xf] %vm598_vm11, %v597_v13   ;;  %601 = vst.msk [vmem:[#allocation0 + $0x4] sm:$0xf0] %vm598_vm11, %v597_v13  }
  0xa7   :  { %v642_v14 = vld [vmem:[#allocation0 + $0x10] sm:$0xf]  ;;  %v649_v15 = vld [vmem:[#allocation0 + $0x18] sm:$0xf] }
  0xa8   :  { %v643_v17 = vpack.c.bf16 %v743_v16, %v642_v14  ;;  %v650_v18 = vpack.c.bf16 %v743_v16, %v649_v15  ;;  %v631_v19 = vld [vmem:[#allocation0] sm:$0xf]  ;;  %v636_v20 = vld [vmem:[#allocation0 + $0x8] sm:$0xf] }
  0xa9   :  { %v632_v21 = vpack.c.bf16 %v743_v16, %v631_v19  ;;  %v637_v22 = vpack.c.bf16 %v743_v16, %v636_v20 }
  0xaa   :  { %687 = vst [vmem:[%s867_s1 + $0x4] sm:$0x3] %v643_v17  ;;  %688 = vst [vmem:[%s867_s1 + $0x6] sm:$0x3] %v650_v18 }
  0xab   :  { %634 = vst [vmem:[%s867_s1] sm:$0x3] %v632_v21  ;;  %686 = vst [vmem:[%s867_s1 + $0x2] sm:$0x3] %v637_v22 }

// kernel: sensitivity_model_forward.1
= control target key start
LH: loop header
LB: loop body
LE: loop exit
PB: predicated region body
PF: predicated region fallthrough
CT: control target
= control target key end

     0   :  { %s3469_s24 = smov 0   ;;  %s5138_s0 = inlined_call_operand.vmem [shape: bf16[2,8,256], index: 0, kind: input, shape index: {}]   ;;  %s5139_s1 = inlined_call_operand.vmem [shape: bf16[256,512], index: 1, kind: input, shape index: {}]   ;;  %s5140_s2 = inlined_call_operand.vmem [shape: bf16[9,1024], index: 2, kind: input, shape index: {}]   ;;  %s5141_s3 = inlined_call_operand.vmem [shape: bf16[12,18], index: 3, kind: input, shape index: {}]   ;;  %s5142_s4 = inlined_call_operand.vmem [shape: f32[12,1], index: 4, kind: input, shape index: {}]   ;;  %s5143_s5 = inlined_call_operand.vmem [shape: bf16[2,108], index: 5, kind: input, shape index: {}]   ;;  %s5144_s6 = inlined_call_operand.vmem [shape: f32[2,1], index: 6, kind: input, shape index: {}]   ;;  %s5145_s7 = inlined_call_operand.vmem [shape: f32[2,8,256], index: 7, kind: output, shape index: {}]  }
   0x1 LB: > { %s3080_s25 = sadd.s32 4294967295, %s3418_s24   ;;  %p3084_p0 = scmp.ge.s32.totalorder %s3418_s24, 1  ;;  %s3418_s24 = sphi %s3469_s24, %s17_s24  }
   0x2   : > { %p237_p1 = scmp.lt.s32.totalorder %s3418_s24, 3 }
   0x4   : > { %p238_p2 = pnand %p3084_p0, %p237_p1 }
   0x6   : > { %241 = sbr.rel (%p238_p2) target bundleno = 1442 (0x5a2), region = 48 }
   0xd   : > { %v3227_v0 = vld [vmem:[%s5139_s1 + $0x4] ss:$16 sps:$4 sm:$0xff]   ;;  %v3229_v1 = vld [vmem:[%s5139_s1 + $0xc] ss:$16 sps:$4 sm:$0xff]   ;;  %v3231_v2 = vld [vmem:[%s5139_s1] ss:$16 sps:$4 sm:$0xff]  }
   0xe   : > { %672 = vmatprep.subr.bf16.mxu0 %v3227_v0  ;;  %v3232_v3 = vld [vmem:[%s5139_s1 + $0x8] ss:$16 sps:$4 sm:$0xff]   ;;  %713 = vmatprep.subr.bf16.mxu1 %v3229_v1  ;;  %v3233_v4 = vld [vmem:[%s5139_s1 + $0x24] ss:$16 sps:$4 sm:$0xff]   ;;  %v3235_v5 = vld [vmem:[%s5139_s1 + $0x2c] ss:$16 sps:$4 sm:$0xff]  }
   0xf   : > { %673 = vmatpush1.bf16.msra.mxu0 %v3231_v2  ;;  %714 = vmatpush1.bf16.msra.mxu1 %v3232_v3  ;;  %v3237_v6 = vld [vmem:[%s5139_s1 + $0x20] ss:$16 sps:$4 sm:$0xff]   ;;  %v3238_v7 = vld [vmem:[%s5139_s1 + $0x28] ss:$16 sps:$4 sm:$0xff]   ;;  %v3239_v8 = vld [vmem:[%s5139_s1 + $0x44] ss:$16 sps:$4 sm:$0xff]  }
  0x10   : > { %674 = vmatprep.subr.bf16.mxu0 %v3233_v4  ;;  %715 = vmatprep.subr.bf16.mxu1 %v3235_v5  ;;  %v3241_v9 = vld [vmem:[%s5139_s1 + $0x4c] ss:$16 sps:$4 sm:$0xff]   ;;  %v3243_v10 = vld [vmem:[%s5139_s1 + $0x40] ss:$16 sps:$4 sm:$0xff]   ;;  %v3244_v11 = vld [vmem:[%s5139_s1 + $0x48] ss:$16 sps:$4 sm:$0xff]  }
  0x11   : > { %v3245_v12 = vld [vmem:[%s5139_s1 + $0x64] ss:$16 sps:$4 sm:$0xff]   ;;  %v3247_v13 = vld [vmem:[%s5139_s1 + $0x6c] ss:$16 sps:$4 sm:$0xff]   ;;  %v3249_v14 = vld [vmem:[%s5139_s1 + $0x60] ss:$16 sps:$4 sm:$0xff]  }
  0x12   : > { %v3250_v15 = vld [vmem:[%s5139_s1 + $0x68] ss:$16 sps:$4 sm:$0xff]   ;;  %v3251_v16 = vld [vmem:[%s5139_s1 + $0x84] ss:$16 sps:$4 sm:$0xff]   ;;  %v3253_v17 = vld [vmem:[%s5139_s1 + $0x8c] ss:$16 sps:$4 sm:$0xff]  }
  0x13   : > { %675 = vmatpush1.bf16.msra.mxu0 %v3237_v6  ;;  %716 = vmatpush1.bf16.msra.mxu1 %v3238_v7  ;;  %v3255_v18 = vld [vmem:[%s5139_s1 + $0x80] ss:$16 sps:$4 sm:$0xff]   ;;  %v3256_v19 = vld [vmem:[%s5139_s1 + $0x88] ss:$16 sps:$4 sm:$0xff]   ;;  %v3257_v20 = vld [vmem:[%s5139_s1 + $0xa4] ss:$16 sps:$4 sm:$0xff]  }
  0x14   : > { %676 = vmatprep.subr.bf16.mxu0 %v3239_v8  ;;  %717 = vmatprep.subr.bf16.mxu1 %v3241_v9  ;;  %v3259_v21 = vld [vmem:[%s5139_s1 + $0xac] ss:$16 sps:$4 sm:$0xff]   ;;  %v3261_v22 = vld [vmem:[%s5139_s1 + $0xa0] ss:$16 sps:$4 sm:$0xff]   ;;  %v3262_v23 = vld [vmem:[%s5139_s1 + $0xa8] ss:$16 sps:$4 sm:$0xff]  }
  0x15   : > { %v3263_v24 = vld [vmem:[%s5139_s1 + $0xc4] ss:$16 sps:$4 sm:$0xff]   ;;  %v3265_v25 = vld [vmem:[%s5139_s1 + $0xcc] ss:$16 sps:$4 sm:$0xff]   ;;  %v3267_v26 = vld [vmem:[%s5139_s1 + $0xc0] ss:$16 sps:$4 sm:$0xff]  }
  0x16   : > { %v3268_v27 = vld [vmem:[%s5139_s1 + $0xc8] ss:$16 sps:$4 sm:$0xff]   ;;  %v3269_v28 = vld [vmem:[%s5139_s1 + $0xe4] ss:$16 sps:$4 sm:$0xff]   ;;  %v3271_v29 = vld [vmem:[%s5139_s1 + $0xec] ss:$16 sps:$4 sm:$0xff]  }
  0x17   : > { %677 = vmatpush1.bf16.msra.mxu0 %v3243_v10  ;;  %718 = vmatpush1.bf16.msra.mxu1 %v3244_v11  ;;  %v3273_v30 = vld [vmem:[%s5139_s1 + $0xe0] ss:$16 sps:$4 sm:$0xff]   ;;  %v3274_v31 = vld [vmem:[%s5139_s1 + $0xe8] ss:$16 sps:$4 sm:$0xff]   ;;  %v3275_v32 = vld [vmem:[%s5139_s1 + $0x104] ss:$16 sps:$4 sm:$0xff]  }
  0x18   : > { %678 = vmatprep.subr.bf16.mxu0 %v3245_v12  ;;  %719 = vmatprep.subr.bf16.mxu1 %v3247_v13  ;;  %p269_p3 = scmp.lt.s32.totalorder %s3080_s25, 1  ;;  %v3277_v33 = vld [vmem:[%s5139_s1 + $0x10c] ss:$16 sps:$4 sm:$0xff]   ;;  %v3279_v34 = vld [vmem:[%s5139_s1 + $0x100] ss:$16 sps:$4 sm:$0xff]   ;;  %vm776_vm0 = vcmask 1043456  }
  0x19   : > { %v3280_v35 = vld [vmem:[%s5139_s1 + $0x108] ss:$16 sps:$4 sm:$0xff]   ;;  %v3281_v36 = vld [vmem:[%s5139_s1 + $0x124] ss:$16 sps:$4 sm:$0xff]   ;;  %v3283_v37 = vld [vmem:[%s5139_s1 + $0x12c] ss:$16 sps:$4 sm:$0xff]  }
  0x1a   : > { %s5381_s25 = smov (!%p269_p3, %s3080_s25), 1  ;;  %v3285_v38 = vld [vmem:[%s5139_s1 + $0x120] ss:$16 sps:$4 sm:$0xff]   ;;  %v3286_v39 = vld [vmem:[%s5139_s1 + $0x128] ss:$16 sps:$4 sm:$0xff]   ;;  %vm823_vm1 = vcmask 1040384  }
  0x1b   : > { %679 = vmatpush1.bf16.msra.mxu0 %v3249_v14  ;;  %720 = vmatpush1.bf16.msra.mxu1 %v3250_v15  ;;  %v3287_v40 = vld [vmem:[%s5139_s1 + $0x144] ss:$16 sps:$4 sm:$0xff]   ;;  %s3206_s22 = sshll.u32 %s5381_s25, 3  ;;  %v3289_v41 = vld [vmem:[%s5139_s1 + $0x14c] ss:$16 sps:$4 sm:$0xff]   ;;  %s3420_s9 = smov 15  }
  0x1c   : > { %680 = vmatprep.subr.bf16.mxu0 %v3251_v16  ;;  %721 = vmatprep.subr.bf16.mxu1 %v3253_v17  ;;  %v3291_v42 = vld [vmem:[%s5139_s1 + $0x140] ss:$16 sps:$4 sm:$0xff]   ;;  %v3292_v43 = vld [vmem:[%s5139_s1 + $0x148] ss:$16 sps:$4 sm:$0xff]   ;;  %s273_s10 = scalar_lea.vmem %s5138_s0, %s3206_s22  ;;  %v3293_v44 = vld [vmem:[%s5139_s1 + $0x164] ss:$16 sps:$4 sm:$0xff]  }
  0x1d   : > { %v3295_v45 = vld [vmem:[%s5139_s1 + $0x16c] ss:$16 sps:$4 sm:$0xff]   ;;  %v280_v46 = vld [vmem:[%s273_s10] sm:$0xff]  ;;  %v3298_v49 = vld [vmem:[%s5139_s1 + $0x168] ss:$16 sps:$4 sm:$0xff]   ;;  %s3421_s10 = smov 16  }
  0x1e   : > { %v3090_v47 = vcombine.high %v280_v46, %v280_v46  ;;  %v3297_v48 = vld [vmem:[%s5139_s1 + $0x160] ss:$16 sps:$4 sm:$0xff]   ;;  %v3299_v50 = vld [vmem:[%s5139_s1 + $0x184] ss:$16 sps:$4 sm:$0xff]   ;;  %v3301_v51 = vld [vmem:[%s5139_s1 + $0x18c] ss:$16 sps:$4 sm:$0xff]   ;;  %v3089_v2 = vcombine.low %v280_v46, %v280_v46 }
  0x1f   : > { %681 = vmatpush1.bf16.msra.mxu0 %v3255_v18  ;;  %722 = vmatpush1.bf16.msra.mxu1 %v3256_v19  ;;  %v3303_v52 = vld [vmem:[%s5139_s1 + $0x180] ss:$16 sps:$4 sm:$0xff]   ;;  %v3304_v53 = vld [vmem:[%s5139_s1 + $0x188] ss:$16 sps:$4 sm:$0xff]   ;;  %v3305_v54 = vld [vmem:[%s5139_s1 + $0x1a4] ss:$16 sps:$4 sm:$0xff]  }
  0x20   : > { %682 = vmatprep.subr.bf16.mxu0 %v3257_v20  ;;  %723 = vmatprep.subr.bf16.mxu1 %v3259_v21  ;;  %v3307_v55 = vld [vmem:[%s5139_s1 + $0x1ac] ss:$16 sps:$4 sm:$0xff]   ;;  %v3309_v56 = vld [vmem:[%s5139_s1 + $0x1a0] ss:$16 sps:$4 sm:$0xff]   ;;  %v3310_v57 = vld [vmem:[%s5139_s1 + $0x1a8] ss:$16 sps:$4 sm:$0xff]  }
  0x21   : > { %704 = vmatprep.mubr.bf16.mxu0 %v3090_v47  ;;  %745 = vmatprep.mubr.bf16.mxu1 %v3090_v47  ;;  %v3311_v58 = vld [vmem:[%s5139_s1 + $0x1c4] ss:$16 sps:$4 sm:$0xff]   ;;  %v3313_v59 = vld [vmem:[%s5139_s1 + $0x1cc] ss:$16 sps:$4 sm:$0xff]   ;;  %v3315_v60 = vld [vmem:[%s5139_s1 + $0x1c0] ss:$16 sps:$4 sm:$0xff]  }
  0x22   : > { %v3316_v61 = vld [vmem:[%s5139_s1 + $0x1c8] ss:$16 sps:$4 sm:$0xff]   ;;  %v3317_v62 = vld [vmem:[%s5139_s1 + $0x1e4] ss:$16 sps:$4 sm:$0xff]   ;;  %v3319_v63 = vld [vmem:[%s5139_s1 + $0x1ec] ss:$16 sps:$4 sm:$0xff]  }
  0x23   : > { %683 = vmatpush1.bf16.msra.mxu0 %v3261_v22  ;;  %724 = vmatpush1.bf16.msra.mxu1 %v3262_v23  ;;  %v3321_v0 = vld [vmem:[%s5139_s1 + $0x1e0] ss:$16 sps:$4 sm:$0xff]   ;;  %v3322_v1 = vld [vmem:[%s5139_s1 + $0x1e8] ss:$16 sps:$4 sm:$0xff]   ;;  %s3422_s11 = smov 17   ;;  %s3423_s12 = smov 1  }
  0x24   : > { %684 = vmatprep.subr.bf16.mxu0 %v3263_v24  ;;  %725 = vmatprep.subr.bf16.mxu1 %v3265_v25  ;;  %s3424_s13 = smov 127   ;;  %s3425_s14 = smov 112   ;;  %vm996_vm2 = vcmask 130048   ;;  %vm1096_vm3 = vcmask 121856   ;;  %vm876_vm4 = vcmask 138240   ;;  %vm1172_vm5 = vcmask 7168  }
  0x25   : > { %s3426_s15 = smov 113   ;;  %s3427_s16 = smov 111   ;;  %vm1708_vm6 = vcmask 1041408   ;;  %vm1324_vm7 = vcmask 924672   ;;  %vm1725_vm8 = vcmask 1042432   ;;  %vm1400_vm9 = vcmask 916480  }
  0x26   : > { %vm1248_vm10 = vcmask 1039360   ;;  %vm1775_vm11 = vcmask 1045504   ;;  %vm1758_vm12 = vcmask 1044480   ;;  %vm1792_vm13 = vcmask 1046528  }
  0x27   : > { %685 = vmatpush1.bf16.msra.mxu0 %v3267_v26  ;;  %726 = vmatpush1.bf16.msra.mxu1 %v3268_v27  ;;  %vm1476_vm14 = vcmask 908288   ;;  %vm1832_vm15 = vcmask 146432  }
  0x28   : > { %686 = vmatprep.subr.bf16.mxu0 %v3269_v28  ;;  %727 = vmatprep.subr.bf16.mxu1 %v3271_v29 }
  0x2b   : > { %687 = vmatpush1.bf16.msra.mxu0 %v3273_v30  ;;  %728 = vmatpush1.bf16.msra.mxu1 %v3274_v31 }
  0x2c   : > { %688 = vmatprep.subr.bf16.mxu0 %v3275_v32  ;;  %729 = vmatprep.subr.bf16.mxu1 %v3277_v33 }
  0x2f   : > { %689 = vmatpush1.bf16.msra.mxu0 %v3279_v34  ;;  %730 = vmatpush1.bf16.msra.mxu1 %v3280_v35 }
  0x30   : > { %690 = vmatprep.subr.bf16.mxu0 %v3281_v36  ;;  %731 = vmatprep.subr.bf16.mxu1 %v3283_v37 }
  0x33   : > { %691 = vmatpush1.bf16.msra.mxu0 %v3285_v38  ;;  %732 = vmatpush1.bf16.msra.mxu1 %v3286_v39 }
  0x34   : > { %692 = vmatprep.subr.bf16.mxu0 %v3287_v40  ;;  %733 = vmatprep.subr.bf16.mxu1 %v3289_v41 }
  0x37   : > { %693 = vmatpush1.bf16.msra.mxu0 %v3291_v42  ;;  %734 = vmatpush1.bf16.msra.mxu1 %v3292_v43 }
  0x38   : > { %694 = vmatprep.subr.bf16.mxu0 %v3293_v44  ;;  %735 = vmatprep.subr.bf16.mxu1 %v3295_v45 }
  0x3b   : > { %695 = vmatpush1.bf16.msra.mxu0 %v3297_v48  ;;  %736 = vmatpush1.bf16.msra.mxu1 %v3298_v49 }
  0x3c   : > { %696 = vmatprep.subr.bf16.mxu0 %v3299_v50  ;;  %737 = vmatprep.subr.bf16.mxu1 %v3301_v51 }
  0x3f   : > { %697 = vmatpush1.bf16.msra.mxu0 %v3303_v52  ;;  %738 = vmatpush1.bf16.msra.mxu1 %v3304_v53 }
  0x40   : > { %698 = vmatprep.subr.bf16.mxu0 %v3305_v54  ;;  %739 = vmatprep.subr.bf16.mxu1 %v3307_v55 }
  0x43   : > { %699 = vmatpush1.bf16.msra.mxu0 %v3309_v56  ;;  %740 = vmatpush1.bf16.msra.mxu1 %v3310_v57 }
  0x44   : > { %700 = vmatprep.subr.bf16.mxu0 %v3311_v58  ;;  %741 = vmatprep.subr.bf16.mxu1 %v3313_v59 }
  0x47   : > { %701 = vmatpush1.bf16.msra.mxu0 %v3315_v60  ;;  %742 = vmatpush1.bf16.msra.mxu1 %v3316_v61 }
  0x48   : > { %702 = vmatprep.subr.bf16.mxu0 %v3317_v62  ;;  %743 = vmatprep.subr.bf16.mxu1 %v3319_v63 }
  0x4b   : > { %703 = vmatpush1.bf16.msra.mxu0 %v3321_v0  ;;  %744 = vmatpush1.bf16.msra.mxu1 %v3322_v1 }
  0x4e   : > { %705 = vmatmul.mubr.bf16.vlgmr.msra.gmra.mrb[0].mxu0 %v3089_v2  ;;  %746 = vmatmul.mubr.bf16.vlgmr.msra.gmra.mrb[0].mxu1 %v3089_v2 }
 0x121   : > { %v706_v3 = vpop.f32.mrb[0].mxu0  ;;  %v747_v4 = vpop.f32.mrb[0].mxu1 }
 0x122   : > { %v764_v5 = vrot.slane %v706_v3, 4  ;;  %v756_v6 = vrot.slane %v747_v4, 4  ;;  %v708_v7 = vpop.f32.mrb[1].mxu0  ;;  %v749_v8 = vpop.f32.mrb[1].mxu1 }
 0x123   : > { %v765_v9 = vrot.slane %v708_v7, 4  ;;  %v757_v10 = vrot.slane %v749_v8, 4  ;;  %v710_v11 = vpop.f32.mrb[2].mxu0  ;;  %v751_v12 = vpop.f32.mrb[2].mxu1 }
 0x124   : > { %v760_v13 = vsub.f32 %v706_v3, %v756_v6  ;;  %v768_v14 = vadd.f32 %v764_v5, %v747_v4  ;;  %v711_v15 = vpop.f32.mrb[3].mxu0  ;;  %v752_v16 = vpop.f32.mrb[3].mxu1  ;;  %v5146_v3 = vmov 0  }
 0x125   : > { %v761_v17 = vsub.f32 %v708_v7, %v757_v10  ;;  %v769_v18 = vadd.f32 %v765_v9, %v749_v8  ;;  %1892 = vmatprep.mubr.bf16.mxu0 %v5146_v3  ;;  %1935 = vmatprep.mubr.bf16.mxu1 %v5146_v3  ;;  %v850_v16 = vld [vmem:[%s5142_s4] sm:$0xff] }
 0x126   : > { %v772_v19 = vrot.slane %v768_v14, 4  ;;  %3225 = vset.pattern.permute.xlu1 %v5146_v3  ;;  %3226 = vset.pattern.permute.xlu0 %v5146_v3 }
 0x127   : > { %v773_v20 = vrot.slane %v769_v18, 4 }
 0x128   : > { %v777_v21 = vsel %vm776_vm0, %v760_v13, %v772_v19 }
 0x129   : > { %v778_v22 = vsel %vm776_vm0, %v761_v17, %v773_v20  ;;  %v782_v24 = vmul.f32 %v777_v21, %v777_v21  ;;  %v851_v17 = vld [vmem:[%s5142_s4 + $0x8] sm:$0xf] }
 0x12a   : > { %v779_v23 = vadd.f32 %v778_v22, %v777_v21  ;;  %v783_v25 = vmul.f32 %v778_v22, %v778_v22 }
 0x12c   : > { %780 = vadd.xlane.f32.xlu0 %v779_v23  ;;  %v784_v26 = vadd.f32 %v783_v25, %v782_v24  ;;  %v840_v24 = vld [vmem:[%s5140_s2] sm:$0xff] }
 0x130   : > { %785 = vadd.xlane.f32.xlu0 %v784_v26 }
 0x1b9   : > { %v781_v27 = vpop.xlane.xlu0 %780 }
 0x1ba   : > { %v3681_v28 = vmul.f32 0.00390625, %v781_v27 }
 0x1bc   : > { %5223 = vst [vmem:[#allocation2_spill] sm:$0xff] %v3681_v28  ;;  %v788_v29 = vmul.f32 %v3681_v28, %v781_v27  ;;  %v794_v33 = vsub.f32 %v778_v22, %v3681_v28  ;;  %v793_v37 = vsub.f32 %v777_v21, %v3681_v28  ;;  %v3156_v27 = vcombine.high %v840_v24, %v840_v24 }
 0x1bd   : > { %v786_v30 = vpop.xlane.xlu0 %785 }
 0x1be   : > { %v789_v31 = vsub.f32 %v786_v30, %v788_v29  ;;  %v919_v29 = vlaneseq }
 0x1c0   : > { %v790_v32 = vmul.f32 0.003921569, %v789_v31 }
 0x1c2   : > { %3342 = vrsqrt.f32 %v790_v32 }
 0x1cc   : > { %v3343_v34 = vpop.eup %3342 }
 0x1cd   : > { %v3685_v35 = vmul.f32 %v3343_v34, %v790_v32  ;;  %v3687_v36 = vmul.f32 %v3343_v34, %v794_v33  ;;  %v795_v38 = vmul.f32 %v3343_v34, %v793_v37  ;;  %v920_v32 = vshrl.u32 %v919_v29, 7  ;;  %v841_v34 = vld [vmem:[%s5140_s2 + $0x8] sm:$0xff] }
 0x1ce   : > { %v1023_v33 = vshrl.u32 %v3156_v27, 16 }
 0x1cf   : > { %5224 = vst [vmem:[#allocation3_spill] sm:$0xff] %v3685_v35  ;;  %v808_v39 = vrot.slane %v3687_v36, 3  ;;  %v807_v42 = vrot.slane %v795_v38, 3  ;;  %v800_v45 = vrot.slane %v3687_v36, 1  ;;  %v803_v46 = vrot.slane %v795_v38, 2 }
 0x1d0   : > { %v799_v48 = vrot.slane %v795_v38, 1  ;;  %v804_v63 = vrot.slane %v3687_v36, 2 }
 0x1d1   : > { %v825_v40 = vsel %vm823_vm1, %v3687_v36, %v808_v39  ;;  %v824_v43 = vsel %vm823_vm1, %v795_v38, %v807_v42  ;;  %v812_v47 = vrot.slane %v800_v45, 3  ;;  %v813_v49 = vrot.slane %v803_v46, 3 }
 0x1d2   : > { %v3693_v41 = vpack.c.bf16 %v825_v40, %v825_v40  ;;  %v3704_v44 = vpack.c.bf16 %v824_v43, %v824_v43  ;;  %v811_v52 = vrot.slane %v799_v48, 3  ;;  %v815_v57 = vrot.slane %v807_v42, 3 }
 0x1d3   : > { %v827_v50 = vsel %vm823_vm1, %v800_v45, %v812_v47  ;;  %v828_v53 = vsel %vm823_vm1, %v803_v46, %v813_v49  ;;  %v816_v58 = vrot.slane %v808_v39, 3  ;;  %v814_v0 = vrot.slane %v804_v63, 3 }
 0x1d4   : > { %1084 = vrot.lane.b32.xlu1 %v3693_v41, %s3420_s9  ;;  %984 = vrot.lane.b32.xlu0 %v3693_v41, %s3421_s10  ;;  %v3728_v51 = vpack.c.bf16 %v827_v50, %v827_v50  ;;  %v3735_v54 = vpack.c.bf16 %v828_v53, %v828_v53  ;;  %v826_v55 = vsel %vm823_vm1, %v799_v48, %v811_v52 }
 0x1d5   : > { %v3742_v56 = vpack.c.bf16 %v826_v55, %v826_v55  ;;  %v830_v59 = vsel %vm823_vm1, %v807_v42, %v815_v57  ;;  %v831_v61 = vsel %vm823_vm1, %v808_v39, %v816_v58  ;;  %v829_v1 = vsel %vm823_vm1, %v804_v63, %v814_v0 }
 0x1d6   : > { %5225 = vst [vmem:[#allocation4_spill] sm:$0xff] %v3735_v54  ;;  %v3761_v60 = vpack.c.bf16 %v830_v59, %v830_v59  ;;  %v3768_v62 = vpack.c.bf16 %v831_v61, %v831_v61  ;;  %v3784_v2 = vpack.c.bf16 %v829_v1, %v829_v1  ;;  %v3157_v38 = vcombine.low %v841_v34, %v841_v34 }
 0x1d7   : > { %v3910_v39 = vsub.s32 0, %v920_v32  ;;  %v1024_v40 = vpack.i.b16 %v1023_v33, %v1023_v33  ;;  %v3912_v42 = vsub.s32 1, %v920_v32  ;;  %v3158_v43 = vcombine.high %v841_v34, %v841_v34 }
 0x1d8   : > { %864 = vrot.lane.b32.xlu1 %v3693_v41, %s3422_s11  ;;  %1160 = vrot.lane.b32.xlu0 %v3693_v41, %s3423_s12  ;;  %5226 = vst [vmem:[#allocation5_spill] sm:$0xff] %v3784_v2  ;;  %v924_v47 = vpack.i.b16 %v3156_v27, %v3156_v27  ;;  %v1030_v48 = vshrl.u32 %v3157_v38, 16  ;;  %v3935_v61 = vcombine.low %v840_v24, %v840_v24  ;;  %v3948_v24 = vsub.s32 3, %v920_v32 }
 0x1d9   : > { %v3919_v49 = vrot.slane %v1024_v40, %v3910_v39  ;;  %v1037_v53 = vshrl.u32 %v3158_v43, 16  ;;  %v3939_v1 = vrot.slane %v1024_v40, %v3912_v42 }
 0x1da   : > { %v3925_v52 = vrot.slane %v924_v47, %v3912_v42  ;;  %v3933_v59 = vrot.slane %v924_v47, %v3910_v39  ;;  %v1031_v63 = vpack.i.b16 %v1030_v48, %v1030_v48  ;;  %v938_v48 = vpack.i.b16 %v3158_v43, %v3158_v43 }
 0x1db   : > { %5237 = vst [vmem:[#allocation16_spill] sm:$0xff] %v3919_v49  ;;  %5241 = vst [vmem:[#allocation20_spill] sm:$0xff] %v3939_v1  ;;  %v1038_v33 = vpack.i.b16 %v1037_v53, %v1037_v53 }
 0x1dc   : > { %862 = vrot.lane.b32.xlu0 %v3704_v44, %s3422_s11  ;;  %982 = vrot.lane.b32.xlu1 %v3704_v44, %s3421_s10  ;;  %5238 = vst [vmem:[#allocation17_spill] sm:$0xff] %v3925_v52  ;;  %5240 = vst [vmem:[#allocation19_spill] sm:$0xff] %v3933_v59  ;;  %v3960_v53 = vrot.slane %v1031_v63, %v3910_v39 }
 0x1dd   : > { %v3970_v34 = vrot.slane %v1038_v33, %v3910_v39 }
 0x1de   : > { %5243 = vst [vmem:[#allocation22_spill] sm:$0xff] %v3960_v53 }
 0x1df   : > { %5246 = vst [vmem:[#allocation25_spill] sm:$0xff] %v3970_v34 }
 0x1e0   : > { %1158 = vrot.lane.b32.xlu0 %v3704_v44, %s3423_s12  ;;  %1082 = vrot.lane.b32.xlu1 %v3704_v44, %s3420_s9 }
 0x1e4   : > { %1234 = vrot.lane.b32.xlu0 %v3693_v41, %s3424_s13  ;;  %1232 = vrot.lane.b32.xlu1 %v3704_v44, %s3424_s13 }
 0x1e8   : > { %1384 = vrot.lane.b32.xlu0 %v3704_v44, %s3425_s14  ;;  %1310 = vrot.lane.b32.xlu1 %v3693_v41, %s3426_s15 }
 0x1ec   : > { %1462 = vrot.lane.b32.xlu0 %v3693_v41, %s3427_s16  ;;  %1308 = vrot.lane.b32.xlu1 %v3704_v44, %s3426_s15 }
 0x1f0   : > { %1164 = vrot.lane.b32.xlu0 %v3728_v51, %s3423_s12  ;;  %1386 = vrot.lane.b32.xlu1 %v3693_v41, %s3425_s14 }
 0x1f4   : > { %1460 = vrot.lane.b32.xlu1 %v3704_v44, %s3427_s16  ;;  %1240 = vrot.lane.b32.xlu0 %v3735_v54, %s3424_s13 }
 0x1f8   : > { %1314 = vrot.lane.b32.xlu0 %v3728_v51, %s3426_s15  ;;  %986 = vrot.lane.b32.xlu1 %v3742_v56, %s3421_s10 }
 0x1fc   : > { %1312 = vrot.lane.b32.xlu0 %v3742_v56, %s3426_s15  ;;  %988 = vrot.lane.b32.xlu1 %v3728_v51, %s3421_s10 }
 0x200   : > { %1392 = vrot.lane.b32.xlu0 %v3735_v54, %s3425_s14  ;;  %1086 = vrot.lane.b32.xlu1 %v3742_v56, %s3420_s9 }
 0x204   : > { %1388 = vrot.lane.b32.xlu0 %v3742_v56, %s3425_s14  ;;  %1088 = vrot.lane.b32.xlu1 %v3728_v51, %s3420_s9 }
 0x208   : > { %994 = vrot.lane.b32.xlu0 %v3761_v60, %s3421_s10  ;;  %866 = vrot.lane.b32.xlu1 %v3742_v56, %s3422_s11 }
 0x20c   : > { %1080 = vrot.lane.b32.xlu0 %v3768_v62, %s3420_s9  ;;  %868 = vrot.lane.b32.xlu1 %v3728_v51, %s3422_s11 }
 0x210   : > { %874 = vrot.lane.b32.xlu0 %v3761_v60, %s3422_s11  ;;  %1162 = vrot.lane.b32.xlu1 %v3742_v56, %s3423_s12 }
 0x214   : > { %1156 = vrot.lane.b32.xlu0 %v3768_v62, %s3423_s12  ;;  %1238 = vrot.lane.b32.xlu1 %v3728_v51, %s3424_s13 }
 0x218   : > { %872 = vrot.lane.b32.xlu0 %v3784_v2, %s3422_s11  ;;  %1236 = vrot.lane.b32.xlu1 %v3742_v56, %s3424_s13 }
 0x21c   : > { %1246 = vrot.lane.b32.xlu0 %v3768_v62, %s3424_s13  ;;  %1316 = vrot.lane.b32.xlu1 %v3735_v54, %s3426_s15 }
 0x220   : > { %1244 = vrot.lane.b32.xlu0 %v3761_v60, %s3424_s13  ;;  %1390 = vrot.lane.b32.xlu1 %v3728_v51, %s3425_s14 }
 0x224   : > { %1322 = vrot.lane.b32.xlu0 %v3768_v62, %s3426_s15  ;;  %980 = vrot.lane.b32.xlu1 %v3768_v62, %s3421_s10 }
 0x228   : > { %1464 = vrot.lane.b32.xlu0 %v3742_v56, %s3427_s16  ;;  %992 = vrot.lane.b32.xlu1 %v3784_v2, %s3421_s10 }
 0x22c   : > { %1468 = vrot.lane.b32.xlu0 %v3735_v54, %s3427_s16  ;;  %1094 = vrot.lane.b32.xlu1 %v3761_v60, %s3420_s9 }
 0x230   : > { %1396 = vrot.lane.b32.xlu0 %v3761_v60, %s3425_s14  ;;  %853 = vrot.lane.b32.xlu1 %v3768_v62, %s3422_s11 }
 0x234   : > { %1472 = vrot.lane.b32.xlu0 %v3761_v60, %s3427_s16  ;;  %1092 = vrot.lane.b32.xlu1 %v3784_v2, %s3420_s9 }
 0x238   : > { %1090 = vrot.lane.b32.xlu0 %v3735_v54, %s3420_s9  ;;  %1170 = vrot.lane.b32.xlu1 %v3761_v60, %s3423_s12 }
 0x23c   : > { %1166 = vrot.lane.b32.xlu0 %v3735_v54, %s3423_s12  ;;  %1168 = vrot.lane.b32.xlu1 %v3784_v2, %s3423_s12 }
 0x240   : > { %1318 = vrot.lane.b32.xlu0 %v3784_v2, %s3426_s15  ;;  %1466 = vrot.lane.b32.xlu1 %v3728_v51, %s3427_s16 }
 0x244   : > { %1470 = vrot.lane.b32.xlu0 %v3784_v2, %s3427_s16  ;;  %1320 = vrot.lane.b32.xlu1 %v3761_v60, %s3426_s15 }
 0x246   : > { %v3838_v4 = vpop.permute.xlu1 %1084  ;;  %v3840_v5 = vpop.permute.xlu0 %984 }
 0x248   : > { %1398 = vrot.lane.b32.xlu1 %v3768_v62, %s3425_s14  ;;  %1824 = vperm.xlu0 %3226, %v851_v17   ;;  %v931_v17 = vpack.i.b16 %v3157_v38, %v3157_v38 }
 0x24a   : > { %v3844_v6 = vpop.permute.xlu1 %864  ;;  %v3846_v7 = vpop.permute.xlu0 %1160  ;;  %v3967_v28 = vrot.slane %v931_v17, %v3948_v24 }
 0x24c   : > { %990 = vrot.lane.b32.xlu1 %v3735_v54, %s3421_s10  ;;  %5245 = vst [vmem:[#allocation24_spill] sm:$0xff] %v3967_v28 }
 0x24e   : > { %v3850_v8 = vpop.permute.xlu0 %862  ;;  %v3852_v9 = vpop.permute.xlu1 %982 }
 0x24f   : > { %5227 = vst [vmem:[#allocation6_spill] sm:$0xff] %v3850_v8  ;;  %v997_v50 = vsel %vm996_vm2, %v3852_v9, %v3840_v5  ;;  %v877_v35 = vsel %vm876_vm4, %v3850_v8, %v3844_v6 }
 0x250   : > { %1474 = vrot.lane.b32.xlu1 %v3768_v62, %s3427_s16  ;;  %v1073_v0 = vmul.bf16 %v3919_v49, %v997_v50  ;;  %v3976_v49 = vrot.slane %v1024_v40, %v3948_v24 }
 0x252   : > { %v3856_v10 = vpop.permute.xlu0 %1158  ;;  %v3858_v11 = vpop.permute.xlu1 %1082  ;;  %5248 = vst [vmem:[#allocation27_spill] sm:$0xff] %v3976_v49 }
 0x253   : > { %5228 = vst [vmem:[#allocation7_spill] sm:$0xff] %v3856_v10  ;;  %v1097_v55 = vsel %vm1096_vm3, %v3858_v11, %v3838_v4  ;;  %v1173_v27 = vsel %vm1172_vm5, %v3856_v10, %v3846_v7  ;;  %v4017_v10 = vrot.slane %v1031_v63, %v3948_v24 }
 0x254   : > { %870 = vrot.lane.b32.xlu1 %v3735_v54, %s3422_s11  ;;  %v1149_v29 = vmul.bf16 %v3925_v52, %v1097_v55  ;;  %v1225_v43 = vmul.bf16 %v3939_v1, %v1173_v27  ;;  %v3964_v55 = vrot.slane %v924_v47, %v3948_v24  ;;  %v3973_v52 = vrot.slane %v931_v17, %v3912_v42 }
 0x255   : > { %v3980_v27 = vrot.slane %v938_v48, %v3912_v42  ;;  %v3983_v47 = vrot.slane %v931_v17, %v3910_v39  ;;  %5259 = vst [vmem:[#allocation38_spill] sm:$0xff] %v4017_v10 }
 0x256   : > { %v3862_v12 = vpop.permute.xlu0 %1234  ;;  %v3864_v13 = vpop.permute.xlu1 %1232  ;;  %5244 = vst [vmem:[#allocation23_spill] sm:$0xff] %v3964_v55  ;;  %v1605_v38 = vrot.slane %v1149_v29, 6  ;;  %5247 = vst [vmem:[#allocation26_spill] sm:$0xff] %v3973_v52  ;;  %v3986_v29 = vrot.slane %v938_v48, %v3910_v39  ;;  %v1621_v8 = vrot.slane %v1225_v43, 5 }
 0x257   : > { %5229 = vst [vmem:[#allocation8_spill] sm:$0xff] %v3864_v13  ;;  %5249 = vst [vmem:[#allocation28_spill] sm:$0xff] %v3980_v27  ;;  %v4014_v13 = vrot.slane %v938_v48, %v3948_v24  ;;  %v4037_v48 = vrot.slane %v1038_v33, %v3948_v24 }
 0x258   : > { %1242 = vrot.lane.b32.xlu1 %v3784_v2, %s3424_s13  ;;  %5250 = vst [vmem:[#allocation29_spill] sm:$0xff] %v3983_v47  ;;  %5251 = vst [vmem:[#allocation30_spill] sm:$0xff] %v3986_v29 }
 0x259   : > { %5258 = vst [vmem:[#allocation37_spill] sm:$0xff] %v4014_v13  ;;  %5260 = vst [vmem:[#allocation39_spill] sm:$0xff] %v4037_v48 }
 0x25a   : > { %v3868_v14 = vpop.permute.xlu0 %1384  ;;  %v3870_v15 = vpop.permute.xlu1 %1310 }
 0x25b   : > { %5230 = vst [vmem:[#allocation9_spill] sm:$0xff] %v3868_v14 }
 0x25c   : > { %1394 = vrot.lane.b32.xlu1 %v3784_v2, %s3425_s14 }
 0x25e   : > { %v3880_v18 = vpop.permute.xlu0 %1462  ;;  %v3882_v19 = vpop.permute.xlu1 %1308 }
 0x25f   : > { %5231 = vst [vmem:[#allocation10_spill] sm:$0xff] %v3880_v18  ;;  %5232 = vst [vmem:[#allocation11_spill] sm:$0xff] %v3882_v19 }
 0x260   : > { %1819 = vperm.xlu1 %3225, %v850_v16   ;;  %v3941_v16 = vsub.s32 2, %v920_v32  ;;  %v1589_v32 = vrot.slane %v1073_v0, 7  ;;  %v973_v0 = vmul.bf16 %v3933_v59, %v877_v35  ;;  %v3997_v35 = vrot.slane %v1038_v33, %v3912_v42 }
 0x262   : > { %v3884_v20 = vpop.permute.xlu0 %1164  ;;  %v3886_v21 = vpop.permute.xlu1 %1386  ;;  %5254 = vst [vmem:[#allocation33_spill] sm:$0xff] %v3997_v35  ;;  %v4000_v59 = vrot.slane %v1038_v33, %v3941_v16  ;;  %v1689_v17 = vsel %vm823_vm1, %v973_v0, %v1589_v32  ;;  %v4004_v14 = vrot.slane %v1024_v40, %v3941_v16 }
 0x263   : > { %5233 = vst [vmem:[#allocation12_spill] sm:$0xff] %v3884_v20 }
 0x264   : > { %5255 = vst [vmem:[#allocation34_spill] sm:$0xff] %v4000_v59  ;;  %5256 = vst [vmem:[#allocation35_spill] sm:$0xff] %v4004_v14 }
 0x266   : > { %v3888_v22 = vpop.permute.xlu1 %1460  ;;  %v3890_v23 = vpop.permute.xlu0 %1240  ;;  %v5286_v54 = vld [vmem:[#allocation10_spill] sm:$0xff] }
 0x267   : > { %5234 = vst [vmem:[#allocation13_spill] sm:$0xff] %v3888_v22  ;;  %5235 = vst [vmem:[#allocation14_spill] sm:$0xff] %v3890_v23 }
 0x26a   : > { %v3895_v25 = vpop.permute.xlu0 %1314  ;;  %v3897_v26 = vpop.permute.xlu1 %986 }
 0x26b   : > { %v998_v18 = vsel %vm996_vm2, %v3840_v5, %v3897_v26  ;;  %v1712_v5 = vsel %vm1708_vm6, %v1689_v17, %v1605_v38 }
 0x26c   : > { %v1074_v32 = vmul.bf16 %v3960_v53, %v998_v18  ;;  %v1729_v17 = vsel %vm1725_vm8, %v1712_v5, %v1621_v8 }
 0x26e   : > { %v3899_v30 = vpop.permute.xlu0 %1312  ;;  %v3901_v31 = vpop.permute.xlu1 %988 }
 0x26f   : > { %v999_v19 = vsel %vm996_vm2, %v3897_v26, %v3901_v31 }
 0x272   : > { %v3906_v36 = vpop.permute.xlu0 %1392  ;;  %v3908_v37 = vpop.permute.xlu1 %1086 }
 0x273   : > { %5236 = vst [vmem:[#allocation15_spill] sm:$0xff] %v3906_v36  ;;  %v1098_v40 = vsel %vm1096_vm3, %v3838_v4, %v3908_v37 }
 0x274   : > { %v1150_v53 = vmul.bf16 %v3973_v52, %v1098_v40 }
 0x276   : > { %v3914_v45 = vpop.permute.xlu0 %1388  ;;  %v3916_v46 = vpop.permute.xlu1 %1088 }
 0x27a   : > { %v3930_v57 = vpop.permute.xlu0 %994  ;;  %v867_v58 = vpop.permute.xlu1 %866 }
 0x27b   : > { %5239 = vst [vmem:[#allocation18_spill] sm:$0xff] %v3930_v57  ;;  %v3994_v57 = vrot.slane %v1031_v63, %v3912_v42  ;;  %v878_v43 = vsel %vm876_vm4, %v3844_v6, %v867_v58  ;;  %v1075_v6 = vmul.bf16 %v3970_v34, %v999_v19 }
 0x27d   : > { %5253 = vst [vmem:[#allocation32_spill] sm:$0xff] %v3994_v57 }
 0x27e   : > { %v3950_v3 = vpop.permute.xlu0 %1080  ;;  %v3952_v50 = vpop.permute.xlu1 %868 }
 0x27f   : > { %5242 = vst [vmem:[#allocation21_spill] sm:$0xff] %v3952_v50  ;;  %v879_v18 = vsel %vm876_vm4, %v867_v58, %v3952_v50  ;;  %v1402_v58 = vsel %vm1400_vm9, %v3886_v21, %v3914_v45  ;;  %v1590_v50 = vrot.slane %v1074_v32, 7  ;;  %v1591_v32 = vrot.slane %v1075_v6, 7 }
 0x280   : > { %v975_v34 = vmul.bf16 %v3986_v29, %v879_v18 }
 0x282   : > { %v3988_v1 = vpop.permute.xlu0 %874  ;;  %v1163_v22 = vpop.permute.xlu1 %1162  ;;  %v1695_v29 = vsel %vm823_vm1, %v975_v34, %v1591_v32 }
 0x283   : > { %5252 = vst [vmem:[#allocation31_spill] sm:$0xff] %v3988_v1  ;;  %v4007_v1 = vrot.slane %v1031_v63, %v3941_v16  ;;  %v1174_v38 = vsel %vm1172_vm5, %v3846_v7, %v1163_v22  ;;  %v1326_v63 = vsel %vm1324_vm7, %v3870_v15, %v3899_v30  ;;  %v1175_v4 = vsel %vm1172_vm5, %v1163_v22, %v3884_v20 }
 0x284   : > { %v1099_v7 = vsel %vm1096_vm3, %v3908_v37, %v3916_v46  ;;  %v974_v22 = vmul.bf16 %v3983_v47, %v878_v43  ;;  %v1226_v33 = vmul.bf16 %v3994_v57, %v1174_v38  ;;  %v1377_v19 = vmul.bf16 %v3964_v55, %v1326_v63 }
 0x285   : > { %5257 = vst [vmem:[#allocation36_spill] sm:$0xff] %v4007_v1  ;;  %v1227_v37 = vmul.bf16 %v3997_v35, %v1175_v4  ;;  %v1151_v5 = vmul.bf16 %v3980_v27, %v1099_v7  ;;  %v1453_v63 = vmul.bf16 %v3976_v49, %v1402_v58  ;;  %v5261_v4 = vrot.slane %v3693_v41, 4  ;;  %v845_v49 = vld [vmem:[%s5140_s2 + $0x28] sm:$0x11] }
 0x286   : > { %v4027_v0 = vpop.permute.xlu0 %1156  ;;  %v1239_v26 = vpop.permute.xlu1 %1238  ;;  %v1606_v57 = vrot.slane %v1150_v53, 6  ;;  %v1692_v7 = vsel %vm823_vm1, %v974_v22, %v1590_v50  ;;  %v1622_v35 = vrot.slane %v1226_v33, 5  ;;  %v1327_v41 = vsel %vm1324_vm7, %v3899_v30, %v3895_v25 }
 0x287   : > { %v1252_v40 = vsel %vm1248_vm10, %v1239_v26, %v3890_v23  ;;  %v1745_v55 = vsel %vm776_vm0, %v1729_v17, %v5261_v4  ;;  %v1623_v52 = vrot.slane %v1227_v37, 5  ;;  %v1661_v58 = vrot.slane %v1377_v19, 2 }
 0x288   : > { %v1607_v17 = vrot.slane %v1151_v5, 6  ;;  %v1677_v22 = vrot.slane %v1453_v63, 1  ;;  %v1714_v34 = vsel %vm1708_vm6, %v1692_v7, %v1606_v57  ;;  %v1378_v5 = vmul.bf16 %v3967_v28, %v1327_v41 }
 0x289   : > { %v1016_v57 = vshrl.u32 %v3935_v61, 16 }
 0x28a   : > { %v4053_v20 = vpop.permute.xlu0 %872  ;;  %v1237_v8 = vpop.permute.xlu1 %1236 }
 0x28b   : > { %v1250_v43 = vsel %vm1248_vm10, %v3862_v12, %v1237_v8  ;;  %v1251_v38 = vsel %vm1248_vm10, %v1237_v8, %v1239_v26  ;;  %v1303_v26 = vmul.bf16 %v4000_v59, %v1252_v40  ;;  %v1716_v40 = vsel %vm1708_vm6, %v1695_v29, %v1607_v17 }
 0x28c   : > { %v1301_v18 = vmul.bf16 %v4004_v14, %v1250_v43  ;;  %v1302_v47 = vmul.bf16 %v4007_v1, %v1251_v38  ;;  %v1731_v43 = vsel %vm1725_vm8, %v1714_v34, %v1622_v35  ;;  %v1733_v38 = vsel %vm1725_vm8, %v1716_v40, %v1623_v52  ;;  %v844_v52 = vld [vmem:[%s5140_s2 + $0x20] sm:$0x11]  ;;  %v5278_v14 = vld [vmem:[#allocation9_spill] sm:$0xff] }
 0x28d   : > { %v1647_v32 = vrot.slane %v1303_v26, 3  ;;  %v5262_v26 = vrot.slane %v3742_v56, 4  ;;  %v3163_v40 = vcombine.low %v844_v52, %v844_v52 }
 0x28e   : > { %v1645_v6 = vrot.slane %v1301_v18, 3  ;;  %v4070_v8 = vpop.permute.xlu1 %1316  ;;  %v4075_v53 = vpop.permute.xlu0 %1246  ;;  %v1646_v30 = vrot.slane %v1302_v47, 3 }
 0x28f   : > { %v1328_v50 = vsel %vm1324_vm7, %v3895_v25, %v4070_v8 }
 0x290   : > { %v1379_v33 = vmul.bf16 %v4014_v13, %v1328_v50  ;;  %v1762_v37 = vsel %vm1758_vm12, %v1745_v55, %v1645_v6  ;;  %v843_v55 = vld [vmem:[%s5140_s2 + $0x18] sm:$0xff]  ;;  %v1747_v6 = vsel %vm776_vm0, %v1731_v43, %v5262_v26  ;;  %v1662_v50 = vrot.slane %v1378_v5, 2 }
 0x291   : > { %v1779_v19 = vsel %vm1775_vm11, %v1762_v37, %v1661_v58  ;;  %v3162_v18 = vcombine.high %v843_v55, %v843_v55  ;;  %v1764_v17 = vsel %vm1758_vm12, %v1747_v6, %v1646_v30  ;;  %v1017_v43 = vpack.i.b16 %v1016_v57, %v1016_v57 }
 0x292   : > { %v1391_v25 = vpop.permute.xlu1 %1390  ;;  %v1797_v63 = vsel %vm1792_vm13, %v1779_v19, %v1677_v22  ;;  %v1663_v29 = vrot.slane %v1379_v33, 2  ;;  %v4105_v41 = vpop.permute.xlu0 %1244  ;;  %v3161_v19 = vcombine.low %v843_v55, %v843_v55  ;;  %v917_v5 = vpack.i.b16 %v3935_v61, %v3935_v61 }
 0x293   : > { %v1403_v47 = vsel %vm1400_vm9, %v3914_v45, %v1391_v25  ;;  %v1404_v35 = vsel %vm1400_vm9, %v1391_v25, %v3906_v36  ;;  %1860 = vmatprep.subr.bf16.mxu0 %v1797_v63  ;;  %v5263_v45 = vrot.slane %v3728_v51, 4  ;;  %v1065_v25 = vshrl.u32 %v3162_v18, 16 }
 0x294   : > { %v1454_v4 = vmul.bf16 %v4017_v10, %v1403_v47  ;;  %v1455_v7 = vmul.bf16 %v4037_v48, %v1404_v35  ;;  %v1781_v51 = vsel %vm1775_vm11, %v1764_v17, %v1662_v50  ;;  %v4130_v6 = vrot.slane %v1017_v43, %v3941_v16 }
 0x295   : > { %v1749_v58 = vsel %vm776_vm0, %v1733_v38, %v5263_v45  ;;  %v1058_v38 = vshrl.u32 %v3161_v19, 16  ;;  %v4132_v61 = vpack.i.b16 %v3161_v19, %v3161_v19  ;;  %v4134_v45 = vpack.i.b16 %v1065_v25, %v1065_v25 }
 0x296   : > { %v1678_v22 = vrot.slane %v1454_v4, 1  ;;  %v1679_v34 = vrot.slane %v1455_v7, 1  ;;  %v4111_v33 = vpop.permute.xlu1 %980  ;;  %v1766_v37 = vsel %vm1758_vm12, %v1749_v58, %v1647_v32  ;;  %v4125_v35 = vpop.permute.xlu0 %1322  ;;  %v3164_v4 = vcombine.high %v844_v52, %v844_v52  ;;  %5264 = vst [vmem:[#allocation40_spill] sm:$0xff] %v4130_v6 }
 0x297   : > { %v1783_v56 = vsel %vm1775_vm11, %v1766_v37, %v1663_v29  ;;  %v1517_v29 = vpack.i.b16 %v3163_v40, %v3163_v40  ;;  %v4137_v58 = vrot.slane %v1017_v43, %v3910_v39  ;;  %v4140_v17 = vrot.slane %v917_v5, %v3912_v42 }
 0x298   : > { %v1803_v63 = vsel %vm1792_vm13, %v1783_v56, %v1679_v34  ;;  %v1800_v30 = vsel %vm1792_vm13, %v1781_v51, %v1678_v22  ;;  %v4142_v50 = vpack.i.b16 %v1058_v38, %v1058_v38  ;;  %v966_v52 = vpack.i.b16 %v3162_v18, %v3162_v18 }
 0x299   : > { %1903 = vmatprep.subr.bf16.mxu1 %v1803_v63  ;;  %5265 = vst [vmem:[#allocation41_spill] sm:$0xff] %v4137_v58  ;;  %5266 = vst [vmem:[#allocation42_spill] sm:$0xff] %v4140_v17  ;;  %v1014_v22 = vsel %vm996_vm2, %v4111_v33, %v3852_v9  ;;  %v4148_v34 = vrot.slane %v917_v5, %v3948_v24  ;;  %v4151_v37 = vrot.slane %v1017_v43, %v3948_v24  ;;  %v5271_v9 = vld [vmem:[#allocation7_spill] sm:$0xff] }
 0x29a   : > { %v4120_v47 = vpop.permute.xlu1 %992  ;;  %1904 = vmatpush1.bf16.msra.mxu1 %v1800_v30  ;;  %v1114_v40 = vsel %vm1096_vm3, %v3950_v3, %v3858_v11  ;;  %v4157_v19 = vrot.slane %v1017_v43, %v3912_v42  ;;  %v4162_v18 = vrot.slane %v1517_v29, %v3910_v39  ;;  %v1190_v25 = vsel %vm1172_vm5, %v4027_v0, %v5271_v9  ;;  %v842_v30 = vld [vmem:[%s5140_s2 + $0x10] sm:$0xff] }
 0x29b   : > { %5267 = vst [vmem:[#allocation43_spill] sm:$0xff] %v4148_v34  ;;  %5268 = vst [vmem:[#allocation44_spill] sm:$0xff] %v4151_v37  ;;  %v1524_v63 = vpack.i.b16 %v3164_v4, %v3164_v4  ;;  %v4169_v51 = vrot.slane %v4132_v61, %v3910_v39  ;;  %v4173_v11 = vrot.slane %v4134_v45, %v3941_v16  ;;  %v5274_v29 = vld [vmem:[#allocation8_spill] sm:$0xff] }
 0x29c   : > { %5269 = vst [vmem:[#allocation45_spill] sm:$0xff] %v4157_v19  ;;  %5270 = vst [vmem:[#allocation46_spill] sm:$0xff] %v4162_v18  ;;  %v1072_v43 = vmul.bf16 %v4137_v58, %v1014_v22  ;;  %v4177_v38 = vrot.slane %v917_v5, %v3910_v39  ;;  %v1249_v4 = vsel %vm1248_vm10, %v5274_v29, %v3862_v12  ;;  %v4193_v22 = vpop.permute.xlu0 %1464  ;;  %v5277_v5 = vld [vmem:[#allocation11_spill] sm:$0xff] }
 0x29d   : > { %5272 = vst [vmem:[#allocation7_spill] sm:$0xff] %v4173_v11  ;;  %v1148_v9 = vmul.bf16 %v4140_v17, %v1114_v40  ;;  %v4188_v26 = vrot.slane %v4142_v50, %v3941_v16  ;;  %v4191_v7 = vrot.slane %v966_v52, %v3948_v24  ;;  %v1325_v55 = vsel %vm1324_vm7, %v5277_v5, %v3870_v15 }
 0x29e   : > { %v4159_v56 = vpop.permute.xlu1 %1094  ;;  %5273 = vst [vmem:[#allocation47_spill] sm:$0xff] %v4177_v38  ;;  %v1224_v57 = vmul.bf16 %v4157_v19, %v1190_v25  ;;  %v4201_v12 = vrot.slane %v4134_v45, %v3910_v39  ;;  %v4205_v40 = vrot.slane %v4142_v50, %v3910_v39  ;;  %v1401_v17 = vsel %vm1400_vm9, %v5278_v14, %v3886_v21  ;;  %v5280_v25 = vld [vmem:[#allocation6_spill] sm:$0xff] }
 0x29f   : > { %5275 = vst [vmem:[#allocation8_spill] sm:$0xff] %v4188_v26  ;;  %5276 = vst [vmem:[#allocation48_spill] sm:$0xff] %v4191_v7  ;;  %v4214_v15 = vrot.slane %v1524_v63, %v3910_v39  ;;  %v4218_v10 = vcombine.low %v842_v30, %v842_v30  ;;  %v1300_v13 = vmul.bf16 %v4130_v6, %v1249_v4  ;;  %v1588_v58 = vrot.slane %v1072_v43, 7 }
 0x2a0   : > { %v4222_v48 = vrot.slane %v966_v52, %v3912_v42  ;;  %v1376_v59 = vmul.bf16 %v4148_v34, %v1325_v55  ;;  %v1604_v1 = vrot.slane %v1148_v9, 6  ;;  %v4227_v21 = vrot.slane %v966_v52, %v3910_v39  ;;  %v4237_v6 = vpop.permute.xlu0 %1468 }
 0x2a1   : > { %5279 = vst [vmem:[#allocation11_spill] sm:$0xff] %v4214_v15  ;;  %v3165_v63 = vcombine.low %v845_v49, %v845_v49  ;;  %v1452_v27 = vmul.bf16 %v4151_v37, %v1401_v17  ;;  %v4233_v43 = vrot.slane %v4132_v61, %v3912_v42  ;;  %v4244_v52 = vpack.i.b16 %v4218_v10, %v4218_v10 }
 0x2a2   : > { %v854_v32 = vpop.permute.xlu1 %853  ;;  %v4253_v17 = vrot.slane %v4142_v50, %v3912_v42  ;;  %v3166_v9 = vcombine.high %v845_v49, %v845_v49  ;;  %v1660_v37 = vrot.slane %v1376_v59, 2 }
 0x2a3   : > { %v894_v19 = vsel %vm876_vm4, %v854_v32, %v5280_v25  ;;  %v1620_v25 = vrot.slane %v1224_v57, 5  ;;  %5281 = vst [vmem:[#allocation9_spill] sm:$0xff] %v4233_v43  ;;  %v4248_v57 = vrot.slane %v4134_v45, %v3912_v42  ;;  %v1676_v36 = vrot.slane %v1452_v27, 1 }
 0x2a4   : > { %v972_v28 = vmul.bf16 %v4177_v38, %v894_v19  ;;  %v4240_v19 = vcombine.high %v842_v30, %v842_v30  ;;  %5283 = vst [vmem:[#allocation49_spill] sm:$0xff] %v4253_v17  ;;  %v5285_v30 = vrot.slane %v3704_v44, 4  ;;  %v1531_v38 = vpack.i.b16 %v3165_v63, %v3165_v63  ;;  %v5288_v44 = vld [vmem:[#allocation31_spill] sm:$0xff]  ;;  %v4285_v23 = vpop.permute.xlu0 %1396 }
 0x2a5   : > { %5282 = vst [vmem:[#allocation6_spill] sm:$0xff] %v4248_v57 }
 0x2a6   : > { %v1686_v2 = vsel %vm823_vm1, %v972_v28, %v1588_v58  ;;  %v4235_v4 = vpop.permute.xlu1 %1092  ;;  %v1644_v28 = vrot.slane %v1300_v13, 3  ;;  %v5287_v13 = vld [vmem:[#allocation13_spill] sm:$0xff] }
 0x2a7   : > { %v1710_v55 = vsel %vm1708_vm6, %v1686_v2, %v1604_v1  ;;  %v5284_v2 = vld [vmem:[#allocation18_spill] sm:$0xff] }
 0x2a8   : > { %v1727_v58 = vsel %vm1725_vm8, %v1710_v55, %v1620_v25  ;;  %v1003_v1 = vsel %vm996_vm2, %v5284_v2, %v4111_v33  ;;  %v1477_v25 = vsel %vm1476_vm14, %v5287_v13, %v5286_v54  ;;  %v1478_v55 = vsel %vm1476_vm14, %v5286_v54, %v4193_v22 }
 0x2a9   : > { %v1743_v34 = vsel %vm776_vm0, %v1727_v58, %v5285_v30  ;;  %v1002_v33 = vsel %vm996_vm2, %v4120_v47, %v5284_v2  ;;  %v883_v58 = vsel %vm876_vm4, %v5288_v44, %v854_v32  ;;  %v1079_v30 = vmul.bf16 %v4201_v12, %v1003_v1 }
 0x2aa   : > { %v1171_v49 = vpop.permute.xlu1 %1170  ;;  %v1760_v59 = vsel %vm1758_vm12, %v1743_v34, %v1644_v28  ;;  %v1103_v54 = vsel %vm1096_vm3, %v4159_v56, %v3950_v3  ;;  %v1102_v34 = vsel %vm1096_vm3, %v4235_v4, %v4159_v56  ;;  %v1538_v28 = vpack.i.b16 %v3166_v9, %v3166_v9 }
 0x2ab   : > { %v1179_v27 = vsel %vm1172_vm5, %v1171_v49, %v4027_v0  ;;  %v1777_v63 = vsel %vm1775_vm11, %v1760_v59, %v1660_v37  ;;  %v1572_v2 = vmul.bf16 %v4162_v18, %v1477_v25  ;;  %v1573_v32 = vmul.bf16 %v4214_v15, %v1478_v55  ;;  %v847_v25 = vld [vmem:[%s5140_s2 + $0x38] sm:$0x11] }
 0x2ac   : > { %v1794_v0 = vsel %vm1792_vm13, %v1777_v63, %v1676_v36  ;;  %v1044_v37 = vshrl.u32 %v4218_v10, 16  ;;  %v1078_v1 = vmul.bf16 %v4205_v40, %v1002_v33  ;;  %v979_v59 = vmul.bf16 %v4227_v21, %v883_v58 }
 0x2ad   : > { %v1231_v3 = vmul.bf16 %v4248_v57, %v1179_v27  ;;  %1861 = vmatpush1.bf16.msra.mxu0 %v1794_v0  ;;  %v1051_v56 = vshrl.u32 %v4240_v19, 16  ;;  %v1155_v55 = vmul.bf16 %v4222_v48, %v1103_v54  ;;  %v1154_v36 = vmul.bf16 %v4233_v43, %v1102_v34  ;;  %v4329_v57 = vpop.permute.xlu0 %1472 }
 0x2ae   : > { %v4293_v9 = vpop.permute.xlu1 %1168  ;;  %3172 = vmatprep.subr.msk.bf16.mxu0 %vm823_vm1, %v1573_v32  ;;  %v1595_v33 = vrot.slane %v1079_v30, 7  ;;  %v4305_v27 = vrot.slane %v1531_v38, %v3910_v39  ;;  %v4308_v63 = vrot.slane %v1538_v28, %v3910_v39  ;;  %v882_v54 = vsel %vm876_vm4, %v4053_v20, %v5288_v44 }
 0x2af   : > { %v1178_v10 = vsel %vm1172_vm5, %v4293_v9, %v1171_v49  ;;  %v1837_v34 = vsel %vm823_vm1, %v1572_v2, 0  ;;  %v4317_v49 = vld [vmem:[%s5141_s3] sm:$0x3f]   ;;  %v4321_v30 = vrot.slane %v4132_v61, %v3948_v24  ;;  %v4323_v38 = vcombine.low %v847_v25, %v847_v25 }
 0x2b0   : > { %v1230_v58 = vmul.bf16 %v4253_v17, %v1178_v10  ;;  %v1266_v28 = vsel %vm1248_vm10, %v4075_v53, %v5274_v29  ;;  %v1594_v32 = vrot.slane %v1078_v1, 7  ;;  %v1707_v44 = vsel %vm823_vm1, %v979_v59, %v1595_v33 }
 0x2b1   : > { %5289 = vst [vmem:[#allocation18_spill] sm:$0xff] %v4321_v30  ;;  %v1627_v0 = vrot.slane %v1231_v3, 5  ;;  %1863 = vmatpush1.bf16.msra.mxu0 %v1837_v34  ;;  %v1611_v10 = vrot.slane %v1155_v55, 6  ;;  %v1610_v17 = vrot.slane %v1154_v36, 6  ;;  %v978_v15 = vmul.bf16 %v4169_v51, %v882_v54 }
 0x2b2   : > { %v1467_v2 = vpop.permute.xlu1 %1466  ;;  %v1626_v18 = vrot.slane %v1230_v58, 5  ;;  %v1307_v59 = vmul.bf16 %v4173_v11, %v1266_v28  ;;  %v1255_v3 = vsel %vm1248_vm10, %v4105_v41, %v4075_v53  ;;  %v1342_v36 = vsel %vm1324_vm7, %v4125_v35, %v5277_v5  ;;  %v5324_v11 = vld [vmem:[#allocation30_spill] sm:$0xff] }
 0x2b3   : > { %v1479_v61 = vsel %vm1476_vm14, %v4193_v22, %v1467_v2  ;;  %v1480_v43 = vsel %vm1476_vm14, %v1467_v2, %v4237_v6  ;;  %v1724_v55 = vsel %vm1708_vm6, %v1707_v44, %v1611_v10  ;;  %v3170_v22 = vcombine.high %v847_v25, %v847_v25 }
 0x2b4   : > { %v1574_v29 = vmul.bf16 %v4305_v27, %v1479_v61  ;;  %v1575_v1 = vmul.bf16 %v4308_v63, %v1480_v43  ;;  %3173 = vmatmul.mubr.msk.bf16.vlgmr.msra.gmra.mrb[4].mxu0 %vm1832_vm15, %v4317_v49  ;;  %v1704_v33 = vsel %vm823_vm1, %v978_v15, %v1594_v32  ;;  %v1741_v43 = vsel %vm1725_vm8, %v1724_v55, %v1627_v0  ;;  %v1091_v0 = vpop.permute.xlu0 %1090 }
 0x2b5   : > { %v5290_v54 = vmov 0   ;;  %v1722_v34 = vsel %vm1708_vm6, %v1704_v33, %v1610_v17  ;;  %v4358_v25 = vpack.i.b16 %v4240_v19, %v4240_v19  ;;  %v4365_v15 = vrot.slane %v4142_v50, %v3948_v24 }
 0x2b6   : > { %v4350_v58 = vpop.permute.xlu1 %1320  ;;  %3174 = vmatprep.subr.msk.bf16.mxu1 %vm823_vm1, %v1575_v1  ;;  %v1843_v53 = vsel %vm823_vm1, %v1574_v29, 0  ;;  %1978 = vmatprep.mubr.bf16.mxu0 %v5290_v54  ;;  %v1306_v28 = vmul.bf16 %v4188_v26, %v1255_v3  ;;  %v1739_v32 = vsel %vm1725_vm8, %v1722_v34, %v1626_v18  ;;  %v4372_v17 = vrot.slane %v4134_v45, %v3948_v24  ;;  %v846_v34 = vld [vmem:[%s5140_s2 + $0x30] sm:$0x11] }
 0x2b7   : > { %v1331_v5 = vsel %vm1324_vm7, %v4350_v58, %v4125_v35  ;;  %1906 = vmatpush1.bf16.msra.mxu1 %v1843_v53  ;;  %5291 = vst [vmem:[#allocation10_spill] sm:$0xff] %v4365_v15  ;;  %v1383_v19 = vmul.bf16 %v4191_v7, %v1342_v36  ;;  %v4375_v2 = vpack.i.b16 %v1044_v37, %v1044_v37  ;;  %v5293_v50 = vrot.slane %v3768_v62, 4 }
 0x2b8   : > { %v1382_v44 = vmul.bf16 %v4321_v30, %v1331_v5  ;;  %5292 = vst [vmem:[#allocation13_spill] sm:$0xff] %v4372_v17  ;;  %v4377_v35 = vpack.i.b16 %v1051_v56, %v1051_v56  ;;  %v1651_v61 = vrot.slane %v1307_v59, 3  ;;  %v4384_v18 = vrot.slane %v4244_v52, %v3912_v42 }
 0x2b9   : > { %v1757_v10 = vsel %vm776_vm0, %v1741_v43, %v5293_v50  ;;  %v1559_v45 = vpack.i.b16 %v4323_v38, %v4323_v38  ;;  %v1566_v37 = vpack.i.b16 %v3170_v22, %v3170_v22  ;;  %v5294_v56 = vrot.slane %v3761_v60, 4 }
 0x2ba   : > { %v1399_v29 = vpop.permute.xlu1 %1398  ;;  %3175 = vmatmul.mubr.msk.bf16.vlgmr.msra.gmra.mrb[4].mxu1 %vm1832_vm15, %v4317_v49  ;;  %v1666_v62 = vrot.slane %v1382_v44, 2  ;;  %v1650_v55 = vrot.slane %v1306_v28, 3  ;;  %v1774_v38 = vsel %vm1758_vm12, %v1757_v10, %v1651_v61  ;;  %v1667_v22 = vrot.slane %v1383_v19, 2  ;;  %v1167_v19 = vpop.permute.xlu0 %1166 }
 0x2bb   : > { %v1755_v1 = vsel %vm776_vm0, %v1739_v32, %v5294_v56  ;;  %v1407_v59 = vsel %vm1400_vm9, %v4285_v23, %v1399_v29  ;;  %v1418_v3 = vsel %vm1400_vm9, %v1399_v29, %v5278_v14  ;;  %2021 = vmatprep.mubr.bf16.mxu1 %v5290_v54  ;;  %v4403_v60 = vrot.slane %v4358_v25, %v3912_v42 }
 0x2bc   : > { %v1458_v36 = vmul.bf16 %v4365_v15, %v1407_v59  ;;  %v1459_v33 = vmul.bf16 %v4372_v17, %v1418_v3  ;;  %v4407_v43 = vrot.slane %v4375_v2, %v3912_v42  ;;  %v4411_v14 = vrot.slane %v4377_v35, %v3912_v42  ;;  %v5321_v17 = vld [vmem:[#allocation25_spill] sm:$0xff] }
 0x2bd   : > { %v4415_v53 = vrot.slane %v4244_v52, %v3948_v24  ;;  %v1772_v44 = vsel %vm1758_vm12, %v1755_v1, %v1650_v55  ;;  %v4423_v50 = vrot.slane %v4375_v2, %v3910_v39  ;;  %v4427_v42 = vrot.slane %v4377_v35, %v3910_v39 }
 0x2be   : > { %5295 = vst [vmem:[#allocation31_spill] sm:$0xff] %v4407_v43  ;;  %v1682_v5 = vrot.slane %v1458_v36, 1  ;;  %v1683_v28 = vrot.slane %v1459_v33, 1  ;;  %v991_v32 = vpop.permute.xlu1 %990  ;;  %v1791_v10 = vsel %vm1775_vm11, %v1774_v38, %v1667_v22  ;;  %v1789_v61 = vsel %vm1775_vm11, %v1772_v44, %v1666_v62  ;;  %v5299_v33 = vld [vmem:[#allocation12_spill] sm:$0xff] }
 0x2bf   : > { %5296 = vst [vmem:[#allocation50_spill] sm:$0xff] %v4415_v53  ;;  %v4433_v56 = vrot.slane %v1559_v45, %v3910_v39  ;;  %v4436_v1 = vrot.slane %v1566_v37, %v3910_v39  ;;  %v4439_v3 = vcombine.low %v846_v34, %v846_v34  ;;  %v4441_v55 = vcombine.high %v846_v34, %v846_v34 }
 0x2c0   : > { %v1815_v29 = vsel %vm1792_vm13, %v1791_v10, %v1683_v28  ;;  %v1812_v59 = vsel %vm1792_vm13, %v1789_v61, %v1682_v5  ;;  %v1000_v36 = vsel %vm996_vm2, %v3901_v31, %v991_v32  ;;  %v1001_v62 = vsel %vm996_vm2, %v991_v32, %v4120_v47 }
 0x2c1   : > { %5297 = vst [vmem:[#allocation51_spill] sm:$0xff] %v4433_v56  ;;  %5298 = vst [vmem:[#allocation52_spill] sm:$0xff] %v4436_v1  ;;  %1989 = vmatprep.subr.bf16.mxu1 %v1815_v29  ;;  %v1100_v45 = vsel %vm1096_vm3, %v3916_v46, %v1091_v0  ;;  %v1101_v37 = vsel %vm1096_vm3, %v1091_v0, %v4235_v4  ;;  %v1176_v38 = vsel %vm1172_vm5, %v5299_v33, %v1167_v19 }
 0x2c2   : > { %v1177_v22 = vsel %vm1172_vm5, %v1167_v19, %v4293_v9  ;;  %v1475_v34 = vpop.permute.xlu1 %1474  ;;  %1990 = vmatpush1.bf16.msra.mxu1 %v1812_v59  ;;  %v4461_v46 = vrot.slane %v4244_v52, %v3910_v39  ;;  %v4465_v4 = vrot.slane %v4358_v25, %v3910_v39  ;;  %v1076_v0 = vmul.bf16 %v4423_v50, %v1000_v36  ;;  %v1319_v36 = vpop.permute.xlu0 %1318 }
 0x2c3   : > { %v1483_v31 = vsel %vm1476_vm14, %v4329_v57, %v1475_v34  ;;  %v1494_v47 = vsel %vm1476_vm14, %v1475_v34, %v5287_v13  ;;  %v1077_v9 = vmul.bf16 %v4427_v42, %v1001_v62  ;;  %v1152_v32 = vmul.bf16 %v4384_v18, %v1100_v45  ;;  %v5303_v62 = vld [vmem:[#allocation21_spill] sm:$0xff] }
 0x2c4   : > { %v1578_v5 = vmul.bf16 %v4433_v56, %v1483_v31  ;;  %v1579_v28 = vmul.bf16 %v4436_v1, %v1494_v47  ;;  %v1153_v13 = vmul.bf16 %v4403_v60, %v1101_v37  ;;  %v1228_v44 = vmul.bf16 %v4407_v43, %v1176_v38 }
 0x2c5   : > { %v1229_v52 = vmul.bf16 %v4411_v14, %v1177_v22  ;;  %v4477_v19 = vrot.slane %v4358_v25, %v3948_v24  ;;  %v4483_v29 = vrot.slane %v4375_v2, %v3941_v16  ;;  %v4487_v59 = vrot.slane %v4377_v35, %v3941_v16 }
 0x2c6   : > { %v871_v10 = vpop.permute.xlu1 %870  ;;  %3178 = vmatprep.subr.msk.bf16.mxu1 %vm823_vm1, %v1579_v28  ;;  %v1855_v61 = vsel %vm823_vm1, %v1578_v5, 0  ;;  %v4495_v37 = vrot.slane %v4375_v2, %v3948_v24  ;;  %v4499_v33 = vrot.slane %v4377_v35, %v3948_v24  ;;  %v1592_v38 = vrot.slane %v1076_v0, 7 }
 0x2c7   : > { %5300 = vst [vmem:[#allocation12_spill] sm:$0xff] %v4477_v19  ;;  %5301 = vst [vmem:[#allocation53_spill] sm:$0xff] %v4483_v29  ;;  %v880_v45 = vsel %vm876_vm4, %v5303_v62, %v871_v10  ;;  %v881_v25 = vsel %vm876_vm4, %v871_v10, %v4053_v20  ;;  %1992 = vmatpush1.bf16.msra.mxu1 %v1855_v61  ;;  %v1593_v22 = vrot.slane %v1077_v9, 7  ;;  %v1608_v31 = vrot.slane %v1152_v32, 6  ;;  %v5306_v32 = vld [vmem:[#allocation14_spill] sm:$0xff] }
 0x2c8   : > { %5302 = vst [vmem:[#allocation54_spill] sm:$0xff] %v4487_v59  ;;  %5304 = vst [vmem:[#allocation21_spill] sm:$0xff] %v4495_v37  ;;  %v976_v16 = vmul.bf16 %v4461_v46, %v880_v45  ;;  %v977_v34 = vmul.bf16 %v4465_v4, %v881_v25  ;;  %v1609_v47 = vrot.slane %v1153_v13, 6  ;;  %v1624_v5 = vrot.slane %v1228_v44, 5 }
 0x2c9   : > { %5305 = vst [vmem:[#allocation55_spill] sm:$0xff] %v4499_v33  ;;  %v1625_v28 = vrot.slane %v1229_v52, 5  ;;  %v1329_v20 = vsel %vm1324_vm7, %v4070_v8, %v1319_v36  ;;  %v1330_v2 = vsel %vm1324_vm7, %v1319_v36, %v4350_v58  ;;  %v1545_v62 = vpack.i.b16 %v4439_v3, %v4439_v3  ;;  %v5310_v3 = vld [vmem:[#allocation5_spill] sm:$0xff] }
 0x2ca   : > { %v1698_v10 = vsel %vm823_vm1, %v976_v16, %v1592_v38  ;;  %v1701_v24 = vsel %vm823_vm1, %v977_v34, %v1593_v22  ;;  %v1243_v35 = vpop.permute.xlu1 %1242  ;;  %3179 = vmatmul.mubr.msk.bf16.vlgmr.msra.gmra.mrb[8].mxu1 %vm1832_vm15, %v4317_v49  ;;  %v1380_v36 = vmul.bf16 %v4415_v53, %v1329_v20  ;;  %v1552_v45 = vpack.i.b16 %v4441_v55, %v4441_v55  ;;  %v1471_v16 = vpop.permute.xlu0 %1470  ;;  %v5307_v34 = vld [vmem:[#allocation4_spill] sm:$0xff]  ;;  %v5323_v53 = vld [vmem:[#allocation26_spill] sm:$0xff] }
 0x2cb   : > { %v1718_v0 = vsel %vm1708_vm6, %v1698_v10, %v1608_v31  ;;  %v1720_v9 = vsel %vm1708_vm6, %v1701_v24, %v1609_v47  ;;  %v1253_v13 = vsel %vm1248_vm10, %v5306_v32, %v1243_v35  ;;  %v1254_v8 = vsel %vm1248_vm10, %v1243_v35, %v4105_v41  ;;  %2860 = vmatprep.mubr.bf16.mxu1 %v5290_v54 }
 0x2cc   : > { %v1735_v58 = vsel %vm1725_vm8, %v1718_v0, %v1624_v5  ;;  %v1304_v44 = vmul.bf16 %v4483_v29, %v1253_v13  ;;  %v1305_v52 = vmul.bf16 %v4487_v59, %v1254_v8  ;;  %v1737_v61 = vsel %vm1725_vm8, %v1720_v9, %v1625_v28  ;;  %v5309_v5 = vld [vmem:[#allocation15_spill] sm:$0xff] }
 0x2cd   : > { %v1381_v41 = vmul.bf16 %v4477_v19, %v1330_v2  ;;  %v5308_v31 = vrot.slane %v5307_v34, 4  ;;  %v5311_v10 = vrot.slane %v5310_v3, 4  ;;  %v1664_v9 = vrot.slane %v1380_v36, 2 }
 0x2ce   : > { %v1648_v25 = vrot.slane %v1304_v44, 3  ;;  %v1649_v38 = vrot.slane %v1305_v52, 3  ;;  %v1395_v22 = vpop.permute.xlu1 %1394  ;;  %v4543_v32 = vrot.slane %v1545_v62, %v3910_v39  ;;  %v4546_v13 = vrot.slane %v1552_v45, %v3910_v39 }
 0x2cf   : > { %v1751_v47 = vsel %vm776_vm0, %v1735_v58, %v5308_v31  ;;  %v1405_v28 = vsel %vm1400_vm9, %v5309_v5, %v1395_v22  ;;  %v1406_v20 = vsel %vm1400_vm9, %v1395_v22, %v4285_v23  ;;  %v1753_v55 = vsel %vm776_vm0, %v1737_v61, %v5311_v10 }
 0x2d0   : > { %v1768_v2 = vsel %vm1758_vm12, %v1751_v47, %v1648_v25  ;;  %v1456_v24 = vmul.bf16 %v4495_v37, %v1405_v28  ;;  %v1457_v35 = vmul.bf16 %v4499_v33, %v1406_v20  ;;  %v1770_v0 = vsel %vm1758_vm12, %v1753_v55, %v1649_v38  ;;  %5312 = vst [vmem:[#allocation14_spill] sm:$0xff] %v4543_v32  ;;  %v4565_v38 = vpop.permute.xlu0 %1824  ;;  %v5320_v33 = vld [vmem:[#allocation22_spill] sm:$0xff] }
 0x2d1   : > { %5313 = vst [vmem:[#allocation4_spill] sm:$0xff] %v4546_v13  ;;  %v1665_v23 = vrot.slane %v1381_v41, 2  ;;  %v1481_v8 = vsel %vm1476_vm14, %v4237_v6, %v1471_v16  ;;  %v1482_v58 = vsel %vm1476_vm14, %v1471_v16, %v4329_v57  ;;  %v1785_v25 = vsel %vm1775_vm11, %v1768_v2, %v1664_v9 }
 0x2d2   : > { %v1680_v44 = vrot.slane %v1456_v24, 1  ;;  %v1681_v52 = vrot.slane %v1457_v35, 1  ;;  %v1576_v39 = vmul.bf16 %v4543_v32, %v1481_v8  ;;  %v1577_v45 = vmul.bf16 %v4546_v13, %v1482_v58 }
 0x2d3   : > { %v1787_v61 = vsel %vm1775_vm11, %v1770_v0, %v1665_v23 }
 0x2d4   : > { %v1809_v36 = vsel %vm1792_vm13, %v1787_v61, %v1681_v52  ;;  %v1806_v62 = vsel %vm1792_vm13, %v1785_v25, %v1680_v44  ;;  %v1849_v6 = vsel %vm823_vm1, %v1576_v39, 0 }
 0x2d5   : > { %1946 = vmatprep.subr.bf16.mxu0 %v1809_v36 }
 0x2d6   : > { %1947 = vmatpush1.bf16.msra.mxu0 %v1806_v62 }
 0x2d7   : > { %3176 = vmatprep.subr.msk.bf16.mxu0 %vm823_vm1, %v1577_v45 }
 0x2da   : > { %1949 = vmatpush1.bf16.msra.mxu0 %v1849_v6 }
 0x2dd   : > { %3177 = vmatmul.mubr.msk.bf16.vlgmr.msra.gmra.mrb[8].mxu0 %vm1832_vm15, %v4317_v49  ;;  %vm2759_vm15 = vcmask 883712  }
 0x2de   : > { %2819 = vmatprep.mubr.bf16.mxu0 %v5290_v54 }
 0x2df   : > { %v4563_v57 = vpop.permute.xlu1 %1819 }
 0x387   : > { %v1894_v41 = vpop.f32.mrb[4].mxu0 }
 0x388   : > { %v4568_v22 = vadd.f32 %v1894_v41, %v4563_v57  ;;  %v1896_v16 = vpop.f32.mrb[5].mxu0 }
 0x389   : > { %v4571_v34 = vadd.f32 %v1896_v16, %v4563_v57  ;;  %v1898_v31 = vpop.f32.mrb[6].mxu0 }
 0x38a   : > { %v3180_v47 = vmul.f32 -1.442695, %v4568_v22  ;;  %v4575_v5 = vadd.f32 %v1898_v31, %v4565_v38  ;;  %v1900_v49 = vpop.f32.mrb[7].mxu0 }
 0x38b   : > { %v3181_v28 = vmul.f32 -1.442695, %v4571_v34  ;;  %v4579_v20 = vadd.f32 %v1900_v49, %v4565_v38 }
 0x38c   : > { %3344 = vpow2.f32 %v3180_v47  ;;  %v3188_v3 = vmul.f32 -1.442695, %v4575_v5 }
 0x38d   : > { %v1937_v10 = vpop.f32.mrb[4].mxu1  ;;  %3346 = vpow2.f32 %v3181_v28  ;;  %v3189_v55 = vmul.f32 -1.442695, %v4579_v20 }
 0x38e   : > { %v4584_v2 = vadd.f32 %v1937_v10, %v4563_v57  ;;  %v1939_v24 = vpop.f32.mrb[5].mxu1  ;;  %3348 = vpow2.f32 %v3188_v3 }
 0x38f   : > { %v4587_v35 = vadd.f32 %v1939_v24, %v4563_v57  ;;  %v1941_v0 = vpop.f32.mrb[6].mxu1  ;;  %3350 = vpow2.f32 %v3189_v55 }
 0x390   : > { %v3182_v9 = vmul.f32 -1.442695, %v4584_v2  ;;  %v4591_v23 = vadd.f32 %v1941_v0, %v4565_v38  ;;  %v1943_v8 = vpop.f32.mrb[7].mxu1 }
 0x391   : > { %v3183_v58 = vmul.f32 -1.442695, %v4587_v35  ;;  %v4595_v44 = vadd.f32 %v1943_v8, %v4565_v38 }
 0x392   : > { %3352 = vpow2.f32 %v3182_v9  ;;  %v3190_v52 = vmul.f32 -1.442695, %v4591_v23 }
 0x393   : > { %3354 = vpow2.f32 %v3183_v58  ;;  %v3191_v61 = vmul.f32 -1.442695, %v4595_v44 }
 0x394   : > { %3356 = vpow2.f32 %v3190_v52 }
 0x395   : > { %3358 = vpow2.f32 %v3191_v61 }
 0x396   : > { %v3345_v25 = vpop.eup %3344 }
 0x397   : > { %v3347_v36 = vpop.eup %3346  ;;  %v2080_v62 = vadd.f32 1.0, %v3345_v25 }
 0x398   : > { %v3349_v39 = vpop.eup %3348  ;;  %v2081_v45 = vadd.f32 1.0, %v3347_v36 }
 0x399   : > { %v3351_v6 = vpop.eup %3350  ;;  %3360 = vrcp.f32 %v2080_v62  ;;  %v2088_v41 = vadd.f32 1.0, %v3349_v39 }
 0x39a   : > { %3362 = vrcp.f32 %v2081_v45  ;;  %v2089_v16 = vadd.f32 1.0, %v3351_v6 }
 0x39b   : > { %3364 = vrcp.f32 %v2088_v41 }
 0x39c   : > { %v3353_v31 = vpop.eup %3352  ;;  %3366 = vrcp.f32 %v2089_v16 }
 0x39d   : > { %v3355_v47 = vpop.eup %3354  ;;  %v2082_v49 = vadd.f32 1.0, %v3353_v31  ;;  %v2023_v28 = vpop.f32.mrb[8].mxu1 }
 0x39e   : > { %v3357_v3 = vpop.eup %3356  ;;  %v2083_v10 = vadd.f32 1.0, %v3355_v47  ;;  %v4600_v55 = vadd.f32 %v2023_v28, %v4563_v57  ;;  %v2025_v24 = vpop.f32.mrb[9].mxu1 }
 0x39f   : > { %v3359_v0 = vpop.eup %3358  ;;  %3368 = vrcp.f32 %v2082_v49  ;;  %v2090_v9 = vadd.f32 1.0, %v3357_v3  ;;  %v4603_v8 = vadd.f32 %v2025_v24, %v4563_v57  ;;  %v2027_v58 = vpop.f32.mrb[10].mxu1 }
 0x3a0   : > { %3370 = vrcp.f32 %v2083_v10  ;;  %v2091_v52 = vadd.f32 1.0, %v3359_v0  ;;  %v3186_v61 = vmul.f32 -1.442695, %v4600_v55  ;;  %v4607_v25 = vadd.f32 %v2027_v58, %v4565_v38  ;;  %v2029_v36 = vpop.f32.mrb[11].mxu1 }
 0x3a1   : > { %3372 = vrcp.f32 %v2090_v9  ;;  %v3187_v62 = vmul.f32 -1.442695, %v4603_v8  ;;  %v4611_v39 = vadd.f32 %v2029_v36, %v4565_v38 }
 0x3a2   : > { %3374 = vrcp.f32 %v2091_v52  ;;  %v3194_v45 = vmul.f32 -1.442695, %v4607_v25 }
 0x3a3   : > { %3376 = vpow2.f32 %v3186_v61  ;;  %v3195_v6 = vmul.f32 -1.442695, %v4611_v39  ;;  %v3361_v41 = vpop.eup %3360 }
 0x3a4   : > { %3378 = vpow2.f32 %v3187_v62  ;;  %v3363_v16 = vpop.eup %3362  ;;  %v2128_v49 = vmul.f32 %v3361_v41, %v4568_v22 }
 0x3a5   : > { %3380 = vpow2.f32 %v3194_v45  ;;  %v3365_v31 = vpop.eup %3364  ;;  %v2129_v3 = vmul.f32 %v3363_v16, %v4571_v34 }
 0x3a6   : > { %3382 = vpow2.f32 %v3195_v6  ;;  %v3367_v47 = vpop.eup %3366  ;;  %v2136_v28 = vmul.f32 %v3365_v31, %v4575_v5 }
 0x3a7   : > { %v2137_v10 = vmul.f32 %v3367_v47, %v4579_v20 }
 0x3a8   : > { %v4619_v0 = vpack.c.bf16 %v2136_v28, %v2128_v49 }
 0x3a9   : > { %v3369_v24 = vpop.eup %3368  ;;  %v4621_v58 = vpack.c.bf16 %v2137_v10, %v2129_v3 }
 0x3aa   : > { %v3371_v9 = vpop.eup %3370  ;;  %2248 = vrot.lane.b32.xlu0 %v4619_v0, %s3420_s9  ;;  %2206 = vrot.lane.b32.xlu1 %v4619_v0, %s3421_s10  ;;  %v2130_v5 = vmul.f32 %v3369_v24, %v4584_v2 }
 0x3ab   : > { %v3373_v52 = vpop.eup %3372  ;;  %v2131_v20 = vmul.f32 %v3371_v9, %v4587_v35 }
 0x3ac   : > { %v3375_v22 = vpop.eup %3374  ;;  %v2138_v34 = vmul.f32 %v3373_v52, %v4591_v23 }
 0x3ad   : > { %v3377_v61 = vpop.eup %3376  ;;  %v2139_v36 = vmul.f32 %v3375_v22, %v4595_v44 }
 0x3ae   : > { %v3379_v62 = vpop.eup %3378  ;;  %v4631_v45 = vpack.c.bf16 %v2138_v34, %v2130_v5  ;;  %v2086_v6 = vadd.f32 1.0, %v3377_v61  ;;  %2330 = vrot.lane.b32.xlu0 %v4619_v0, %s3424_s13  ;;  %2164 = vrot.lane.b32.xlu1 %v4619_v0, %s3422_s11 }
 0x3af   : > { %v3381_v41 = vpop.eup %3380  ;;  %v4633_v16 = vpack.c.bf16 %v2139_v36, %v2131_v20  ;;  %v2087_v31 = vadd.f32 1.0, %v3379_v62 }
 0x3b0   : > { %v3383_v2 = vpop.eup %3382  ;;  %3384 = vrcp.f32 %v2086_v6  ;;  %v2094_v23 = vadd.f32 1.0, %v3381_v41  ;;  %v1980_v35 = vpop.f32.mrb[8].mxu0 }
 0x3b1   : > { %3386 = vrcp.f32 %v2087_v31  ;;  %v2095_v44 = vadd.f32 1.0, %v3383_v2  ;;  %v1981_v47 = vadd.f32 %v1980_v35, %v4563_v57  ;;  %v1982_v49 = vpop.f32.mrb[9].mxu0 }
 0x3b2   : > { %3388 = vrcp.f32 %v2094_v23  ;;  %v1983_v28 = vadd.f32 %v1982_v49, %v4563_v57  ;;  %v1984_v3 = vpop.f32.mrb[10].mxu0  ;;  %2414 = vrot.lane.b32.xlu0 %v4619_v0, %s3425_s14  ;;  %2290 = vrot.lane.b32.xlu1 %v4619_v0, %s3423_s12 }
 0x3b3   : > { %3390 = vrcp.f32 %v2095_v44  ;;  %v3184_v10 = vmul.f32 -1.442695, %v1981_v47  ;;  %v1985_v24 = vadd.f32 %v1984_v3, %v4565_v38  ;;  %v1986_v9 = vpop.f32.mrb[11].mxu0 }
 0x3b4   : > { %v3185_v52 = vmul.f32 -1.442695, %v1983_v28  ;;  %v1987_v22 = vadd.f32 %v1986_v9, %v4565_v38 }
 0x3b5   : > { %3392 = vpow2.f32 %v3184_v10  ;;  %v3192_v5 = vmul.f32 -1.442695, %v1985_v24 }
 0x3b6   : > { %3394 = vpow2.f32 %v3185_v52  ;;  %v3193_v34 = vmul.f32 -1.442695, %v1987_v22  ;;  %2166 = vrot.lane.b32.xlu0 %v4621_v58, %s3422_s11  ;;  %2372 = vrot.lane.b32.xlu1 %v4619_v0, %s3426_s15 }
 0x3b7   : > { %3396 = vpow2.f32 %v3192_v5 }
 0x3b8   : > { %3398 = vpow2.f32 %v3193_v34 }
 0x3ba   : > { %v3385_v57 = vpop.eup %3384  ;;  %2168 = vrot.lane.b32.xlu0 %v4631_v45, %s3422_s11  ;;  %2456 = vrot.lane.b32.xlu1 %v4619_v0, %s3427_s16 }
 0x3bb   : > { %v3387_v61 = vpop.eup %3386  ;;  %v2134_v36 = vmul.f32 %v3385_v57, %v4600_v55 }
 0x3bc   : > { %v3389_v38 = vpop.eup %3388  ;;  %v2135_v6 = vmul.f32 %v3387_v61, %v4603_v8 }
 0x3bd   : > { %v3391_v20 = vpop.eup %3390  ;;  %v2142_v62 = vmul.f32 %v3389_v38, %v4607_v25 }
 0x3be   : > { %v2143_v41 = vmul.f32 %v3391_v20, %v4611_v39  ;;  %2292 = vrot.lane.b32.xlu0 %v4621_v58, %s3423_s12  ;;  %2208 = vrot.lane.b32.xlu1 %v4621_v58, %s3421_s10 }
 0x3bf   : > { %v3393_v31 = vpop.eup %3392  ;;  %v4659_v2 = vpack.c.bf16 %v2142_v62, %v2134_v36  ;;  %v2153_v36 = vld [vmem:[%s5144_s6] sm:$0x3] }
 0x3c0   : > { %v3395_v23 = vpop.eup %3394  ;;  %v4665_v35 = vpack.c.bf16 %v2143_v41, %v2135_v6  ;;  %v2084_v44 = vadd.f32 1.0, %v3393_v31 }
 0x3c1   : > { %5314 = vst [vmem:[#allocation15_spill] sm:$0xff] %v4659_v2  ;;  %v3397_v55 = vpop.eup %3396  ;;  %v2085_v49 = vadd.f32 1.0, %v3395_v23 }
 0x3c2   : > { %5315 = vst [vmem:[#allocation5_spill] sm:$0xff] %v4665_v35  ;;  %v3399_v25 = vpop.eup %3398  ;;  %3400 = vrcp.f32 %v2084_v44  ;;  %v2092_v8 = vadd.f32 1.0, %v3397_v55  ;;  %2294 = vrot.lane.b32.xlu0 %v4631_v45, %s3423_s12  ;;  %2210 = vrot.lane.b32.xlu1 %v4631_v45, %s3421_s10 }
 0x3c3   : > { %3402 = vrcp.f32 %v2085_v49  ;;  %v2093_v39 = vadd.f32 1.0, %v3399_v25 }
 0x3c4   : > { %3404 = vrcp.f32 %v2092_v8 }
 0x3c5   : > { %3406 = vrcp.f32 %v2093_v39  ;;  %v5318_v39 = vld [vmem:[#allocation16_spill] sm:$0xff] }
 0x3c6   : > { %2332 = vrot.lane.b32.xlu0 %v4621_v58, %s3424_s13  ;;  %2250 = vrot.lane.b32.xlu1 %v4621_v58, %s3420_s9 }
 0x3ca   : > { %2376 = vrot.lane.b32.xlu0 %v4631_v45, %s3426_s15  ;;  %2252 = vrot.lane.b32.xlu1 %v4631_v45, %s3420_s9 }
 0x3cc   : > { %v3401_v3 = vpop.eup %3400 }
 0x3cd   : > { %v3403_v10 = vpop.eup %3402  ;;  %v2132_v5 = vmul.f32 %v3401_v3, %v1981_v47 }
 0x3ce   : > { %v3405_v9 = vpop.eup %3404  ;;  %2416 = vrot.lane.b32.xlu0 %v4621_v58, %s3425_s14  ;;  %2334 = vrot.lane.b32.xlu1 %v4631_v45, %s3424_s13  ;;  %v2133_v57 = vmul.f32 %v3403_v10, %v1983_v28  ;;  %v5319_v10 = vld [vmem:[#allocation19_spill] sm:$0xff] }
 0x3cf   : > { %v3407_v52 = vpop.eup %3406  ;;  %v2140_v34 = vmul.f32 %v3405_v9, %v1985_v24 }
 0x3d0   : > { %v2141_v61 = vmul.f32 %v3407_v52, %v1987_v22 }
 0x3d1   : > { %v4683_v38 = vpack.c.bf16 %v2140_v34, %v2132_v5 }
 0x3d2   : > { %v4685_v20 = vpack.c.bf16 %v2141_v61, %v2133_v57  ;;  %2458 = vrot.lane.b32.xlu0 %v4621_v58, %s3427_s16  ;;  %2374 = vrot.lane.b32.xlu1 %v4621_v58, %s3426_s15 }
 0x3d3   : > { %5316 = vst [vmem:[#allocation56_spill] sm:$0xff] %v4683_v38 }
 0x3d4   : > { %5317 = vst [vmem:[#allocation57_spill] sm:$0xff] %v4685_v20 }
 0x3d6   : > { %2212 = vrot.lane.b32.xlu0 %v4633_v16, %s3421_s10  ;;  %2418 = vrot.lane.b32.xlu1 %v4631_v45, %s3425_s14 }
 0x3da   : > { %2254 = vrot.lane.b32.xlu0 %v4633_v16, %s3420_s9  ;;  %2460 = vrot.lane.b32.xlu1 %v4631_v45, %s3427_s16 }
 0x3de   : > { %2378 = vrot.lane.b32.xlu0 %v4633_v16, %s3426_s15  ;;  %2170 = vrot.lane.b32.xlu1 %v4633_v16, %s3422_s11 }
 0x3e2   : > { %2338 = vrot.lane.b32.xlu0 %v4683_v38, %s3424_s13  ;;  %2296 = vrot.lane.b32.xlu1 %v4633_v16, %s3423_s12 }
 0x3e6   : > { %2422 = vrot.lane.b32.xlu0 %v4683_v38, %s3425_s14  ;;  %2336 = vrot.lane.b32.xlu1 %v4633_v16, %s3424_s13 }
 0x3ea   : > { %2214 = vrot.lane.b32.xlu0 %v4683_v38, %s3421_s10  ;;  %2420 = vrot.lane.b32.xlu1 %v4633_v16, %s3425_s14 }
 0x3ee   : > { %2204 = vrot.lane.b32.xlu0 %v4665_v35, %s3421_s10  ;;  %2380 = vrot.lane.b32.xlu1 %v4683_v38, %s3426_s15 }
 0x3f2   : > { %2246 = vrot.lane.b32.xlu0 %v4665_v35, %s3420_s9  ;;  %2155 = vrot.lane.b32.xlu1 %v4665_v35, %s3422_s11 }
 0x3f6   : > { %2462 = vrot.lane.b32.xlu0 %v4633_v16, %s3427_s16  ;;  %2216 = vrot.lane.b32.xlu1 %v4685_v20, %s3421_s10 }
 0x3fa   : > { %2218 = vrot.lane.b32.xlu0 %v4659_v2, %s3421_s10  ;;  %2288 = vrot.lane.b32.xlu1 %v4665_v35, %s3423_s12 }
 0x3fe   : > { %2174 = vrot.lane.b32.xlu0 %v4685_v20, %s3422_s11  ;;  %2464 = vrot.lane.b32.xlu1 %v4683_v38, %s3427_s16 }
 0x402   : > { %2256 = vrot.lane.b32.xlu0 %v4683_v38, %s3420_s9  ;;  %2172 = vrot.lane.b32.xlu1 %v4683_v38, %s3422_s11 }
 0x406   : > { %2260 = vrot.lane.b32.xlu0 %v4659_v2, %s3420_s9  ;;  %2176 = vrot.lane.b32.xlu1 %v4659_v2, %s3422_s11 }
 0x40a   : > { %2300 = vrot.lane.b32.xlu0 %v4685_v20, %s3423_s12  ;;  %2258 = vrot.lane.b32.xlu1 %v4685_v20, %s3420_s9 }
 0x40e   : > { %2340 = vrot.lane.b32.xlu0 %v4685_v20, %s3424_s13  ;;  %2298 = vrot.lane.b32.xlu1 %v4683_v38, %s3423_s12 }
 0x412   : > { %2384 = vrot.lane.b32.xlu0 %v4659_v2, %s3426_s15  ;;  %2302 = vrot.lane.b32.xlu1 %v4659_v2, %s3423_s12 }
 0x416   : > { %2344 = vrot.lane.b32.xlu0 %v4665_v35, %s3424_s13  ;;  %2342 = vrot.lane.b32.xlu1 %v4659_v2, %s3424_s13  ;;  %s3207_s13 = sshll.u32 %s5381_s25, 4 }
 0x41a   : > { %2424 = vrot.lane.b32.xlu0 %v4685_v20, %s3425_s14  ;;  %2382 = vrot.lane.b32.xlu1 %v4685_v20, %s3426_s15 }
 0x41c   : > { %v4763_v47 = vpop.permute.xlu0 %2248  ;;  %v4765_v28 = vpop.permute.xlu1 %2206 }
 0x41e   : > { %2428 = vrot.lane.b32.xlu0 %v4665_v35, %s3425_s14  ;;  %2386 = vrot.lane.b32.xlu1 %v4665_v35, %s3426_s15 }
 0x420   : > { %v4771_v24 = vpop.permute.xlu0 %2330  ;;  %v4773_v22 = vpop.permute.xlu1 %2164 }
 0x422   : > { %2468 = vrot.lane.b32.xlu0 %v4659_v2, %s3427_s16  ;;  %2426 = vrot.lane.b32.xlu1 %v4659_v2, %s3425_s14  ;;  %v5322_v2 = vld [vmem:[#allocation28_spill] sm:$0xff] }
 0x424   : > { %v4782_v62 = vpop.permute.xlu0 %2414  ;;  %v4784_v6 = vpop.permute.xlu1 %2290 }
 0x426   : > { %2756 = vperm.xlu0 %3226, %v2153_v36   ;;  %2466 = vrot.lane.b32.xlu1 %v4685_v20, %s3427_s16 }
 0x428   : > { %v2167_v41 = vpop.permute.xlu0 %2166  ;;  %v4788_v31 = vpop.permute.xlu1 %2372 }
 0x429   : > { %v2178_v25 = vsel %vm876_vm4, %v4773_v22, %v2167_v41 }
 0x42a   : > { %2470 = vrot.lane.b32.xlu1 %v4665_v35, %s3427_s16  ;;  %v2197_v9 = vmul.bf16 %v2178_v25, %v5319_v10  ;;  %s278_s16 = scalar_lea.vmem %s5145_s7, %s3207_s13 }
 0x42c   : > { %v2169_v23 = vpop.permute.xlu0 %2168  ;;  %v4792_v44 = vpop.permute.xlu1 %2456 }
 0x430   : > { %v4794_v55 = vpop.permute.xlu0 %2292  ;;  %v2209_v49 = vpop.permute.xlu1 %2208 }
 0x431   : > { %v2220_v8 = vsel %vm996_vm2, %v4765_v28, %v2209_v49 }
 0x432   : > { %v2239_v3 = vmul.bf16 %v2220_v8, %v5318_v39 }
 0x434   : > { %v4802_v52 = vrot.slane %v2239_v3, 2  ;;  %v2295_v5 = vpop.permute.xlu0 %2294  ;;  %v2211_v34 = vpop.permute.xlu1 %2210 }
 0x435   : > { %v2221_v10 = vsel %vm996_vm2, %v2209_v49, %v2211_v34  ;;  %v2179_v49 = vsel %vm876_vm4, %v2167_v41, %v2169_v23 }
 0x436   : > { %v2600_v57 = vsel %vm1775_vm11, %v2197_v9, %v4802_v52  ;;  %v2240_v37 = vmul.bf16 %v2221_v10, %v5320_v33 }
 0x437   : > { %2787 = vmatprep.subr.bf16.mxu0 %v2600_v57 }
 0x438   : > { %v4806_v61 = vpop.permute.xlu0 %2332  ;;  %v2251_v36 = vpop.permute.xlu1 %2250 }
 0x43c   : > { %v4808_v1 = vpop.permute.xlu0 %2376  ;;  %v2253_v56 = vpop.permute.xlu1 %2252 }
 0x43d   : > { %v2263_v30 = vsel %vm1096_vm3, %v2251_v36, %v2253_v56 }
 0x43e   : > { %v2282_v26 = vmul.bf16 %v2263_v30, %v5323_v53 }
 0x440   : > { %v4810_v32 = vpop.permute.xlu0 %2416  ;;  %v4812_v13 = vpop.permute.xlu1 %2334  ;;  %v2524_v41 = vrot.slane %v2282_v26, 4 }
 0x444   : > { %v4814_v8 = vpop.permute.xlu0 %2458  ;;  %v4816_v25 = vpop.permute.xlu1 %2374 }
 0x448   : > { %v4818_v39 = vpop.permute.xlu0 %2212  ;;  %v4820_v3 = vpop.permute.xlu1 %2418 }
 0x449   : > { %v2222_v9 = vsel %vm996_vm2, %v2211_v34, %v4818_v39  ;;  %v2508_v34 = vrot.slane %v2240_v37, 2 }
 0x44a   : > { %v2241_v38 = vmul.bf16 %v2222_v9, %v5321_v17 }
 0x44c   : > { %v4825_v57 = vpop.permute.xlu0 %2254  ;;  %v4827_v15 = vpop.permute.xlu1 %2460  ;;  %v2509_v10 = vrot.slane %v2241_v38, 2  ;;  %v5327_v38 = vld [vmem:[#allocation33_spill] sm:$0xff] }
 0x44d   : > { %v2264_v7 = vsel %vm1096_vm3, %v2253_v56, %v4825_v57  ;;  %v5325_v56 = vld [vmem:[#allocation29_spill] sm:$0xff] }
 0x44e   : > { %v2283_v20 = vmul.bf16 %v2264_v7, %v5322_v2  ;;  %v2198_v43 = vmul.bf16 %v2179_v49, %v5325_v56  ;;  %v2305_v7 = vsel %vm1172_vm5, %v4794_v55, %v2295_v5 }
 0x450   : > { %v2379_v35 = vpop.permute.xlu0 %2378  ;;  %v4836_v19 = vpop.permute.xlu1 %2170  ;;  %v2525_v59 = vrot.slane %v2283_v20, 4  ;;  %v2604_v53 = vsel %vm1775_vm11, %v2198_v43, %v2508_v34  ;;  %v2633_v43 = vsel %vm776_vm0, %v2508_v34, %v2524_v41 }
 0x451   : > { %v2180_v33 = vsel %vm876_vm4, %v2169_v23, %v4836_v19  ;;  %v5328_v23 = vld [vmem:[#allocation32_spill] sm:$0xff] }
 0x452   : > { %v2199_v29 = vmul.bf16 %v2180_v33, %v5324_v11  ;;  %v2636_v20 = vsel %vm776_vm0, %v2509_v10, %v2525_v59  ;;  %v2324_v9 = vmul.bf16 %v2305_v7, %v5328_v23  ;;  %v2262_v23 = vsel %vm1096_vm3, %v4763_v47, %v2251_v36 }
 0x454   : > { %v4845_v17 = vpop.permute.xlu0 %2338  ;;  %v4847_v2 = vpop.permute.xlu1 %2296  ;;  %v2608_v37 = vsel %vm1775_vm11, %v2199_v29, %v2509_v10  ;;  %v2540_v7 = vrot.slane %v2324_v9, 6  ;;  %v5332_v9 = vld [vmem:[#allocation17_spill] sm:$0xff] }
 0x455   : > { %5326 = vst [vmem:[#allocation16_spill] sm:$0xff] %v4845_v17  ;;  %v2306_v30 = vsel %vm1172_vm5, %v2295_v5, %v4847_v2  ;;  %2828 = vmatprep.subr.bf16.mxu1 %v2608_v37  ;;  %v5330_v5 = vld [vmem:[#allocation36_spill] sm:$0xff] }
 0x456   : > { %v2325_v11 = vmul.bf16 %v2306_v30, %v5327_v38  ;;  %2829 = vmatpush1.bf16.msra.mxu1 %v2604_v53  ;;  %v5331_v30 = vld [vmem:[#allocation34_spill] sm:$0xff] }
 0x457   : > { %2830 = vmatprep.subr.bf16.mxu1 %v2636_v20 }
 0x458   : > { %v2541_v49 = vrot.slane %v2325_v11, 6  ;;  %v4856_v33 = vpop.permute.xlu0 %2422  ;;  %v2337_v56 = vpop.permute.xlu1 %2336 }
 0x459   : > { %5329 = vst [vmem:[#allocation19_spill] sm:$0xff] %v4856_v33  ;;  %v2348_v26 = vsel %vm1248_vm10, %v4812_v13, %v2337_v56  ;;  %v2349_v29 = vsel %vm1248_vm10, %v2337_v56, %v4845_v17  ;;  %v2390_v56 = vsel %vm1324_vm7, %v4808_v1, %v2379_v35 }
 0x45a   : > { %v2366_v37 = vmul.bf16 %v2348_v26, %v5330_v5  ;;  %v2367_v53 = vmul.bf16 %v2349_v29, %v5331_v30  ;;  %2831 = vmatpush1.bf16.msra.mxu1 %v2633_v43  ;;  %v2660_v10 = vsel %vm1708_vm6, %v2525_v59, %v2541_v49  ;;  %v2657_v26 = vsel %vm1708_vm6, %v2524_v41, %v2540_v7  ;;  %v5333_v43 = vld [vmem:[#allocation24_spill] sm:$0xff]  ;;  %v5335_v41 = vld [vmem:[#allocation39_spill] sm:$0xff] }
 0x45b   : > { %2832 = vmatprep.subr.bf16.mxu1 %v2660_v10  ;;  %v2281_v49 = vmul.bf16 %v2262_v23, %v5332_v9  ;;  %v2408_v5 = vmul.bf16 %v2390_v56, %v5333_v43  ;;  %v5336_v23 = vld [vmem:[#allocation41_spill] sm:$0xff] }
 0x45c   : > { %v2557_v38 = vrot.slane %v2367_v53, 2  ;;  %v4866_v11 = vpop.permute.xlu0 %2214  ;;  %v2421_v20 = vpop.permute.xlu1 %2420  ;;  %v2556_v34 = vrot.slane %v2366_v37, 2 }
 0x45d   : > { %v2433_v29 = vsel %vm1400_vm9, %v2421_v20, %v4856_v33  ;;  %v2432_v36 = vsel %vm1400_vm9, %v4820_v3, %v2421_v20  ;;  %v2523_v43 = vrot.slane %v2281_v49, 4 }
 0x45e   : > { %2833 = vmatpush1.bf16.msra.mxu1 %v2657_v26  ;;  %v2688_v59 = vsel %vm1775_vm11, %v4633_v16, %v2557_v38  ;;  %v2451_v53 = vmul.bf16 %v2433_v29, %v5335_v41  ;;  %v2684_v7 = vsel %vm1775_vm11, %v4631_v45, %v2556_v34  ;;  %v5337_v26 = vld [vmem:[#allocation37_spill] sm:$0xff]  ;;  %v2304_v29 = vsel %vm1172_vm5, %v4784_v6, %v4794_v55  ;;  %v5340_v55 = vld [vmem:[#allocation47_spill] sm:$0xff] }
 0x45f   : > { %2834 = vmatprep.subr.bf16.mxu1 %v2688_v59  ;;  %v5338_v59 = vld [vmem:[#allocation38_spill] sm:$0xff] }
 0x460   : > { %v4881_v30 = vpop.permute.xlu0 %2204  ;;  %v4883_v37 = vpop.permute.xlu1 %2380  ;;  %v2450_v9 = vmul.bf16 %v2432_v36, %v5338_v59 }
 0x461   : > { %5334 = vst [vmem:[#allocation22_spill] sm:$0xff] %v4883_v37  ;;  %v2236_v10 = vsel %vm996_vm2, %v4881_v30, %v4765_v28  ;;  %v2391_v16 = vsel %vm1324_vm7, %v2379_v35, %v4883_v37  ;;  %v2572_v35 = vrot.slane %v2408_v5, 4  ;;  %v2589_v37 = vrot.slane %v2451_v53, 6 }
 0x462   : > { %v2238_v56 = vmul.bf16 %v2236_v10, %v5336_v23  ;;  %v2409_v20 = vmul.bf16 %v2391_v16, %v5337_v26  ;;  %2835 = vmatpush1.bf16.msra.mxu1 %v2684_v7  ;;  %v5339_v16 = vld [vmem:[#allocation42_spill] sm:$0xff]  ;;  %v5341_v26 = vld [vmem:[#allocation20_spill] sm:$0xff]  ;;  %v2588_v59 = vrot.slane %v2450_v9, 6 }
 0x463   : > { %v2713_v5 = vsel %vm776_vm0, %v2556_v34, %v2572_v35  ;;  %v2346_v34 = vsel %vm1248_vm10, %v4771_v24, %v4806_v61 }
 0x464   : > { %v2573_v41 = vrot.slane %v2409_v20, 4  ;;  %v4899_v28 = vpop.permute.xlu0 %2246  ;;  %v4901_v33 = vpop.permute.xlu1 %2155  ;;  %v2506_v10 = vrot.slane %v2238_v56, 2  ;;  %v2323_v20 = vmul.bf16 %v2304_v29, %v5341_v26 }
 0x465   : > { %v2278_v45 = vsel %vm1096_vm3, %v4899_v28, %v4763_v47  ;;  %v2194_v36 = vsel %vm876_vm4, %v4901_v33, %v4773_v22  ;;  %v2347_v47 = vsel %vm1248_vm10, %v4806_v61, %v4812_v13  ;;  %v5342_v13 = vld [vmem:[#allocation35_spill] sm:$0xff] }
 0x466   : > { %v2280_v7 = vmul.bf16 %v2278_v45, %v5339_v16  ;;  %v2196_v49 = vmul.bf16 %v2194_v36, %v5340_v55  ;;  %v2716_v23 = vsel %vm776_vm0, %v2557_v38, %v2573_v41  ;;  %v2740_v45 = vsel %vm1708_vm6, %v2573_v41, %v2589_v37  ;;  %v5343_v55 = vld [vmem:[#allocation40_spill] sm:$0xff] }
 0x467   : > { %2836 = vmatprep.subr.bf16.mxu1 %v2716_v23  ;;  %v2630_v38 = vsel %vm776_vm0, %v4802_v52, %v2523_v43  ;;  %v2539_v9 = vrot.slane %v2323_v20, 6  ;;  %v2365_v29 = vmul.bf16 %v2347_v47, %v5342_v13  ;;  %v2737_v36 = vsel %vm1708_vm6, %v2572_v35, %v2588_v59  ;;  %v5344_v23 = vld [vmem:[#allocation45_spill] sm:$0xff]  ;;  %v5345_v20 = vld [vmem:[#allocation23_spill] sm:$0xff] }
 0x468   : > { %v2522_v53 = vrot.slane %v2280_v7, 4  ;;  %v2463_v17 = vpop.permute.xlu0 %2462  ;;  %2837 = vmatpush1.bf16.msra.mxu1 %v2713_v5  ;;  %v2217_v22 = vpop.permute.xlu1 %2216  ;;  %v2596_v56 = vsel %vm1775_vm11, %v2196_v49, %v2506_v10  ;;  %v2389_v16 = vsel %vm1324_vm7, %v4816_v25, %v4808_v1  ;;  %v2388_v7 = vsel %vm1324_vm7, %v4788_v31, %v4816_v25  ;;  %v5346_v5 = vld [vmem:[#allocation43_spill] sm:$0xff] }
 0x469   : > { %2788 = vmatpush1.bf16.msra.mxu0 %v2596_v56  ;;  %2838 = vmatprep.subr.bf16.mxu1 %v2740_v45  ;;  %v2474_v61 = vsel %vm1476_vm14, %v4827_v15, %v2463_v17  ;;  %v2654_v1 = vsel %vm1708_vm6, %v2523_v43, %v2539_v9  ;;  %v2364_v49 = vmul.bf16 %v2346_v34, %v5343_v55 }
 0x46a   : > { %2789 = vmatprep.subr.bf16.mxu0 %v2630_v38  ;;  %v2627_v52 = vsel %vm776_vm0, %v2506_v10, %v2522_v53  ;;  %v2555_v10 = vrot.slane %v2365_v29, 2  ;;  %v2407_v59 = vmul.bf16 %v2389_v16, %v5345_v20  ;;  %v2406_v25 = vmul.bf16 %v2388_v7, %v5346_v5  ;;  %v5348_v7 = vld [vmem:[#allocation44_spill] sm:$0xff] }
 0x46b   : > { %v2431_v47 = vsel %vm1400_vm9, %v4810_v32, %v4820_v3  ;;  %v2492_v56 = vmul.bf16 %v2474_v61, %v4305_v27  ;;  %v2430_v43 = vsel %vm1400_vm9, %v4782_v62, %v4810_v32  ;;  %v2554_v34 = vrot.slane %v2364_v49, 2  ;;  %v5347_v27 = vld [vmem:[#allocation27_spill] sm:$0xff] }
 0x46c   : > { %v2219_v37 = vpop.permute.xlu0 %2218  ;;  %2839 = vmatpush1.bf16.msra.mxu1 %v2737_v36  ;;  %v4929_v41 = vpop.permute.xlu1 %2288  ;;  %v2571_v36 = vrot.slane %v2407_v59, 4  ;;  %v2449_v16 = vmul.bf16 %v2431_v47, %v5347_v27  ;;  %v2680_v32 = vsel %vm1775_vm11, %v4621_v58, %v2555_v10  ;;  %v2448_v61 = vmul.bf16 %v2430_v43, %v5348_v7  ;;  %v5349_v43 = vld [vmem:[#allocation46_spill] sm:$0xff]  ;;  %v5351_v27 = vld [vmem:[#allocation9_spill] sm:$0xff] }
 0x46d   : > { %v2320_v35 = vsel %vm1172_vm5, %v4929_v41, %v4784_v6  ;;  %2790 = vmatpush1.bf16.msra.mxu0 %v2627_v52  ;;  %v2225_v13 = vsel %vm996_vm2, %v2217_v22, %v2219_v37  ;;  %v2226_v52 = vsel %vm996_vm2, %v2219_v37, %v4881_v30  ;;  %v4971_v30 = vld [vmem:[%s5143_s5] sm:$0x1]  ;;  %v2676_v37 = vsel %vm1775_vm11, %v4619_v0, %v2554_v34 }
 0x46e   : > { %v2322_v26 = vmul.bf16 %v2320_v35, %v5344_v23  ;;  %2791 = vmatprep.subr.bf16.mxu0 %v2654_v1  ;;  %v2244_v1 = vmul.bf16 %v2225_v13, %v4205_v40  ;;  %v2245_v58 = vmul.bf16 %v2226_v52, %v4201_v12  ;;  %v2587_v55 = vrot.slane %v2449_v16, 6 }
 0x46f   : > { %v2710_v49 = vsel %vm776_vm0, %v2555_v10, %v2571_v36  ;;  %v2586_v23 = vrot.slane %v2448_v61, 6  ;;  %v2472_v40 = vsel %vm1476_vm14, %v4792_v44, %v4814_v8 }
 0x470   : > { %v2538_v6 = vrot.slane %v2322_v26, 6  ;;  %v2175_v45 = vpop.permute.xlu0 %2174  ;;  %v4949_v38 = vpop.permute.xlu1 %2464  ;;  %v2224_v26 = vsel %vm996_vm2, %v4866_v11, %v2217_v22  ;;  %v2512_v59 = vrot.slane %v2244_v1, 2  ;;  %v2513_v22 = vrot.slane %v2245_v58, 2 }
 0x471   : > { %v2475_v9 = vsel %vm1476_vm14, %v2463_v17, %v4949_v38  ;;  %v2570_v17 = vrot.slane %v2406_v25, 4 }
 0x472   : > { %v2493_v29 = vmul.bf16 %v2475_v9, %v4308_v63  ;;  %v2651_v3 = vsel %vm1708_vm6, %v2522_v53, %v2538_v6  ;;  %v2770_v53 = vsel %vm1775_vm11, %v2492_v56, 0  ;;  %v2490_v9 = vmul.bf16 %v2472_v40, %v5349_v43 }
 0x473   : > { %2792 = vmatpush1.bf16.msra.mxu0 %v2651_v3  ;;  %v2707_v0 = vsel %vm776_vm0, %v2554_v34, %v2570_v17  ;;  %v2223_v34 = vsel %vm996_vm2, %v4818_v39, %v4866_v11  ;;  %v2731_v52 = vsel %vm1708_vm6, %v2570_v17, %v2586_v23 }
 0x474   : > { %v2257_v35 = vpop.permute.xlu0 %2256  ;;  %2793 = vmatprep.subr.bf16.mxu0 %v2680_v32  ;;  %3198 = vmatprep.subr.msk.bf16.mxu1 %vm1775_vm11, %v2493_v29  ;;  %v2173_v63 = vpop.permute.xlu1 %2172  ;;  %v2242_v61 = vmul.bf16 %v2223_v34, %v4423_v50 }
 0x475   : > { %2841 = vmatpush1.bf16.msra.mxu1 %v2770_v53  ;;  %v2182_v13 = vsel %vm876_vm4, %v2173_v63, %v2175_v45 }
 0x477   : > { %2794 = vmatpush1.bf16.msra.mxu0 %v2676_v37 }
 0x478   : > { %v2261_v20 = vpop.permute.xlu0 %2260  ;;  %2795 = vmatprep.subr.bf16.mxu0 %v2710_v49  ;;  %3199 = vmatmul.mubr.msk.bf16.vlgmr.msra.gmra.mrb[12].mxu1 %vm2759_vm15, %v4971_v30  ;;  %v2177_v12 = vpop.permute.xlu1 %2176  ;;  %v2510_v49 = vrot.slane %v2242_v61, 2 }
 0x479   : > { %v2268_v10 = vsel %vm1096_vm3, %v2261_v20, %v4899_v28  ;;  %v2183_v5 = vsel %vm876_vm4, %v2175_v45, %v2177_v12  ;;  %v2184_v25 = vsel %vm876_vm4, %v2177_v12, %v4901_v33  ;;  %2942 = vmatprep.mubr.bf16.mxu1 %v5290_v54  ;;  %v2473_v28 = vsel %vm1476_vm14, %v4814_v8, %v4827_v15  ;;  %v5350_v45 = vld [vmem:[#allocation11_spill] sm:$0xff] }
 0x47a   : > { %v2287_v47 = vmul.bf16 %v2268_v10, %v4222_v48  ;;  %v2202_v56 = vmul.bf16 %v2183_v5, %v4169_v51  ;;  %v2203_v6 = vmul.bf16 %v2184_v25, %v4227_v21  ;;  %v2734_v33 = vsel %vm1708_vm6, %v2571_v36, %v2587_v55  ;;  %v5355_v5 = vld [vmem:[#allocation6_spill] sm:$0xff] }
 0x47b   : > { %2796 = vmatpush1.bf16.msra.mxu0 %v2707_v0  ;;  %v2243_v15 = vmul.bf16 %v2224_v26, %v4427_v42  ;;  %v2265_v8 = vsel %vm1096_vm3, %v4825_v57, %v2257_v35  ;;  %v2491_v36 = vmul.bf16 %v2473_v28, %v5350_v45  ;;  %v2181_v42 = vsel %vm876_vm4, %v4836_v19, %v2173_v63 }
 0x47c   : > { %v5003_v48 = vrot.slane %v2287_v47, 4  ;;  %v2301_v51 = vpop.permute.xlu0 %2300  ;;  %2797 = vmatprep.subr.bf16.mxu0 %v2734_v33  ;;  %v2259_v21 = vpop.permute.xlu1 %2258  ;;  %v2624_v29 = vsel %vm1775_vm11, %v2203_v6, %v2513_v22  ;;  %v2620_v3 = vsel %vm1775_vm11, %v2202_v56, %v2512_v59  ;;  %v2201_v57 = vmul.bf16 %v2182_v13, %v4465_v4  ;;  %v5356_v6 = vld [vmem:[#allocation53_spill] sm:$0xff] }
 0x47d   : > { %v2266_v39 = vsel %vm1096_vm3, %v2257_v35, %v2259_v21  ;;  %v2267_v11 = vsel %vm1096_vm3, %v2259_v21, %v2261_v20  ;;  %2910 = vmatprep.subr.bf16.mxu1 %v2624_v29  ;;  %v2284_v35 = vmul.bf16 %v2265_v8, %v4384_v18  ;;  %v2511_v58 = vrot.slane %v2243_v15, 2 }
 0x47e   : > { %v2286_v16 = vmul.bf16 %v2267_v11, %v5351_v27  ;;  %2911 = vmatpush1.bf16.msra.mxu1 %v2620_v3  ;;  %v2648_v32 = vsel %vm776_vm0, %v2513_v22, %v5003_v48  ;;  %v2285_v7 = vmul.bf16 %v2266_v39, %v4403_v60  ;;  %v2200_v19 = vmul.bf16 %v2181_v42, %v4461_v46  ;;  %v5352_v46 = vld [vmem:[#allocation16_spill] sm:$0xff]  ;;  %v5357_v3 = vld [vmem:[#allocation7_spill] sm:$0xff] }
 0x47f   : > { %2798 = vmatpush1.bf16.msra.mxu0 %v2731_v52  ;;  %2912 = vmatprep.subr.bf16.mxu1 %v2648_v32  ;;  %v2764_v60 = vsel %vm1775_vm11, %v2490_v9, 0  ;;  %v2616_v55 = vsel %vm1775_vm11, %v2201_v57, %v2511_v58  ;;  %v2526_v23 = vrot.slane %v2284_v35, 4  ;;  %v5359_v39 = vld [vmem:[#allocation8_spill] sm:$0xff] }
 0x480   : > { %v2528_v53 = vrot.slane %v2286_v16, 4  ;;  %v2341_v1 = vpop.permute.xlu0 %2340  ;;  %3196 = vmatprep.subr.msk.bf16.mxu0 %vm1775_vm11, %v2491_v36  ;;  %v2299_v17 = vpop.permute.xlu1 %2298  ;;  %v2527_v50 = vrot.slane %v2285_v7, 4  ;;  %v2612_v22 = vsel %vm1775_vm11, %v2200_v19, %v2510_v49  ;;  %v5360_v7 = vld [vmem:[#allocation22_spill] sm:$0xff] }
 0x481   : > { %v2308_v37 = vsel %vm1172_vm5, %v2299_v17, %v2301_v51  ;;  %v2307_v4 = vsel %vm1172_vm5, %v4847_v2, %v2299_v17  ;;  %v2350_v20 = vsel %vm1248_vm10, %v5352_v46, %v2341_v1  ;;  %v5353_v2 = vld [vmem:[#allocation31_spill] sm:$0xff]  ;;  %v2639_v33 = vsel %vm776_vm0, %v2510_v49, %v2526_v23  ;;  %v5362_v17 = vld [vmem:[#allocation12_spill] sm:$0xff] }
 0x482   : > { %v2645_v63 = vsel %vm776_vm0, %v2512_v59, %v2528_v53  ;;  %v2327_v18 = vmul.bf16 %v2308_v37, %v4411_v14  ;;  %v2326_v12 = vmul.bf16 %v2307_v4, %v5353_v2  ;;  %v5354_v14 = vld [vmem:[#allocation49_spill] sm:$0xff]  ;;  %v2642_v56 = vsel %vm776_vm0, %v2511_v58, %v2527_v50 }
 0x483   : > { %2800 = vmatpush1.bf16.msra.mxu0 %v2764_v60  ;;  %2913 = vmatpush1.bf16.msra.mxu1 %v2645_v63  ;;  %v2368_v43 = vmul.bf16 %v2350_v20, %v5356_v6  ;;  %v5364_v4 = vld [vmem:[#allocation57_spill] sm:$0xff]  ;;  %v5365_v63 = vld [vmem:[#allocation15_spill] sm:$0xff] }
 0x484   : > { %v2385_v40 = vpop.permute.xlu0 %2384  ;;  %2869 = vmatprep.subr.bf16.mxu0 %v2616_v55  ;;  %v2303_v26 = vpop.permute.xlu1 %2302  ;;  %v2543_v47 = vrot.slane %v2327_v18, 6  ;;  %v2542_v13 = vrot.slane %v2326_v12, 6  ;;  %v5366_v18 = vld [vmem:[#allocation19_spill] sm:$0xff]  ;;  %v5371_v6 = vld [vmem:[#allocation21_spill] sm:$0xff] }
 0x485   : > { %v2309_v0 = vsel %vm1172_vm5, %v2301_v51, %v2303_v26  ;;  %v2310_v59 = vsel %vm1172_vm5, %v2303_v26, %v4929_v41 }
 0x486   : > { %v2328_v10 = vmul.bf16 %v2309_v0, %v5354_v14  ;;  %v2329_v25 = vmul.bf16 %v2310_v59, %v5355_v5  ;;  %3197 = vmatmul.mubr.msk.bf16.vlgmr.msra.gmra.mrb[12].mxu0 %vm2759_vm15, %v4971_v30  ;;  %v2666_v36 = vsel %vm1708_vm6, %v2527_v50, %v2543_v47  ;;  %v2663_v37 = vsel %vm1708_vm6, %v2526_v23, %v2542_v13  ;;  %v5367_v23 = vld [vmem:[#allocation56_spill] sm:$0xff]  ;;  %v5368_v14 = vld [vmem:[#allocation13_spill] sm:$0xff]  ;;  %v5369_v5 = vld [vmem:[#allocation18_spill] sm:$0xff] }
 0x487   : > { %2870 = vmatpush1.bf16.msra.mxu0 %v2612_v22  ;;  %2901 = vmatprep.mubr.bf16.mxu0 %v5290_v54  ;;  %v5358_v54 = vld [vmem:[#allocation54_spill] sm:$0xff]  ;;  %v5370_v22 = vld [vmem:[#allocation48_spill] sm:$0xff] }
 0x488   : > { %v2544_v9 = vrot.slane %v2328_v10, 6  ;;  %v2545_v28 = vrot.slane %v2329_v25, 6  ;;  %v2345_v41 = vpop.permute.xlu0 %2344  ;;  %2871 = vmatprep.subr.bf16.mxu0 %v2642_v56  ;;  %v2343_v34 = vpop.permute.xlu1 %2342 }
 0x489   : > { %v2362_v51 = vsel %vm1248_vm10, %v2345_v41, %v4771_v24  ;;  %v2351_v21 = vsel %vm1248_vm10, %v2341_v1, %v2343_v34  ;;  %v2352_v29 = vsel %vm1248_vm10, %v2343_v34, %v2345_v41  ;;  %v2558_v24 = vrot.slane %v2368_v43, 2 }
 0x48a   : > { %v2371_v15 = vmul.bf16 %v2362_v51, %v5357_v3  ;;  %v2369_v8 = vmul.bf16 %v2351_v21, %v5358_v54  ;;  %v2370_v11 = vmul.bf16 %v2352_v29, %v5359_v39  ;;  %v2672_v45 = vsel %vm1708_vm6, %v5003_v48, %v2545_v28  ;;  %v5361_v48 = vld [vmem:[#allocation50_spill] sm:$0xff] }
 0x48b   : > { %2872 = vmatpush1.bf16.msra.mxu0 %v2639_v33  ;;  %2914 = vmatprep.subr.bf16.mxu1 %v2672_v45  ;;  %v2669_v27 = vsel %vm1708_vm6, %v2528_v53, %v2544_v9  ;;  %v5363_v53 = vld [vmem:[#allocation5_spill] sm:$0xff]  ;;  %v2692_v20 = vsel %vm1775_vm11, %v5367_v23, %v2558_v24  ;;  %v5372_v33 = vld [vmem:[#allocation55_spill] sm:$0xff]  ;;  %v5373_v51 = vld [vmem:[#allocation10_spill] sm:$0xff] }
 0x48c   : > { %v2561_v16 = vrot.slane %v2371_v15, 2  ;;  %v2559_v52 = vrot.slane %v2369_v8, 2  ;;  %v2560_v32 = vrot.slane %v2370_v11, 2  ;;  %v2425_v42 = vpop.permute.xlu0 %2424  ;;  %2873 = vmatprep.subr.bf16.mxu0 %v2666_v36  ;;  %2915 = vmatpush1.bf16.msra.mxu1 %v2669_v27  ;;  %v2383_v57 = vpop.permute.xlu1 %2382 }
 0x48d   : > { %v2392_v61 = vsel %vm1324_vm7, %v5360_v7, %v2383_v57  ;;  %v2393_v35 = vsel %vm1324_vm7, %v2383_v57, %v2385_v40  ;;  %v2434_v55 = vsel %vm1400_vm9, %v5366_v18, %v2425_v42 }
 0x48e   : > { %v2410_v1 = vmul.bf16 %v2392_v61, %v5361_v48  ;;  %v2411_v58 = vmul.bf16 %v2393_v35, %v5362_v17  ;;  %v2704_v19 = vsel %vm1775_vm11, %v5363_v53, %v2561_v16  ;;  %v2696_v60 = vsel %vm1775_vm11, %v5364_v4, %v2559_v52  ;;  %v5376_v48 = vld [vmem:[#allocation51_spill] sm:$0xff]  ;;  %v5377_v17 = vld [vmem:[#allocation52_spill] sm:$0xff] }
 0x48f   : > { %2874 = vmatpush1.bf16.msra.mxu0 %v2663_v37  ;;  %2916 = vmatprep.subr.bf16.mxu1 %v2704_v19  ;;  %v2700_v50 = vsel %vm1775_vm11, %v5365_v63, %v2560_v32  ;;  %v2452_v43 = vmul.bf16 %v2434_v55, %v5371_v6 }
 0x490   : > { %v2575_v49 = vrot.slane %v2411_v58, 4  ;;  %v2429_v26 = vpop.permute.xlu0 %2428  ;;  %2875 = vmatprep.subr.bf16.mxu0 %v2696_v60  ;;  %2917 = vmatpush1.bf16.msra.mxu1 %v2700_v50  ;;  %v2387_v46 = vpop.permute.xlu1 %2386  ;;  %v2574_v2 = vrot.slane %v2410_v1, 4 }
 0x491   : > { %v2446_v12 = vsel %vm1400_vm9, %v2429_v26, %v4782_v62  ;;  %v2394_v0 = vsel %vm1324_vm7, %v2385_v40, %v2387_v46  ;;  %v2404_v59 = vsel %vm1324_vm7, %v2387_v46, %v4788_v31  ;;  %v2590_v15 = vrot.slane %v2452_v43, 6 }
 0x492   : > { %v2455_v10 = vmul.bf16 %v2446_v12, %v5368_v14  ;;  %v2412_v25 = vmul.bf16 %v2394_v0, %v5369_v5  ;;  %v2413_v47 = vmul.bf16 %v2404_v59, %v5370_v22  ;;  %v2722_v56 = vsel %vm776_vm0, %v2559_v52, %v2575_v49 }
 0x493   : > { %2876 = vmatpush1.bf16.msra.mxu0 %v2692_v20  ;;  %v2719_v34 = vsel %vm776_vm0, %v2558_v24, %v2574_v2  ;;  %v5374_v24 = vld [vmem:[#allocation4_spill] sm:$0xff]  ;;  %v2743_v7 = vsel %vm1708_vm6, %v2574_v2, %v2590_v15 }
 0x494   : > { %v2593_v9 = vrot.slane %v2455_v10, 6  ;;  %v2576_v28 = vrot.slane %v2412_v25, 4  ;;  %v2577_v41 = vrot.slane %v2413_v47, 4  ;;  %2877 = vmatprep.subr.bf16.mxu0 %v2722_v56  ;;  %v2427_v62 = vpop.permute.xlu1 %2426  ;;  %v2469_v54 = vpop.permute.xlu0 %2468 }
 0x495   : > { %v2435_v40 = vsel %vm1400_vm9, %v2425_v42, %v2427_v62  ;;  %v2436_v31 = vsel %vm1400_vm9, %v2427_v62, %v2429_v26  ;;  %v5375_v42 = vld [vmem:[#allocation14_spill] sm:$0xff] }
 0x496   : > { %v2453_v13 = vmul.bf16 %v2435_v40, %v5372_v33  ;;  %v2454_v21 = vmul.bf16 %v2436_v31, %v5373_v51  ;;  %v2728_v29 = vsel %vm776_vm0, %v2561_v16, %v2577_v41  ;;  %v2725_v3 = vsel %vm776_vm0, %v2560_v32, %v2576_v28 }
 0x497   : > { %2878 = vmatpush1.bf16.msra.mxu0 %v2719_v34  ;;  %2918 = vmatprep.subr.bf16.mxu1 %v2728_v29  ;;  %v2752_v45 = vsel %vm1708_vm6, %v2577_v41, %v2593_v9 }
 0x498   : > { %v2591_v8 = vrot.slane %v2453_v13, 6  ;;  %v2592_v39 = vrot.slane %v2454_v21, 6  ;;  %2919 = vmatpush1.bf16.msra.mxu1 %v2725_v3  ;;  %v2467_v11 = vpop.permute.xlu1 %2466 }
 0x499   : > { %v2476_v36 = vsel %vm1476_vm14, %v4949_v38, %v2467_v11  ;;  %v2477_v27 = vsel %vm1476_vm14, %v2467_v11, %v2469_v54  ;;  %2920 = vmatprep.subr.bf16.mxu1 %v2752_v45 }
 0x49a   : > { %v2495_v16 = vmul.bf16 %v2477_v27, %v5374_v24  ;;  %v2746_v52 = vsel %vm1708_vm6, %v2575_v49, %v2591_v8  ;;  %v2749_v32 = vsel %vm1708_vm6, %v2576_v28, %v2592_v39  ;;  %v2494_v57 = vmul.bf16 %v2476_v36, %v5375_v42  ;;  %v5378_v42 = vld [vmem:[#allocation3_spill] sm:$0xff] }
 0x49b   : > { %2879 = vmatprep.subr.bf16.mxu0 %v2746_v52 }
 0x49c   : > { %2880 = vmatpush1.bf16.msra.mxu0 %v2743_v7  ;;  %2921 = vmatpush1.bf16.msra.mxu1 %v2749_v32  ;;  %v2471_v61 = vpop.permute.xlu1 %2470  ;;  %v2776_v37 = vsel %vm1775_vm11, %v2494_v57, 0 }
 0x49d   : > { %v2478_v35 = vsel %vm1476_vm14, %v2469_v54, %v2471_v61  ;;  %v2488_v38 = vsel %vm1476_vm14, %v2471_v61, %v4792_v44  ;;  %3200 = vmatprep.subr.msk.bf16.mxu0 %vm1775_vm11, %v2495_v16 }
 0x49e   : > { %v2496_v1 = vmul.bf16 %v2478_v35, %v5376_v48  ;;  %v2497_v58 = vmul.bf16 %v2488_v38, %v5377_v17  ;;  %v5379_v35 = vld [vmem:[#allocation2_spill] sm:$0xff] }
 0x4a0   : > { %2882 = vmatpush1.bf16.msra.mxu0 %v2776_v37  ;;  %3202 = vmatprep.subr.msk.bf16.mxu1 %vm1775_vm11, %v2497_v58  ;;  %v2782_v53 = vsel %vm1775_vm11, %v2496_v1, 0 }
 0x4a1   : > { %2923 = vmatpush1.bf16.msra.mxu1 %v2782_v53 }
 0x4a3   : > { %3201 = vmatmul.mubr.msk.bf16.vlgmr.msra.gmra.mrb[16].mxu0 %vm2759_vm15, %v4971_v30 }
 0x4a4   : > { %3203 = vmatmul.mubr.msk.bf16.vlgmr.msra.gmra.mrb[16].mxu1 %vm2759_vm15, %v4971_v30 }
 0x4a5   : > { %v2757_v63 = vpop.permute.xlu0 %2756 }
 0x54b   : > { %v2862_v44 = vpop.f32.mrb[12].mxu1 }
 0x54c   : > { %v2864_v19 = vpop.f32.mrb[13].mxu1  ;;  %v2863_v50 = vadd.f32 %v2862_v44, %v2757_v63 }
 0x54d   : > { %v2866_v4 = vpop.f32.mrb[14].mxu1  ;;  %v2865_v18 = vadd.f32 %v2864_v19, %v2757_v63 }
 0x54e   : > { %v2867_v60 = vpop.f32.mrb[15].mxu1  ;;  %v2953_v49 = vrot.slane %v2863_v50, 7  ;;  %v2975_v13 = vrot.slane %v2863_v50, 4 }
 0x54f   : > { %v2954_v23 = vrot.slane %v2865_v18, 7  ;;  %v2976_v3 = vrot.slane %v2865_v18, 4 }
 0x559   : > { %v2821_v55 = vpop.f32.mrb[12].mxu0 }
 0x55a   : > { %v2822_v26 = vadd.f32 %v2821_v55, %v2757_v63  ;;  %v2823_v46 = vpop.f32.mrb[13].mxu0 }
 0x55b   : > { %v2824_v20 = vadd.f32 %v2823_v46, %v2757_v63  ;;  %v2825_v2 = vpop.f32.mrb[14].mxu0 }
 0x55c   : > { %v2987_v12 = vsel %vm823_vm1, %v2822_v26, %v2953_v49  ;;  %v2826_v0 = vpop.f32.mrb[15].mxu0  ;;  %v2971_v31 = vrot.slane %v2822_v26, 5 }
 0x55d   : > { %v2988_v59 = vsel %vm823_vm1, %v2824_v20, %v2954_v23  ;;  %v2972_v51 = vrot.slane %v2824_v20, 5 }
 0x576   : > { %v2903_v30 = vpop.f32.mrb[16].mxu0 }
 0x577   : > { %v2904_v14 = vadd.f32 %v2903_v30, %v2757_v63  ;;  %v2905_v10 = vpop.f32.mrb[17].mxu0  ;;  %v2944_v5 = vpop.f32.mrb[16].mxu1 }
 0x578   : > { %v2906_v25 = vadd.f32 %v2905_v10, %v2757_v63  ;;  %v2945_v22 = vadd.f32 %v2944_v5, %v2757_v63  ;;  %v2907_v47 = vpop.f32.mrb[18].mxu0  ;;  %v2946_v56 = vpop.f32.mrb[17].mxu1 }
 0x579   : > { %v2959_v6 = vrot.slane %v2904_v14, 6  ;;  %v2947_v43 = vadd.f32 %v2946_v56, %v2757_v63  ;;  %v2908_v9 = vpop.f32.mrb[19].mxu0  ;;  %v2948_v28 = vpop.f32.mrb[18].mxu1  ;;  %v2979_v15 = vrot.slane %v2904_v14, 3 }
 0x57a   : > { %v2960_v41 = vrot.slane %v2906_v25, 6  ;;  %v2965_v62 = vrot.slane %v2945_v22, 5  ;;  %v2949_v40 = vpop.f32.mrb[19].mxu1  ;;  %v2980_v39 = vrot.slane %v2906_v25, 3  ;;  %v2983_v11 = vrot.slane %v2945_v22, 2 }
 0x57b   : > { %v2989_v34 = vsel %vm1708_vm6, %v2987_v12, %v2959_v6  ;;  %v2966_v33 = vrot.slane %v2947_v43, 5  ;;  %v2984_v24 = vrot.slane %v2947_v43, 2 }
 0x57c   : > { %v2990_v21 = vsel %vm1708_vm6, %v2988_v59, %v2960_v41  ;;  %v2991_v29 = vsel %vm1725_vm8, %v2989_v34, %v2965_v62 }
 0x57d   : > { %v2993_v54 = vsel %vm776_vm0, %v2991_v29, %v2971_v31  ;;  %v2992_v8 = vsel %vm1725_vm8, %v2990_v21, %v2966_v33 }
 0x57e   : > { %v2995_v45 = vsel %vm1758_vm12, %v2993_v54, %v2975_v13  ;;  %v2994_v36 = vsel %vm776_vm0, %v2992_v8, %v2972_v51 }
 0x57f   : > { %v2997_v27 = vsel %vm1775_vm11, %v2995_v45, %v2979_v15  ;;  %v2996_v16 = vsel %vm1758_vm12, %v2994_v36, %v2976_v3 }
 0x580   : > { %v2999_v52 = vsel %vm1792_vm13, %v2997_v27, %v2983_v11  ;;  %v2998_v32 = vsel %vm1775_vm11, %v2996_v16, %v2980_v39 }
 0x581   : > { %v3001_v57 = vmul.f32 %v2999_v52, %v5378_v42  ;;  %v3000_v7 = vsel %vm1792_vm13, %v2998_v32, %v2984_v24 }
 0x582   : > { %v3002_v61 = vmul.f32 %v3000_v7, %v5378_v42 }
 0x583   : > { %v3003_v38 = vadd.f32 %v3001_v57, %v5379_v35 }
 0x584   : > { %v3004_v48 = vadd.f32 %v3002_v61, %v5379_v35 }
 0x585   : > { %v3005_v1 = vmul.f32 %v3003_v38, %v3003_v38 }
 0x586   : > { %v3006_v17 = vmul.f32 %v3004_v48, %v3004_v48 }
 0x587   : > { %v3007_v58 = vrot.slane %v3005_v1, 4 }
 0x588   : > { %v3013_v37 = vrot.slane %v3006_v17, 4 }
 0x589   : > { %v3008_v53 = vadd.f32 %v3007_v58, %v3005_v1 }
 0x58a   : > { %v3014_v44 = vadd.f32 %v3013_v37, %v3006_v17 }
 0x58b   : > { %v3009_v19 = vrot.slane %v3008_v53, 2 }
 0x58c   : > { %v3015_v4 = vrot.slane %v3014_v44, 2 }
 0x58d   : > { %v3010_v60 = vadd.f32 %v3009_v19, %v3008_v53 }
 0x58e   : > { %v3016_v63 = vadd.f32 %v3015_v4, %v3014_v44 }
 0x58f   : > { %v3011_v50 = vrot.slane %v3010_v60, 1 }
 0x590   : > { %v3017_v18 = vrot.slane %v3016_v63, 1 }
 0x591   : > { %v3012_v55 = vadd.f32 %v3011_v50, %v3010_v60 }
 0x592   : > { %v3018_v49 = vadd.f32 %v3017_v18, %v3016_v63 }
 0x593   : > { %3408 = vrsqrt.f32 %v3012_v55 }
 0x594   : > { %3410 = vrsqrt.f32 %v3018_v49 }
 0x59d   : > { %v3409_v26 = vpop.eup %3408 }
 0x59e   : > { %v3411_v46 = vpop.eup %3410  ;;  %v3021_v23 = vmul.f32 %v3409_v26, %v3003_v38 }
 0x59f   : > { %v3022_v20 = vmul.f32 %v3411_v46, %v3004_v48 }
 0x5a0   : > { %3023 = vst [vmem:[%s278_s16] sm:$0xff] %v3021_v23 }
 0x5a1   : > { %3024 = vst [vmem:[%s278_s16 + $0x8] sm:$0xff] %v3022_v20 }
 0x5a2 PF: > { %s17_s24 = sadd.s32 1, %s3418_s24  }
 0x5a3   : > { %p14_p4 = scmp.ge.s32.totalorder %s17_s24, 4  }
 0x5a5   :  { %16 = sbr.rel (!%p14_p4) target bundleno = 1 (0x1), region = 78 }

</bundles_post_ra>
